<compile_context>
chip_gen: v7x
topology: tpu7x:2x2x1
jax: 0.10.0
libtpu: 0.0.40
codegen_flags: <defaults>
</compile_context>

<pallas_src>
import numpy as np
import jax
import jax.numpy as jnp
from jax.experimental import pallas as pl
from jax.experimental.pallas import tpu as pltpu

EPS = 1e-5
_SUB = 8  # sublane quantum for f32 second-minor dims


# ---------------------------------------------------------------------------
# Small helpers
# ---------------------------------------------------------------------------
def _round_up(x, m):
    return ((x + m - 1) // m) * m


def _pad_axis(a, axis, target):
    if a.shape[axis] == target:
        return a
    pads = [(0, 0)] * a.ndim
    pads[axis] = (0, target - a.shape[axis])
    return jnp.pad(a, pads)


def _fold_conv_bn(p, eps=EPS):
    """Fold eval-mode BatchNorm into the preceding conv. Returns (w_eff 4D, b_eff 1D)."""
    w = p['w']
    g, b, m, v = p['bn']
    scale = g / jnp.sqrt(v + eps)
    w_eff = w * scale[:, None, None, None]
    b_eff = b - m * scale
    return w_eff, b_eff


def _make_tap_masks(H, W, imgs_per_tile):
    """(9, 1, imgs*H*W) f32 validity masks for the 9 taps of a pad-1 3x3 conv
    over images laid out contiguously along the lane axis."""
    hw = H * W
    h_idx = np.arange(hw) // W
    w_idx = np.arange(hw) % W
    masks = np.zeros((9, 1, hw), np.float32)
    t = 0
    for dy in (-1, 0, 1):
        for dx in (-1, 0, 1):
            ok = ((h_idx + dy >= 0) & (h_idx + dy < H)
                  & (w_idx + dx >= 0) & (w_idx + dx < W))
            masks[t, 0, :] = ok.astype(np.float32)
            t += 1
    return jnp.asarray(np.tile(masks, (1, 1, imgs_per_tile)))


def _pick_imgs_per_tile(n, hw, target_lanes=2048):
    """Whole images per lane tile: prefer >=2 grid steps (pipelining/megacore),
    lane extent a multiple of 128, and <= target_lanes to bound VMEM/vregs."""
    candidates = []
    for k in range(1, n + 1):
        if n % k:
            continue
        tiles, lanes = n // k, k * hw
        if tiles > 1 and lanes % 128 != 0:
            continue
        candidates.append((k, tiles, lanes))
    good = [c for c in candidates if c[1] >= 2 and c[2] <= target_lanes]
    if good:
        return max(good, key=lambda c: c[2])[0]
    small = [c for c in candidates if c[2] <= target_lanes]
    if small:
        return max(small, key=lambda c: c[2])[0]
    return n  # single full-extent tile fallback


# ---------------------------------------------------------------------------
# Fused kernel
# ---------------------------------------------------------------------------
def _silu(x):
    # x * sigmoid(x); exp and the approx reciprocal both live on the EUP slot.
    return x * pl.reciprocal(1.0 + jnp.exp(-x), approx=True)


def _make_csp_kernel(n_blocks, shortcut, cp, img_w, tile_lanes, cdt):
    # tap order matches the (ky, kx)-major flatten of the conv weights below.
    tap_off = [dy * img_w + dx for dy in (-1, 0, 1) for dx in (-1, 0, 1)]

    def kernel(*refs):
        x_ref, mask_ref, w1_ref, b1_ref = refs[:4]
        blk_refs = refs[4:4 + 4 * n_blocks]
        (w3_ref, w2_ref, s1_ref, t1_ref, s2_ref, t2_ref,
         w4a_ref, w4b_ref, b4_ref, o_ref) = refs[4 + 4 * n_blocks:]

        x = x_ref[...]                                         # (c1p, T) bf16
        # cv1: 1x1 conv + BN + SiLU (BN folded into w1/b1)
        y = _silu(jnp.dot(w1_ref[...], x,
                          preferred_element_type=jnp.float32) + b1_ref[...])

        def conv3x3_bn_silu(a_f32, w_ref, b_ref):
            # pad-1 / stride-1 3x3 conv = 9 masked lane-rolls + 9 MXU dots.
            acc = jnp.zeros((cp, tile_lanes), jnp.float32)
            for t, s in enumerate(tap_off):
                if s == 0:
                    shifted = a_f32
                else:
                    # result[p] = a[(p + s) mod T]; wrap positions are masked off.
                    shifted = pltpu.roll(a_f32, shift=(-s) % tile_lanes, axis=1)
                tap = (shifted * mask_ref[t]).astype(cdt)
                acc = acc + jnp.dot(w_ref[t], tap,
                                    preferred_element_type=jnp.float32)
            return _silu(acc + b_ref[...])

        # m: n x Bottleneck(c_, c_, shortcut, e=1.0); y stays resident on-chip.
        for b in range(n_blocks):
            wa_ref, ba_ref, wb_ref, bb_ref = blk_refs[4 * b:4 * b + 4]
            h = conv3x3_bn_silu(y, wa_ref, ba_ref)
            h = conv3x3_bn_silu(h, wb_ref, bb_ref)
            y = y + h if shortcut else h

        # CSP tail: cv3 / cv2 (plain 1x1), BN + SiLU on concat (split per half),
        # cv4 (+folded BN) + SiLU — concat expressed as a split matmul.
        y1 = jnp.dot(w3_ref[...], y.astype(cdt), preferred_element_type=jnp.float32)
        y2 = jnp.dot(w2_ref[...], x, preferred_element_type=jnp.float32)
        z1 = _silu(s1_ref[...] * y1 + t1_ref[...]).astype(cdt)
        z2 = _silu(s2_ref[...] * y2 + t2_ref[...]).astype(cdt)
        pre = (jnp.dot(w4a_ref[...], z1, preferred_element_type=jnp.float32)
               + jnp.dot(w4b_ref[...], z2, preferred_element_type=jnp.float32)
               + b4_ref[...])
        o_ref[...] = _silu(pre).astype(o_ref.dtype)

    return kernel


# ---------------------------------------------------------------------------
# Wrapper
# ---------------------------------------------------------------------------
def bottleneck_csp_pallas(x, params, shortcut=True, eps=EPS,
                          compute_dtype=jnp.bfloat16, target_tile_lanes=2048):
    # TODO(synk): grouped conv (g > 1) in Bottleneck.cv2 is not implemented (g=1 only).
    N, c1, H, W = x.shape
    hw = H * W
    c_ = params['cv3_w'].shape[0]
    c2 = params['cv4']['w'].shape[0]
    n_blocks = len(params['m'])

    c1p, cp, c2p = (_round_up(c, _SUB) for c in (c1, c_, c2))

    imgs = _pick_imgs_per_tile(N, hw, target_tile_lanes)
    T = imgs * hw
    num_tiles = N // imgs

    # Activations: channels-major, batch folded into the lane axis (one image
    # per contiguous HW chunk), channel-padded, bf16 for the dot operands.
    x_l = jnp.transpose(x, (1, 0, 2, 3)).reshape(c1, N * hw)
    x_l = _pad_axis(x_l, 0, c1p).astype(compute_dtype)

    masks = _make_tap_masks(H, W, imgs)                         # (9, 1, T) f32

    # cv1 (1x1 conv + BN + SiLU), BN folded.
    w1e, b1e = _fold_conv_bn(params['cv1'], eps)
    w1 = _pad_axis(_pad_axis(w1e.reshape(c_, c1), 0, cp), 1, c1p).astype(compute_dtype)
    b1 = _pad_axis(b1e.reshape(c_, 1), 0, cp)

    # Bottleneck blocks: two 3x3 conv+BN+SiLU each; weights as (9, cout, cin).
    blk_arrays = []
    for blk in params['m']:
        for key in ('cv1', 'cv2'):
            we, be = _fold_conv_bn(blk[key], eps)               # (c_, c_, 3, 3)
            wt = jnp.transpose(we, (2, 3, 0, 1)).reshape(9, c_, c_)
            wt = _pad_axis(_pad_axis(wt, 1, cp), 2, cp).astype(compute_dtype)
            bt = _pad_axis(be.reshape(c_, 1), 0, cp)
            blk_arrays += [wt, bt]

    # CSP tail parameters.
    w3 = _pad_axis(_pad_axis(params['cv3_w'].reshape(c_, c_), 0, cp), 1, cp).astype(compute_dtype)
    w2 = _pad_axis(_pad_axis(params['cv2_w'].reshape(c_, c1), 0, cp), 1, c1p).astype(compute_dtype)
    g, b, m_, v = params['bn']
    scale = g / jnp.sqrt(v + eps)
    shift = b - m_ * scale
    s1 = _pad_axis(scale[:c_].reshape(c_, 1), 0, cp)
    t1 = _pad_axis(shift[:c_].reshape(c_, 1), 0, cp)
    s2 = _pad_axis(scale[c_:].reshape(c_, 1), 0, cp)
    t2 = _pad_axis(shift[c_:].reshape(c_, 1), 0, cp)
    w4e, b4e = _fold_conv_bn(params['cv4'], eps)                # (c2, 2c_, 1, 1)
    w4 = w4e.reshape(c2, 2 * c_)
    w4a = _pad_axis(_pad_axis(w4[:, :c_], 0, c2p), 1, cp).astype(compute_dtype)
    w4b = _pad_axis(_pad_axis(w4[:, c_:], 0, c2p), 1, cp).astype(compute_dtype)
    b4 = _pad_axis(b4e.reshape(c2, 1), 0, c2p)

    inputs = [x_l, masks, w1, b1, *blk_arrays,
              w3, w2, s1, t1, s2, t2, w4a, w4b, b4]

    def const_spec(a):
        return pl.BlockSpec(a.shape, lambda i: (0,) * a.ndim)

    in_specs = [pl.BlockSpec((c1p, T), lambda i: (0, i))]
    in_specs += [const_spec(a) for a in inputs[1:]]
    out_spec = pl.BlockSpec((c2p, T), lambda i: (0, i))

    kernel = _make_csp_kernel(n_blocks, shortcut, cp, W, T, compute_dtype)

    # Advisory cost estimate (fused: one HBM pass over x and out, weights once).
    flops = 2 * N * hw * (cp * c1p + n_blocks * 2 * 9 * cp * cp
                          + cp * cp + cp * c1p + 2 * c2p * cp)
    trans = N * hw * (cp * (3 + 2 * n_blocks) + c2p)
    weight_bytes = sum(int(a.size) * a.dtype.itemsize for a in inputs[1:])
    act_block_bytes = c1p * T * x_l.dtype.itemsize + c2p * T * 4
    bytes_acc = int(x_l.size) * x_l.dtype.itemsize + weight_bytes + c2p * N * hw * 4

    # Explicit scoped-VMEM budget: double-buffered activation tiles + resident
    # weights/masks, with headroom; capped well under v7x's 64 MiB physical.
    vmem_limit = int(min(48 * 2 ** 20,
                         max(32 * 2 ** 20, 4 * (2 * act_block_bytes + weight_bytes))))

    out_l = pl.pallas_call(
        kernel,
        out_shape=jax.ShapeDtypeStruct((c2p, N * hw), jnp.float32),
        grid=(num_tiles,),
        in_specs=in_specs,
        out_specs=out_spec,
        compiler_params=pltpu.CompilerParams(
            dimension_semantics=("parallel",),
            vmem_limit_bytes=vmem_limit),
        cost_estimate=pl.CostEstimate(flops=int(flops), transcendentals=int(trans),
                                      bytes_accessed=int(bytes_acc)),
    )(*inputs)

    out = out_l[:c2].reshape(c2, N, H, W)
    return jnp.transpose(out, (1, 0, 2, 3))


# ---------------------------------------------------------------------------
# Pure-JAX reference (independent path: lax conv + explicit BN/SiLU)
# ---------------------------------------------------------------------------
def _ref_conv(x, w):
    pad = w.shape[2] // 2
    return jax.lax.conv_general_dilated(
        x, w, window_strides=(1, 1), padding=[(pad, pad), (pad, pad)],
        dimension_numbers=('NCHW', 'OIHW', 'NCHW'),
        precision=jax.lax.Precision.HIGHEST)


def _ref_bn(x, p, eps=EPS):
    g, b, m, v = p
    inv = g / jnp.sqrt(v + eps)
    return x * inv[None, :, None, None] + (b - m * inv)[None, :, None, None]


def _ref_silu(x):
    return x * jax.nn.sigmoid(x)


def _ref_conv_bn_act(x, p, eps=EPS):
    return _ref_silu(_ref_bn(_ref_conv(x, p['w']), p['bn'], eps))


def bottleneck_csp_reference(x, params, shortcut=True, eps=EPS):
    y = _ref_conv_bn_act(x, params['cv1'], eps)
    for blk in params['m']:
        h = _ref_conv_bn_act(y, blk['cv1'], eps)
        h = _ref_conv_bn_act(h, blk['cv2'], eps)
        y = y + h if shortcut else h
    y1 = _ref_conv(y, params['cv3_w'])
    y2 = _ref_conv(x, params['cv2_w'])
    z = _ref_silu(_ref_bn(jnp.concatenate([y1, y2], axis=1), params['bn'], eps))
    return _ref_conv_bn_act(z, params['cv4'], eps)


# ---------------------------------------------------------------------------
# Deterministic parameter construction
# ---------------------------------------------------------------------------
def _conv_bn_init(key, cin, cout, k):
    kw, kg, kb, km, kv = jax.random.split(key, 5)
    fan_in = cin * k * k
    return {
        'w': jax.random.normal(kw, (cout, cin, k, k), jnp.float32) / np.sqrt(fan_in),
        'bn': (1.0 + 0.1 * jax.random.normal(kg, (cout,), jnp.float32),
               0.1 * jax.random.normal(kb, (cout,), jnp.float32),
               0.1 * jax.random.normal(km, (cout,), jnp.float32),
               jax.random.uniform(kv, (cout,), jnp.float32, minval=0.5, maxval=1.5)),
    }


def init_params(key, c1, c2, n=1, e=0.5):
    c_ = int(c2 * e)
    keys = jax.random.split(key, 6 + 2 * n)
    return {
        'cv1': _conv_bn_init(keys[0], c1, c_, 1),
        'cv2_w': jax.random.normal(keys[1], (c_, c1, 1, 1), jnp.float32) / np.sqrt(c1),
        'cv3_w': jax.random.normal(keys[2], (c_, c_, 1, 1), jnp.float32) / np.sqrt(c_),
        'cv4': _conv_bn_init(keys[3], 2 * c_, c2, 1),
        'bn': (1.0 + 0.1 * jax.random.normal(keys[4], (2 * c_,), jnp.float32),
               0.1 * jax.random.normal(keys[5], (2 * c_,), jnp.float32),
               0.1 * jax.random.normal(jax.random.fold_in(keys[4], 1), (2 * c_,), jnp.float32),
               jax.random.uniform(jax.random.fold_in(keys[5], 1), (2 * c_,), jnp.float32,
                                  minval=0.5, maxval=1.5)),
        'm': [{'cv1': _conv_bn_init(keys[6 + 2 * i], c_, c_, 3),
               'cv2': _conv_bn_init(keys[7 + 2 * i], c_, c_, 3)}
              for i in range(n)],
    }


if __name__ == "__main__":
    key = jax.random.PRNGKey(0)
    kx, kp = jax.random.split(key)

    N, C1, C2, H, W = 2, 8, 8, 16, 16          # c_ = 4, HW = 256 (lane-dense tiles)
    n_blocks, shortcut = 2, True

    x = jax.random.normal(kx, (N, C1, H, W), jnp.float32)
    params = init_params(kp, C1, C2, n=n_blocks, e=0.5)

    out = jax.block_until_ready(bottleneck_csp_pallas(x, params, shortcut=shortcut))
    ref = jax.block_until_ready(bottleneck_csp_reference(x, params, shortcut=shortcut))

    # Tolerance covers bf16 MXU operands + approx EUP reciprocal in SiLU;
    # structural errors (tap order / BN fold / residual / concat split) would
    # be O(0.3-1) and are still caught.
    np.testing.assert_allclose(np.asarray(out), np.asarray(ref), rtol=5e-2, atol=5e-2)

    print("KERNEL_OK")
</pallas_src>

<mosaic_0001>
module attributes {stable_mosaic.version = 11 : i64} {
  func.func @kernel(%arg0: i32, %arg1: memref<8x256xbf16, #tpu.memory_space<vmem>>, %arg2: memref<9x1x256xf32, #tpu.memory_space<vmem>>, %arg3: memref<8x8xbf16, #tpu.memory_space<vmem>>, %arg4: memref<8x1xf32, #tpu.memory_space<vmem>>, %arg5: memref<9x8x8xbf16, #tpu.memory_space<vmem>>, %arg6: memref<8x1xf32, #tpu.memory_space<vmem>>, %arg7: memref<9x8x8xbf16, #tpu.memory_space<vmem>>, %arg8: memref<8x1xf32, #tpu.memory_space<vmem>>, %arg9: memref<9x8x8xbf16, #tpu.memory_space<vmem>>, %arg10: memref<8x1xf32, #tpu.memory_space<vmem>>, %arg11: memref<9x8x8xbf16, #tpu.memory_space<vmem>>, %arg12: memref<8x1xf32, #tpu.memory_space<vmem>>, %arg13: memref<8x8xbf16, #tpu.memory_space<vmem>>, %arg14: memref<8x8xbf16, #tpu.memory_space<vmem>>, %arg15: memref<8x1xf32, #tpu.memory_space<vmem>>, %arg16: memref<8x1xf32, #tpu.memory_space<vmem>>, %arg17: memref<8x1xf32, #tpu.memory_space<vmem>>, %arg18: memref<8x1xf32, #tpu.memory_space<vmem>>, %arg19: memref<8x8xbf16, #tpu.memory_space<vmem>>, %arg20: memref<8x8xbf16, #tpu.memory_space<vmem>>, %arg21: memref<8x1xf32, #tpu.memory_space<vmem>>, %arg22: memref<8x256xf32, #tpu.memory_space<vmem>>) attributes {dimension_semantics = [#tpu.dimension_semantics<parallel>], iteration_bounds = array<i64: 2>, scalar_prefetch = 0 : i64, scratch_operands = 0 : i64, tpu.core_type = #tpu.core_type<tc>, window_params = [{transform_indices = @transform_0, window_bounds = array<i64: 8, 256>}, {pipeline_mode = #tpu.pipeline_mode<synchronous>, transform_indices = @transform_1, window_bounds = array<i64: 9, 1, 256>}, {pipeline_mode = #tpu.pipeline_mode<synchronous>, transform_indices = @transform_2, window_bounds = array<i64: 8, 8>}, {pipeline_mode = #tpu.pipeline_mode<synchronous>, transform_indices = @transform_3, window_bounds = array<i64: 8, 1>}, {pipeline_mode = #tpu.pipeline_mode<synchronous>, transform_indices = @transform_4, window_bounds = array<i64: 9, 8, 8>}, {pipeline_mode = #tpu.pipeline_mode<synchronous>, transform_indices = @transform_5, window_bounds = array<i64: 8, 1>}, {pipeline_mode = #tpu.pipeline_mode<synchronous>, transform_indices = @transform_6, window_bounds = array<i64: 9, 8, 8>}, {pipeline_mode = #tpu.pipeline_mode<synchronous>, transform_indices = @transform_7, window_bounds = array<i64: 8, 1>}, {pipeline_mode = #tpu.pipeline_mode<synchronous>, transform_indices = @transform_8, window_bounds = array<i64: 9, 8, 8>}, {pipeline_mode = #tpu.pipeline_mode<synchronous>, transform_indices = @transform_9, window_bounds = array<i64: 8, 1>}, {pipeline_mode = #tpu.pipeline_mode<synchronous>, transform_indices = @transform_10, window_bounds = array<i64: 9, 8, 8>}, {pipeline_mode = #tpu.pipeline_mode<synchronous>, transform_indices = @transform_11, window_bounds = array<i64: 8, 1>}, {pipeline_mode = #tpu.pipeline_mode<synchronous>, transform_indices = @transform_12, window_bounds = array<i64: 8, 8>}, {pipeline_mode = #tpu.pipeline_mode<synchronous>, transform_indices = @transform_13, window_bounds = array<i64: 8, 8>}, {pipeline_mode = #tpu.pipeline_mode<synchronous>, transform_indices = @transform_14, window_bounds = array<i64: 8, 1>}, {pipeline_mode = #tpu.pipeline_mode<synchronous>, transform_indices = @transform_15, window_bounds = array<i64: 8, 1>}, {pipeline_mode = #tpu.pipeline_mode<synchronous>, transform_indices = @transform_16, window_bounds = array<i64: 8, 1>}, {pipeline_mode = #tpu.pipeline_mode<synchronous>, transform_indices = @transform_17, window_bounds = array<i64: 8, 1>}, {pipeline_mode = #tpu.pipeline_mode<synchronous>, transform_indices = @transform_18, window_bounds = array<i64: 8, 8>}, {pipeline_mode = #tpu.pipeline_mode<synchronous>, transform_indices = @transform_19, window_bounds = array<i64: 8, 8>}, {pipeline_mode = #tpu.pipeline_mode<synchronous>, transform_indices = @transform_20, window_bounds = array<i64: 8, 1>}, {transform_indices = @transform_21, window_bounds = array<i64: 8, 256>}]} {
    %c0 = arith.constant 0 : index
    %c0_0 = arith.constant 0 : index
    %0 = vector.load %arg1[%c0, %c0_0] : memref<8x256xbf16, #tpu.memory_space<vmem>>, vector<8x256xbf16>
    %c0_1 = arith.constant 0 : index
    %c0_2 = arith.constant 0 : index
    %1 = vector.load %arg3[%c0_1, %c0_2] : memref<8x8xbf16, #tpu.memory_space<vmem>>, vector<8x8xbf16>
    %cst = arith.constant dense<0.000000e+00> : vector<8x256xf32>
    %2 = tpu.matmul %1, %0, %cst {dimension_numbers = #tpu.dot_dimension_numbers<[1], [0], [0], [1], [0, 0, 1, 1], [], []>} : vector<8x8xbf16>, vector<8x256xbf16>, vector<8x256xf32> -> vector<8x256xf32>
    %c0_3 = arith.constant 0 : index
    %c0_4 = arith.constant 0 : index
    %3 = vector.load %arg4[%c0_3, %c0_4] : memref<8x1xf32, #tpu.memory_space<vmem>>, vector<8x1xf32>
    %4 = vector.broadcast %3 : vector<8x1xf32> to vector<8x256xf32>
    %5 = arith.addf %2, %4 : vector<8x256xf32>
    %cst_5 = arith.constant 0.000000e+00 : f32
    %6 = vector.broadcast %cst_5 : f32 to vector<8x256xf32>
    %7 = arith.subf %6, %5 : vector<8x256xf32>
    %8 = math.exp %7 : vector<8x256xf32>
    %cst_6 = arith.constant 1.000000e+00 : f32
    %9 = vector.broadcast %cst_6 : f32 to vector<8x256xf32>
    %10 = arith.addf %9, %8 : vector<8x256xf32>
    %11 = tpu.reciprocal %10 {approx = true} : vector<8x256xf32> -> vector<8x256xf32>
    %12 = arith.mulf %5, %11 : vector<8x256xf32>
    %cst_7 = arith.constant 0.000000e+00 : f32
    %13 = vector.broadcast %cst_7 : f32 to vector<8x256xf32>
    %c17_i32 = arith.constant 17 : i32
    %14 = tpu.dynamic_rotate %12 by %c17_i32 dim 1 : vector<8x256xf32>, i32 -> vector<8x256xf32>
    %c0_8 = arith.constant 0 : index
    %c0_9 = arith.constant 0 : index
    %c0_10 = arith.constant 0 : index
    %15 = vector.load %arg2[%c0_8, %c0_9, %c0_10] : memref<9x1x256xf32, #tpu.memory_space<vmem>>, vector<1x1x256xf32>
    %16 = vector.shape_cast %15 : vector<1x1x256xf32> to vector<1x256xf32>
    %17 = vector.broadcast %16 : vector<1x256xf32> to vector<8x256xf32>
    %18 = arith.mulf %14, %17 : vector<8x256xf32>
    %19 = arith.truncf %18 : vector<8x256xf32> to vector<8x256xbf16>
    %c0_11 = arith.constant 0 : index
    %c0_12 = arith.constant 0 : index
    %c0_13 = arith.constant 0 : index
    %20 = vector.load %arg5[%c0_11, %c0_12, %c0_13] : memref<9x8x8xbf16, #tpu.memory_space<vmem>>, vector<1x8x8xbf16>
    %21 = vector.shape_cast %20 : vector<1x8x8xbf16> to vector<8x8xbf16>
    %cst_14 = arith.constant dense<0.000000e+00> : vector<8x256xf32>
    %22 = tpu.matmul %21, %19, %cst_14 {dimension_numbers = #tpu.dot_dimension_numbers<[1], [0], [0], [1], [0, 0, 1, 1], [], []>} : vector<8x8xbf16>, vector<8x256xbf16>, vector<8x256xf32> -> vector<8x256xf32>
    %23 = arith.addf %13, %22 : vector<8x256xf32>
    %c16_i32 = arith.constant 16 : i32
    %24 = tpu.dynamic_rotate %12 by %c16_i32 dim 1 : vector<8x256xf32>, i32 -> vector<8x256xf32>
    %c1 = arith.constant 1 : index
    %c0_15 = arith.constant 0 : index
    %c0_16 = arith.constant 0 : index
    %25 = vector.load %arg2[%c1, %c0_15, %c0_16] : memref<9x1x256xf32, #tpu.memory_space<vmem>>, vector<1x1x256xf32>
    %26 = vector.shape_cast %25 : vector<1x1x256xf32> to vector<1x256xf32>
    %27 = vector.broadcast %26 : vector<1x256xf32> to vector<8x256xf32>
    %28 = arith.mulf %24, %27 : vector<8x256xf32>
    %29 = arith.truncf %28 : vector<8x256xf32> to vector<8x256xbf16>
    %c1_17 = arith.constant 1 : index
    %c0_18 = arith.constant 0 : index
    %c0_19 = arith.constant 0 : index
    %30 = vector.load %arg5[%c1_17, %c0_18, %c0_19] : memref<9x8x8xbf16, #tpu.memory_space<vmem>>, vector<1x8x8xbf16>
    %31 = vector.shape_cast %30 : vector<1x8x8xbf16> to vector<8x8xbf16>
    %cst_20 = arith.constant dense<0.000000e+00> : vector<8x256xf32>
    %32 = tpu.matmul %31, %29, %cst_20 {dimension_numbers = #tpu.dot_dimension_numbers<[1], [0], [0], [1], [0, 0, 1, 1], [], []>} : vector<8x8xbf16>, vector<8x256xbf16>, vector<8x256xf32> -> vector<8x256xf32>
    %33 = arith.addf %23, %32 : vector<8x256xf32>
    %c15_i32 = arith.constant 15 : i32
    %34 = tpu.dynamic_rotate %12 by %c15_i32 dim 1 : vector<8x256xf32>, i32 -> vector<8x256xf32>
    %c2 = arith.constant 2 : index
    %c0_21 = arith.constant 0 : index
    %c0_22 = arith.constant 0 : index
    %35 = vector.load %arg2[%c2, %c0_21, %c0_22] : memref<9x1x256xf32, #tpu.memory_space<vmem>>, vector<1x1x256xf32>
    %36 = vector.shape_cast %35 : vector<1x1x256xf32> to vector<1x256xf32>
    %37 = vector.broadcast %36 : vector<1x256xf32> to vector<8x256xf32>
    %38 = arith.mulf %34, %37 : vector<8x256xf32>
    %39 = arith.truncf %38 : vector<8x256xf32> to vector<8x256xbf16>
    %c2_23 = arith.constant 2 : index
    %c0_24 = arith.constant 0 : index
    %c0_25 = arith.constant 0 : index
    %40 = vector.load %arg5[%c2_23, %c0_24, %c0_25] : memref<9x8x8xbf16, #tpu.memory_space<vmem>>, vector<1x8x8xbf16>
    %41 = vector.shape_cast %40 : vector<1x8x8xbf16> to vector<8x8xbf16>
    %cst_26 = arith.constant dense<0.000000e+00> : vector<8x256xf32>
    %42 = tpu.matmul %41, %39, %cst_26 {dimension_numbers = #tpu.dot_dimension_numbers<[1], [0], [0], [1], [0, 0, 1, 1], [], []>} : vector<8x8xbf16>, vector<8x256xbf16>, vector<8x256xf32> -> vector<8x256xf32>
    %43 = arith.addf %33, %42 : vector<8x256xf32>
    %c1_i32 = arith.constant 1 : i32
    %44 = tpu.dynamic_rotate %12 by %c1_i32 dim 1 : vector<8x256xf32>, i32 -> vector<8x256xf32>
    %c3 = arith.constant 3 : index
    %c0_27 = arith.constant 0 : index
    %c0_28 = arith.constant 0 : index
    %45 = vector.load %arg2[%c3, %c0_27, %c0_28] : memref<9x1x256xf32, #tpu.memory_space<vmem>>, vector<1x1x256xf32>
    %46 = vector.shape_cast %45 : vector<1x1x256xf32> to vector<1x256xf32>
    %47 = vector.broadcast %46 : vector<1x256xf32> to vector<8x256xf32>
    %48 = arith.mulf %44, %47 : vector<8x256xf32>
    %49 = arith.truncf %48 : vector<8x256xf32> to vector<8x256xbf16>
    %c3_29 = arith.constant 3 : index
    %c0_30 = arith.constant 0 : index
    %c0_31 = arith.constant 0 : index
    %50 = vector.load %arg5[%c3_29, %c0_30, %c0_31] : memref<9x8x8xbf16, #tpu.memory_space<vmem>>, vector<1x8x8xbf16>
    %51 = vector.shape_cast %50 : vector<1x8x8xbf16> to vector<8x8xbf16>
    %cst_32 = arith.constant dense<0.000000e+00> : vector<8x256xf32>
    %52 = tpu.matmul %51, %49, %cst_32 {dimension_numbers = #tpu.dot_dimension_numbers<[1], [0], [0], [1], [0, 0, 1, 1], [], []>} : vector<8x8xbf16>, vector<8x256xbf16>, vector<8x256xf32> -> vector<8x256xf32>
    %53 = arith.addf %43, %52 : vector<8x256xf32>
    %c4 = arith.constant 4 : index
    %c0_33 = arith.constant 0 : index
    %c0_34 = arith.constant 0 : index
    %54 = vector.load %arg2[%c4, %c0_33, %c0_34] : memref<9x1x256xf32, #tpu.memory_space<vmem>>, vector<1x1x256xf32>
    %55 = vector.shape_cast %54 : vector<1x1x256xf32> to vector<1x256xf32>
    %56 = vector.broadcast %55 : vector<1x256xf32> to vector<8x256xf32>
    %57 = arith.mulf %12, %56 : vector<8x256xf32>
    %58 = arith.truncf %57 : vector<8x256xf32> to vector<8x256xbf16>
    %c4_35 = arith.constant 4 : index
    %c0_36 = arith.constant 0 : index
    %c0_37 = arith.constant 0 : index
    %59 = vector.load %arg5[%c4_35, %c0_36, %c0_37] : memref<9x8x8xbf16, #tpu.memory_space<vmem>>, vector<1x8x8xbf16>
    %60 = vector.shape_cast %59 : vector<1x8x8xbf16> to vector<8x8xbf16>
    %cst_38 = arith.constant dense<0.000000e+00> : vector<8x256xf32>
    %61 = tpu.matmul %60, %58, %cst_38 {dimension_numbers = #tpu.dot_dimension_numbers<[1], [0], [0], [1], [0, 0, 1, 1], [], []>} : vector<8x8xbf16>, vector<8x256xbf16>, vector<8x256xf32> -> vector<8x256xf32>
    %62 = arith.addf %53, %61 : vector<8x256xf32>
    %c255_i32 = arith.constant 255 : i32
    %63 = tpu.dynamic_rotate %12 by %c255_i32 dim 1 : vector<8x256xf32>, i32 -> vector<8x256xf32>
    %c5 = arith.constant 5 : index
    %c0_39 = arith.constant 0 : index
    %c0_40 = arith.constant 0 : index
    %64 = vector.load %arg2[%c5, %c0_39, %c0_40] : memref<9x1x256xf32, #tpu.memory_space<vmem>>, vector<1x1x256xf32>
    %65 = vector.shape_cast %64 : vector<1x1x256xf32> to vector<1x256xf32>
    %66 = vector.broadcast %65 : vector<1x256xf32> to vector<8x256xf32>
    %67 = arith.mulf %63, %66 : vector<8x256xf32>
    %68 = arith.truncf %67 : vector<8x256xf32> to vector<8x256xbf16>
    %c5_41 = arith.constant 5 : index
    %c0_42 = arith.constant 0 : index
    %c0_43 = arith.constant 0 : index
    %69 = vector.load %arg5[%c5_41, %c0_42, %c0_43] : memref<9x8x8xbf16, #tpu.memory_space<vmem>>, vector<1x8x8xbf16>
    %70 = vector.shape_cast %69 : vector<1x8x8xbf16> to vector<8x8xbf16>
    %cst_44 = arith.constant dense<0.000000e+00> : vector<8x256xf32>
    %71 = tpu.matmul %70, %68, %cst_44 {dimension_numbers = #tpu.dot_dimension_numbers<[1], [0], [0], [1], [0, 0, 1, 1], [], []>} : vector<8x8xbf16>, vector<8x256xbf16>, vector<8x256xf32> -> vector<8x256xf32>
    %72 = arith.addf %62, %71 : vector<8x256xf32>
    %c241_i32 = arith.constant 241 : i32
    %73 = tpu.dynamic_rotate %12 by %c241_i32 dim 1 : vector<8x256xf32>, i32 -> vector<8x256xf32>
    %c6 = arith.constant 6 : index
    %c0_45 = arith.constant 0 : index
    %c0_46 = arith.constant 0 : index
    %74 = vector.load %arg2[%c6, %c0_45, %c0_46] : memref<9x1x256xf32, #tpu.memory_space<vmem>>, vector<1x1x256xf32>
    %75 = vector.shape_cast %74 : vector<1x1x256xf32> to vector<1x256xf32>
    %76 = vector.broadcast %75 : vector<1x256xf32> to vector<8x256xf32>
    %77 = arith.mulf %73, %76 : vector<8x256xf32>
    %78 = arith.truncf %77 : vector<8x256xf32> to vector<8x256xbf16>
    %c6_47 = arith.constant 6 : index
    %c0_48 = arith.constant 0 : index
    %c0_49 = arith.constant 0 : index
    %79 = vector.load %arg5[%c6_47, %c0_48, %c0_49] : memref<9x8x8xbf16, #tpu.memory_space<vmem>>, vector<1x8x8xbf16>
    %80 = vector.shape_cast %79 : vector<1x8x8xbf16> to vector<8x8xbf16>
    %cst_50 = arith.constant dense<0.000000e+00> : vector<8x256xf32>
    %81 = tpu.matmul %80, %78, %cst_50 {dimension_numbers = #tpu.dot_dimension_numbers<[1], [0], [0], [1], [0, 0, 1, 1], [], []>} : vector<8x8xbf16>, vector<8x256xbf16>, vector<8x256xf32> -> vector<8x256xf32>
    %82 = arith.addf %72, %81 : vector<8x256xf32>
    %c240_i32 = arith.constant 240 : i32
    %83 = tpu.dynamic_rotate %12 by %c240_i32 dim 1 : vector<8x256xf32>, i32 -> vector<8x256xf32>
    %c7 = arith.constant 7 : index
    %c0_51 = arith.constant 0 : index
    %c0_52 = arith.constant 0 : index
    %84 = vector.load %arg2[%c7, %c0_51, %c0_52] : memref<9x1x256xf32, #tpu.memory_space<vmem>>, vector<1x1x256xf32>
    %85 = vector.shape_cast %84 : vector<1x1x256xf32> to vector<1x256xf32>
    %86 = vector.broadcast %85 : vector<1x256xf32> to vector<8x256xf32>
    %87 = arith.mulf %83, %86 : vector<8x256xf32>
    %88 = arith.truncf %87 : vector<8x256xf32> to vector<8x256xbf16>
    %c7_53 = arith.constant 7 : index
    %c0_54 = arith.constant 0 : index
    %c0_55 = arith.constant 0 : index
    %89 = vector.load %arg5[%c7_53, %c0_54, %c0_55] : memref<9x8x8xbf16, #tpu.memory_space<vmem>>, vector<1x8x8xbf16>
    %90 = vector.shape_cast %89 : vector<1x8x8xbf16> to vector<8x8xbf16>
    %cst_56 = arith.constant dense<0.000000e+00> : vector<8x256xf32>
    %91 = tpu.matmul %90, %88, %cst_56 {dimension_numbers = #tpu.dot_dimension_numbers<[1], [0], [0], [1], [0, 0, 1, 1], [], []>} : vector<8x8xbf16>, vector<8x256xbf16>, vector<8x256xf32> -> vector<8x256xf32>
    %92 = arith.addf %82, %91 : vector<8x256xf32>
    %c239_i32 = arith.constant 239 : i32
    %93 = tpu.dynamic_rotate %12 by %c239_i32 dim 1 : vector<8x256xf32>, i32 -> vector<8x256xf32>
    %c8 = arith.constant 8 : index
    %c0_57 = arith.constant 0 : index
    %c0_58 = arith.constant 0 : index
    %94 = vector.load %arg2[%c8, %c0_57, %c0_58] : memref<9x1x256xf32, #tpu.memory_space<vmem>>, vector<1x1x256xf32>
    %95 = vector.shape_cast %94 : vector<1x1x256xf32> to vector<1x256xf32>
    %96 = vector.broadcast %95 : vector<1x256xf32> to vector<8x256xf32>
    %97 = arith.mulf %93, %96 : vector<8x256xf32>
    %98 = arith.truncf %97 : vector<8x256xf32> to vector<8x256xbf16>
    %c8_59 = arith.constant 8 : index
    %c0_60 = arith.constant 0 : index
    %c0_61 = arith.constant 0 : index
    %99 = vector.load %arg5[%c8_59, %c0_60, %c0_61] : memref<9x8x8xbf16, #tpu.memory_space<vmem>>, vector<1x8x8xbf16>
    %100 = vector.shape_cast %99 : vector<1x8x8xbf16> to vector<8x8xbf16>
    %cst_62 = arith.constant dense<0.000000e+00> : vector<8x256xf32>
    %101 = tpu.matmul %100, %98, %cst_62 {dimension_numbers = #tpu.dot_dimension_numbers<[1], [0], [0], [1], [0, 0, 1, 1], [], []>} : vector<8x8xbf16>, vector<8x256xbf16>, vector<8x256xf32> -> vector<8x256xf32>
    %102 = arith.addf %92, %101 : vector<8x256xf32>
    %c0_63 = arith.constant 0 : index
    %c0_64 = arith.constant 0 : index
    %103 = vector.load %arg6[%c0_63, %c0_64] : memref<8x1xf32, #tpu.memory_space<vmem>>, vector<8x1xf32>
    %104 = vector.broadcast %103 : vector<8x1xf32> to vector<8x256xf32>
    %105 = arith.addf %102, %104 : vector<8x256xf32>
    %cst_65 = arith.constant 0.000000e+00 : f32
    %106 = vector.broadcast %cst_65 : f32 to vector<8x256xf32>
    %107 = arith.subf %106, %105 : vector<8x256xf32>
    %108 = math.exp %107 : vector<8x256xf32>
    %cst_66 = arith.constant 1.000000e+00 : f32
    %109 = vector.broadcast %cst_66 : f32 to vector<8x256xf32>
    %110 = arith.addf %109, %108 : vector<8x256xf32>
    %111 = tpu.reciprocal %110 {approx = true} : vector<8x256xf32> -> vector<8x256xf32>
    %112 = arith.mulf %105, %111 : vector<8x256xf32>
    %cst_67 = arith.constant 0.000000e+00 : f32
    %113 = vector.broadcast %cst_67 : f32 to vector<8x256xf32>
    %c17_i32_68 = arith.constant 17 : i32
    %114 = tpu.dynamic_rotate %112 by %c17_i32_68 dim 1 : vector<8x256xf32>, i32 -> vector<8x256xf32>
    %c0_69 = arith.constant 0 : index
    %c0_70 = arith.constant 0 : index
    %c0_71 = arith.constant 0 : index
    %115 = vector.load %arg2[%c0_69, %c0_70, %c0_71] : memref<9x1x256xf32, #tpu.memory_space<vmem>>, vector<1x1x256xf32>
    %116 = vector.shape_cast %115 : vector<1x1x256xf32> to vector<1x256xf32>
    %117 = vector.broadcast %116 : vector<1x256xf32> to vector<8x256xf32>
    %118 = arith.mulf %114, %117 : vector<8x256xf32>
    %119 = arith.truncf %118 : vector<8x256xf32> to vector<8x256xbf16>
    %c0_72 = arith.constant 0 : index
    %c0_73 = arith.constant 0 : index
    %c0_74 = arith.constant 0 : index
    %120 = vector.load %arg7[%c0_72, %c0_73, %c0_74] : memref<9x8x8xbf16, #tpu.memory_space<vmem>>, vector<1x8x8xbf16>
    %121 = vector.shape_cast %120 : vector<1x8x8xbf16> to vector<8x8xbf16>
    %cst_75 = arith.constant dense<0.000000e+00> : vector<8x256xf32>
    %122 = tpu.matmul %121, %119, %cst_75 {dimension_numbers = #tpu.dot_dimension_numbers<[1], [0], [0], [1], [0, 0, 1, 1], [], []>} : vector<8x8xbf16>, vector<8x256xbf16>, vector<8x256xf32> -> vector<8x256xf32>
    %123 = arith.addf %113, %122 : vector<8x256xf32>
    %c16_i32_76 = arith.constant 16 : i32
    %124 = tpu.dynamic_rotate %112 by %c16_i32_76 dim 1 : vector<8x256xf32>, i32 -> vector<8x256xf32>
    %c1_77 = arith.constant 1 : index
    %c0_78 = arith.constant 0 : index
    %c0_79 = arith.constant 0 : index
    %125 = vector.load %arg2[%c1_77, %c0_78, %c0_79] : memref<9x1x256xf32, #tpu.memory_space<vmem>>, vector<1x1x256xf32>
    %126 = vector.shape_cast %125 : vector<1x1x256xf32> to vector<1x256xf32>
    %127 = vector.broadcast %126 : vector<1x256xf32> to vector<8x256xf32>
    %128 = arith.mulf %124, %127 : vector<8x256xf32>
    %129 = arith.truncf %128 : vector<8x256xf32> to vector<8x256xbf16>
    %c1_80 = arith.constant 1 : index
    %c0_81 = arith.constant 0 : index
    %c0_82 = arith.constant 0 : index
    %130 = vector.load %arg7[%c1_80, %c0_81, %c0_82] : memref<9x8x8xbf16, #tpu.memory_space<vmem>>, vector<1x8x8xbf16>
    %131 = vector.shape_cast %130 : vector<1x8x8xbf16> to vector<8x8xbf16>
    %cst_83 = arith.constant dense<0.000000e+00> : vector<8x256xf32>
    %132 = tpu.matmul %131, %129, %cst_83 {dimension_numbers = #tpu.dot_dimension_numbers<[1], [0], [0], [1], [0, 0, 1, 1], [], []>} : vector<8x8xbf16>, vector<8x256xbf16>, vector<8x256xf32> -> vector<8x256xf32>
    %133 = arith.addf %123, %132 : vector<8x256xf32>
    %c15_i32_84 = arith.constant 15 : i32
    %134 = tpu.dynamic_rotate %112 by %c15_i32_84 dim 1 : vector<8x256xf32>, i32 -> vector<8x256xf32>
    %c2_85 = arith.constant 2 : index
    %c0_86 = arith.constant 0 : index
    %c0_87 = arith.constant 0 : index
    %135 = vector.load %arg2[%c2_85, %c0_86, %c0_87] : memref<9x1x256xf32, #tpu.memory_space<vmem>>, vector<1x1x256xf32>
    %136 = vector.shape_cast %135 : vector<1x1x256xf32> to vector<1x256xf32>
    %137 = vector.broadcast %136 : vector<1x256xf32> to vector<8x256xf32>
    %138 = arith.mulf %134, %137 : vector<8x256xf32>
    %139 = arith.truncf %138 : vector<8x256xf32> to vector<8x256xbf16>
    %c2_88 = arith.constant 2 : index
    %c0_89 = arith.constant 0 : index
    %c0_90 = arith.constant 0 : index
    %140 = vector.load %arg7[%c2_88, %c0_89, %c0_90] : memref<9x8x8xbf16, #tpu.memory_space<vmem>>, vector<1x8x8xbf16>
    %141 = vector.shape_cast %140 : vector<1x8x8xbf16> to vector<8x8xbf16>
    %cst_91 = arith.constant dense<0.000000e+00> : vector<8x256xf32>
    %142 = tpu.matmul %141, %139, %cst_91 {dimension_numbers = #tpu.dot_dimension_numbers<[1], [0], [0], [1], [0, 0, 1, 1], [], []>} : vector<8x8xbf16>, vector<8x256xbf16>, vector<8x256xf32> -> vector<8x256xf32>
    %143 = arith.addf %133, %142 : vector<8x256xf32>
    %c1_i32_92 = arith.constant 1 : i32
    %144 = tpu.dynamic_rotate %112 by %c1_i32_92 dim 1 : vector<8x256xf32>, i32 -> vector<8x256xf32>
    %c3_93 = arith.constant 3 : index
    %c0_94 = arith.constant 0 : index
    %c0_95 = arith.constant 0 : index
    %145 = vector.load %arg2[%c3_93, %c0_94, %c0_95] : memref<9x1x256xf32, #tpu.memory_space<vmem>>, vector<1x1x256xf32>
    %146 = vector.shape_cast %145 : vector<1x1x256xf32> to vector<1x256xf32>
    %147 = vector.broadcast %146 : vector<1x256xf32> to vector<8x256xf32>
    %148 = arith.mulf %144, %147 : vector<8x256xf32>
    %149 = arith.truncf %148 : vector<8x256xf32> to vector<8x256xbf16>
    %c3_96 = arith.constant 3 : index
    %c0_97 = arith.constant 0 : index
    %c0_98 = arith.constant 0 : index
    %150 = vector.load %arg7[%c3_96, %c0_97, %c0_98] : memref<9x8x8xbf16, #tpu.memory_space<vmem>>, vector<1x8x8xbf16>
    %151 = vector.shape_cast %150 : vector<1x8x8xbf16> to vector<8x8xbf16>
    %cst_99 = arith.constant dense<0.000000e+00> : vector<8x256xf32>
    %152 = tpu.matmul %151, %149, %cst_99 {dimension_numbers = #tpu.dot_dimension_numbers<[1], [0], [0], [1], [0, 0, 1, 1], [], []>} : vector<8x8xbf16>, vector<8x256xbf16>, vector<8x256xf32> -> vector<8x256xf32>
    %153 = arith.addf %143, %152 : vector<8x256xf32>
    %c4_100 = arith.constant 4 : index
    %c0_101 = arith.constant 0 : index
    %c0_102 = arith.constant 0 : index
    %154 = vector.load %arg2[%c4_100, %c0_101, %c0_102] : memref<9x1x256xf32, #tpu.memory_space<vmem>>, vector<1x1x256xf32>
    %155 = vector.shape_cast %154 : vector<1x1x256xf32> to vector<1x256xf32>
    %156 = vector.broadcast %155 : vector<1x256xf32> to vector<8x256xf32>
    %157 = arith.mulf %112, %156 : vector<8x256xf32>
    %158 = arith.truncf %157 : vector<8x256xf32> to vector<8x256xbf16>
    %c4_103 = arith.constant 4 : index
    %c0_104 = arith.constant 0 : index
    %c0_105 = arith.constant 0 : index
    %159 = vector.load %arg7[%c4_103, %c0_104, %c0_105] : memref<9x8x8xbf16, #tpu.memory_space<vmem>>, vector<1x8x8xbf16>
    %160 = vector.shape_cast %159 : vector<1x8x8xbf16> to vector<8x8xbf16>
    %cst_106 = arith.constant dense<0.000000e+00> : vector<8x256xf32>
    %161 = tpu.matmul %160, %158, %cst_106 {dimension_numbers = #tpu.dot_dimension_numbers<[1], [0], [0], [1], [0, 0, 1, 1], [], []>} : vector<8x8xbf16>, vector<8x256xbf16>, vector<8x256xf32> -> vector<8x256xf32>
    %162 = arith.addf %153, %161 : vector<8x256xf32>
    %c255_i32_107 = arith.constant 255 : i32
    %163 = tpu.dynamic_rotate %112 by %c255_i32_107 dim 1 : vector<8x256xf32>, i32 -> vector<8x256xf32>
    %c5_108 = arith.constant 5 : index
    %c0_109 = arith.constant 0 : index
    %c0_110 = arith.constant 0 : index
    %164 = vector.load %arg2[%c5_108, %c0_109, %c0_110] : memref<9x1x256xf32, #tpu.memory_space<vmem>>, vector<1x1x256xf32>
    %165 = vector.shape_cast %164 : vector<1x1x256xf32> to vector<1x256xf32>
    %166 = vector.broadcast %165 : vector<1x256xf32> to vector<8x256xf32>
    %167 = arith.mulf %163, %166 : vector<8x256xf32>
    %168 = arith.truncf %167 : vector<8x256xf32> to vector<8x256xbf16>
    %c5_111 = arith.constant 5 : index
    %c0_112 = arith.constant 0 : index
    %c0_113 = arith.constant 0 : index
    %169 = vector.load %arg7[%c5_111, %c0_112, %c0_113] : memref<9x8x8xbf16, #tpu.memory_space<vmem>>, vector<1x8x8xbf16>
    %170 = vector.shape_cast %169 : vector<1x8x8xbf16> to vector<8x8xbf16>
    %cst_114 = arith.constant dense<0.000000e+00> : vector<8x256xf32>
    %171 = tpu.matmul %170, %168, %cst_114 {dimension_numbers = #tpu.dot_dimension_numbers<[1], [0], [0], [1], [0, 0, 1, 1], [], []>} : vector<8x8xbf16>, vector<8x256xbf16>, vector<8x256xf32> -> vector<8x256xf32>
    %172 = arith.addf %162, %171 : vector<8x256xf32>
    %c241_i32_115 = arith.constant 241 : i32
    %173 = tpu.dynamic_rotate %112 by %c241_i32_115 dim 1 : vector<8x256xf32>, i32 -> vector<8x256xf32>
    %c6_116 = arith.constant 6 : index
    %c0_117 = arith.constant 0 : index
    %c0_118 = arith.constant 0 : index
    %174 = vector.load %arg2[%c6_116, %c0_117, %c0_118] : memref<9x1x256xf32, #tpu.memory_space<vmem>>, vector<1x1x256xf32>
    %175 = vector.shape_cast %174 : vector<1x1x256xf32> to vector<1x256xf32>
    %176 = vector.broadcast %175 : vector<1x256xf32> to vector<8x256xf32>
    %177 = arith.mulf %173, %176 : vector<8x256xf32>
    %178 = arith.truncf %177 : vector<8x256xf32> to vector<8x256xbf16>
    %c6_119 = arith.constant 6 : index
    %c0_120 = arith.constant 0 : index
    %c0_121 = arith.constant 0 : index
    %179 = vector.load %arg7[%c6_119, %c0_120, %c0_121] : memref<9x8x8xbf16, #tpu.memory_space<vmem>>, vector<1x8x8xbf16>
    %180 = vector.shape_cast %179 : vector<1x8x8xbf16> to vector<8x8xbf16>
    %cst_122 = arith.constant dense<0.000000e+00> : vector<8x256xf32>
    %181 = tpu.matmul %180, %178, %cst_122 {dimension_numbers = #tpu.dot_dimension_numbers<[1], [0], [0], [1], [0, 0, 1, 1], [], []>} : vector<8x8xbf16>, vector<8x256xbf16>, vector<8x256xf32> -> vector<8x256xf32>
    %182 = arith.addf %172, %181 : vector<8x256xf32>
    %c240_i32_123 = arith.constant 240 : i32
    %183 = tpu.dynamic_rotate %112 by %c240_i32_123 dim 1 : vector<8x256xf32>, i32 -> vector<8x256xf32>
    %c7_124 = arith.constant 7 : index
    %c0_125 = arith.constant 0 : index
    %c0_126 = arith.constant 0 : index
    %184 = vector.load %arg2[%c7_124, %c0_125, %c0_126] : memref<9x1x256xf32, #tpu.memory_space<vmem>>, vector<1x1x256xf32>
    %185 = vector.shape_cast %184 : vector<1x1x256xf32> to vector<1x256xf32>
    %186 = vector.broadcast %185 : vector<1x256xf32> to vector<8x256xf32>
    %187 = arith.mulf %183, %186 : vector<8x256xf32>
    %188 = arith.truncf %187 : vector<8x256xf32> to vector<8x256xbf16>
    %c7_127 = arith.constant 7 : index
    %c0_128 = arith.constant 0 : index
    %c0_129 = arith.constant 0 : index
    %189 = vector.load %arg7[%c7_127, %c0_128, %c0_129] : memref<9x8x8xbf16, #tpu.memory_space<vmem>>, vector<1x8x8xbf16>
    %190 = vector.shape_cast %189 : vector<1x8x8xbf16> to vector<8x8xbf16>
    %cst_130 = arith.constant dense<0.000000e+00> : vector<8x256xf32>
    %191 = tpu.matmul %190, %188, %cst_130 {dimension_numbers = #tpu.dot_dimension_numbers<[1], [0], [0], [1], [0, 0, 1, 1], [], []>} : vector<8x8xbf16>, vector<8x256xbf16>, vector<8x256xf32> -> vector<8x256xf32>
    %192 = arith.addf %182, %191 : vector<8x256xf32>
    %c239_i32_131 = arith.constant 239 : i32
    %193 = tpu.dynamic_rotate %112 by %c239_i32_131 dim 1 : vector<8x256xf32>, i32 -> vector<8x256xf32>
    %c8_132 = arith.constant 8 : index
    %c0_133 = arith.constant 0 : index
    %c0_134 = arith.constant 0 : index
    %194 = vector.load %arg2[%c8_132, %c0_133, %c0_134] : memref<9x1x256xf32, #tpu.memory_space<vmem>>, vector<1x1x256xf32>
    %195 = vector.shape_cast %194 : vector<1x1x256xf32> to vector<1x256xf32>
    %196 = vector.broadcast %195 : vector<1x256xf32> to vector<8x256xf32>
    %197 = arith.mulf %193, %196 : vector<8x256xf32>
    %198 = arith.truncf %197 : vector<8x256xf32> to vector<8x256xbf16>
    %c8_135 = arith.constant 8 : index
    %c0_136 = arith.constant 0 : index
    %c0_137 = arith.constant 0 : index
    %199 = vector.load %arg7[%c8_135, %c0_136, %c0_137] : memref<9x8x8xbf16, #tpu.memory_space<vmem>>, vector<1x8x8xbf16>
    %200 = vector.shape_cast %199 : vector<1x8x8xbf16> to vector<8x8xbf16>
    %cst_138 = arith.constant dense<0.000000e+00> : vector<8x256xf32>
    %201 = tpu.matmul %200, %198, %cst_138 {dimension_numbers = #tpu.dot_dimension_numbers<[1], [0], [0], [1], [0, 0, 1, 1], [], []>} : vector<8x8xbf16>, vector<8x256xbf16>, vector<8x256xf32> -> vector<8x256xf32>
    %202 = arith.addf %192, %201 : vector<8x256xf32>
    %c0_139 = arith.constant 0 : index
    %c0_140 = arith.constant 0 : index
    %203 = vector.load %arg8[%c0_139, %c0_140] : memref<8x1xf32, #tpu.memory_space<vmem>>, vector<8x1xf32>
    %204 = vector.broadcast %203 : vector<8x1xf32> to vector<8x256xf32>
    %205 = arith.addf %202, %204 : vector<8x256xf32>
    %cst_141 = arith.constant 0.000000e+00 : f32
    %206 = vector.broadcast %cst_141 : f32 to vector<8x256xf32>
    %207 = arith.subf %206, %205 : vector<8x256xf32>
    %208 = math.exp %207 : vector<8x256xf32>
    %cst_142 = arith.constant 1.000000e+00 : f32
    %209 = vector.broadcast %cst_142 : f32 to vector<8x256xf32>
    %210 = arith.addf %209, %208 : vector<8x256xf32>
    %211 = tpu.reciprocal %210 {approx = true} : vector<8x256xf32> -> vector<8x256xf32>
    %212 = arith.mulf %205, %211 : vector<8x256xf32>
    %213 = arith.addf %12, %212 : vector<8x256xf32>
    %cst_143 = arith.constant 0.000000e+00 : f32
    %214 = vector.broadcast %cst_143 : f32 to vector<8x256xf32>
    %c17_i32_144 = arith.constant 17 : i32
    %215 = tpu.dynamic_rotate %213 by %c17_i32_144 dim 1 : vector<8x256xf32>, i32 -> vector<8x256xf32>
    %c0_145 = arith.constant 0 : index
    %c0_146 = arith.constant 0 : index
    %c0_147 = arith.constant 0 : index
    %216 = vector.load %arg2[%c0_145, %c0_146, %c0_147] : memref<9x1x256xf32, #tpu.memory_space<vmem>>, vector<1x1x256xf32>
    %217 = vector.shape_cast %216 : vector<1x1x256xf32> to vector<1x256xf32>
    %218 = vector.broadcast %217 : vector<1x256xf32> to vector<8x256xf32>
    %219 = arith.mulf %215, %218 : vector<8x256xf32>
    %220 = arith.truncf %219 : vector<8x256xf32> to vector<8x256xbf16>
    %c0_148 = arith.constant 0 : index
    %c0_149 = arith.constant 0 : index
    %c0_150 = arith.constant 0 : index
    %221 = vector.load %arg9[%c0_148, %c0_149, %c0_150] : memref<9x8x8xbf16, #tpu.memory_space<vmem>>, vector<1x8x8xbf16>
    %222 = vector.shape_cast %221 : vector<1x8x8xbf16> to vector<8x8xbf16>
    %cst_151 = arith.constant dense<0.000000e+00> : vector<8x256xf32>
    %223 = tpu.matmul %222, %220, %cst_151 {dimension_numbers = #tpu.dot_dimension_numbers<[1], [0], [0], [1], [0, 0, 1, 1], [], []>} : vector<8x8xbf16>, vector<8x256xbf16>, vector<8x256xf32> -> vector<8x256xf32>
    %224 = arith.addf %214, %223 : vector<8x256xf32>
    %c16_i32_152 = arith.constant 16 : i32
    %225 = tpu.dynamic_rotate %213 by %c16_i32_152 dim 1 : vector<8x256xf32>, i32 -> vector<8x256xf32>
    %c1_153 = arith.constant 1 : index
    %c0_154 = arith.constant 0 : index
    %c0_155 = arith.constant 0 : index
    %226 = vector.load %arg2[%c1_153, %c0_154, %c0_155] : memref<9x1x256xf32, #tpu.memory_space<vmem>>, vector<1x1x256xf32>
    %227 = vector.shape_cast %226 : vector<1x1x256xf32> to vector<1x256xf32>
    %228 = vector.broadcast %227 : vector<1x256xf32> to vector<8x256xf32>
    %229 = arith.mulf %225, %228 : vector<8x256xf32>
    %230 = arith.truncf %229 : vector<8x256xf32> to vector<8x256xbf16>
    %c1_156 = arith.constant 1 : index
    %c0_157 = arith.constant 0 : index
    %c0_158 = arith.constant 0 : index
    %231 = vector.load %arg9[%c1_156, %c0_157, %c0_158] : memref<9x8x8xbf16, #tpu.memory_space<vmem>>, vector<1x8x8xbf16>
    %232 = vector.shape_cast %231 : vector<1x8x8xbf16> to vector<8x8xbf16>
    %cst_159 = arith.constant dense<0.000000e+00> : vector<8x256xf32>
    %233 = tpu.matmul %232, %230, %cst_159 {dimension_numbers = #tpu.dot_dimension_numbers<[1], [0], [0], [1], [0, 0, 1, 1], [], []>} : vector<8x8xbf16>, vector<8x256xbf16>, vector<8x256xf32> -> vector<8x256xf32>
    %234 = arith.addf %224, %233 : vector<8x256xf32>
    %c15_i32_160 = arith.constant 15 : i32
    %235 = tpu.dynamic_rotate %213 by %c15_i32_160 dim 1 : vector<8x256xf32>, i32 -> vector<8x256xf32>
    %c2_161 = arith.constant 2 : index
    %c0_162 = arith.constant 0 : index
    %c0_163 = arith.constant 0 : index
    %236 = vector.load %arg2[%c2_161, %c0_162, %c0_163] : memref<9x1x256xf32, #tpu.memory_space<vmem>>, vector<1x1x256xf32>
    %237 = vector.shape_cast %236 : vector<1x1x256xf32> to vector<1x256xf32>
    %238 = vector.broadcast %237 : vector<1x256xf32> to vector<8x256xf32>
    %239 = arith.mulf %235, %238 : vector<8x256xf32>
    %240 = arith.truncf %239 : vector<8x256xf32> to vector<8x256xbf16>
    %c2_164 = arith.constant 2 : index
    %c0_165 = arith.constant 0 : index
    %c0_166 = arith.constant 0 : index
    %241 = vector.load %arg9[%c2_164, %c0_165, %c0_166] : memref<9x8x8xbf16, #tpu.memory_space<vmem>>, vector<1x8x8xbf16>
    %242 = vector.shape_cast %241 : vector<1x8x8xbf16> to vector<8x8xbf16>
    %cst_167 = arith.constant dense<0.000000e+00> : vector<8x256xf32>
    %243 = tpu.matmul %242, %240, %cst_167 {dimension_numbers = #tpu.dot_dimension_numbers<[1], [0], [0], [1], [0, 0, 1, 1], [], []>} : vector<8x8xbf16>, vector<8x256xbf16>, vector<8x256xf32> -> vector<8x256xf32>
    %244 = arith.addf %234, %243 : vector<8x256xf32>
    %c1_i32_168 = arith.constant 1 : i32
    %245 = tpu.dynamic_rotate %213 by %c1_i32_168 dim 1 : vector<8x256xf32>, i32 -> vector<8x256xf32>
    %c3_169 = arith.constant 3 : index
    %c0_170 = arith.constant 0 : index
    %c0_171 = arith.constant 0 : index
    %246 = vector.load %arg2[%c3_169, %c0_170, %c0_171] : memref<9x1x256xf32, #tpu.memory_space<vmem>>, vector<1x1x256xf32>
    %247 = vector.shape_cast %246 : vector<1x1x256xf32> to vector<1x256xf32>
    %248 = vector.broadcast %247 : vector<1x256xf32> to vector<8x256xf32>
    %249 = arith.mulf %245, %248 : vector<8x256xf32>
    %250 = arith.truncf %249 : vector<8x256xf32> to vector<8x256xbf16>
    %c3_172 = arith.constant 3 : index
    %c0_173 = arith.constant 0 : index
    %c0_174 = arith.constant 0 : index
    %251 = vector.load %arg9[%c3_172, %c0_173, %c0_174] : memref<9x8x8xbf16, #tpu.memory_space<vmem>>, vector<1x8x8xbf16>
    %252 = vector.shape_cast %251 : vector<1x8x8xbf16> to vector<8x8xbf16>
    %cst_175 = arith.constant dense<0.000000e+00> : vector<8x256xf32>
    %253 = tpu.matmul %252, %250, %cst_175 {dimension_numbers = #tpu.dot_dimension_numbers<[1], [0], [0], [1], [0, 0, 1, 1], [], []>} : vector<8x8xbf16>, vector<8x256xbf16>, vector<8x256xf32> -> vector<8x256xf32>
    %254 = arith.addf %244, %253 : vector<8x256xf32>
    %c4_176 = arith.constant 4 : index
    %c0_177 = arith.constant 0 : index
    %c0_178 = arith.constant 0 : index
    %255 = vector.load %arg2[%c4_176, %c0_177, %c0_178] : memref<9x1x256xf32, #tpu.memory_space<vmem>>, vector<1x1x256xf32>
    %256 = vector.shape_cast %255 : vector<1x1x256xf32> to vector<1x256xf32>
    %257 = vector.broadcast %256 : vector<1x256xf32> to vector<8x256xf32>
    %258 = arith.mulf %213, %257 : vector<8x256xf32>
    %259 = arith.truncf %258 : vector<8x256xf32> to vector<8x256xbf16>
    %c4_179 = arith.constant 4 : index
    %c0_180 = arith.constant 0 : index
    %c0_181 = arith.constant 0 : index
    %260 = vector.load %arg9[%c4_179, %c0_180, %c0_181] : memref<9x8x8xbf16, #tpu.memory_space<vmem>>, vector<1x8x8xbf16>
    %261 = vector.shape_cast %260 : vector<1x8x8xbf16> to vector<8x8xbf16>
    %cst_182 = arith.constant dense<0.000000e+00> : vector<8x256xf32>
    %262 = tpu.matmul %261, %259, %cst_182 {dimension_numbers = #tpu.dot_dimension_numbers<[1], [0], [0], [1], [0, 0, 1, 1], [], []>} : vector<8x8xbf16>, vector<8x256xbf16>, vector<8x256xf32> -> vector<8x256xf32>
    %263 = arith.addf %254, %262 : vector<8x256xf32>
    %c255_i32_183 = arith.constant 255 : i32
    %264 = tpu.dynamic_rotate %213 by %c255_i32_183 dim 1 : vector<8x256xf32>, i32 -> vector<8x256xf32>
    %c5_184 = arith.constant 5 : index
    %c0_185 = arith.constant 0 : index
    %c0_186 = arith.constant 0 : index
    %265 = vector.load %arg2[%c5_184, %c0_185, %c0_186] : memref<9x1x256xf32, #tpu.memory_space<vmem>>, vector<1x1x256xf32>
    %266 = vector.shape_cast %265 : vector<1x1x256xf32> to vector<1x256xf32>
    %267 = vector.broadcast %266 : vector<1x256xf32> to vector<8x256xf32>
    %268 = arith.mulf %264, %267 : vector<8x256xf32>
    %269 = arith.truncf %268 : vector<8x256xf32> to vector<8x256xbf16>
    %c5_187 = arith.constant 5 : index
    %c0_188 = arith.constant 0 : index
    %c0_189 = arith.constant 0 : index
    %270 = vector.load %arg9[%c5_187, %c0_188, %c0_189] : memref<9x8x8xbf16, #tpu.memory_space<vmem>>, vector<1x8x8xbf16>
    %271 = vector.shape_cast %270 : vector<1x8x8xbf16> to vector<8x8xbf16>
    %cst_190 = arith.constant dense<0.000000e+00> : vector<8x256xf32>
    %272 = tpu.matmul %271, %269, %cst_190 {dimension_numbers = #tpu.dot_dimension_numbers<[1], [0], [0], [1], [0, 0, 1, 1], [], []>} : vector<8x8xbf16>, vector<8x256xbf16>, vector<8x256xf32> -> vector<8x256xf32>
    %273 = arith.addf %263, %272 : vector<8x256xf32>
    %c241_i32_191 = arith.constant 241 : i32
    %274 = tpu.dynamic_rotate %213 by %c241_i32_191 dim 1 : vector<8x256xf32>, i32 -> vector<8x256xf32>
    %c6_192 = arith.constant 6 : index
    %c0_193 = arith.constant 0 : index
    %c0_194 = arith.constant 0 : index
    %275 = vector.load %arg2[%c6_192, %c0_193, %c0_194] : memref<9x1x256xf32, #tpu.memory_space<vmem>>, vector<1x1x256xf32>
    %276 = vector.shape_cast %275 : vector<1x1x256xf32> to vector<1x256xf32>
    %277 = vector.broadcast %276 : vector<1x256xf32> to vector<8x256xf32>
    %278 = arith.mulf %274, %277 : vector<8x256xf32>
    %279 = arith.truncf %278 : vector<8x256xf32> to vector<8x256xbf16>
    %c6_195 = arith.constant 6 : index
    %c0_196 = arith.constant 0 : index
    %c0_197 = arith.constant 0 : index
    %280 = vector.load %arg9[%c6_195, %c0_196, %c0_197] : memref<9x8x8xbf16, #tpu.memory_space<vmem>>, vector<1x8x8xbf16>
    %281 = vector.shape_cast %280 : vector<1x8x8xbf16> to vector<8x8xbf16>
    %cst_198 = arith.constant dense<0.000000e+00> : vector<8x256xf32>
    %282 = tpu.matmul %281, %279, %cst_198 {dimension_numbers = #tpu.dot_dimension_numbers<[1], [0], [0], [1], [0, 0, 1, 1], [], []>} : vector<8x8xbf16>, vector<8x256xbf16>, vector<8x256xf32> -> vector<8x256xf32>
    %283 = arith.addf %273, %282 : vector<8x256xf32>
    %c240_i32_199 = arith.constant 240 : i32
    %284 = tpu.dynamic_rotate %213 by %c240_i32_199 dim 1 : vector<8x256xf32>, i32 -> vector<8x256xf32>
    %c7_200 = arith.constant 7 : index
    %c0_201 = arith.constant 0 : index
    %c0_202 = arith.constant 0 : index
    %285 = vector.load %arg2[%c7_200, %c0_201, %c0_202] : memref<9x1x256xf32, #tpu.memory_space<vmem>>, vector<1x1x256xf32>
    %286 = vector.shape_cast %285 : vector<1x1x256xf32> to vector<1x256xf32>
    %287 = vector.broadcast %286 : vector<1x256xf32> to vector<8x256xf32>
    %288 = arith.mulf %284, %287 : vector<8x256xf32>
    %289 = arith.truncf %288 : vector<8x256xf32> to vector<8x256xbf16>
    %c7_203 = arith.constant 7 : index
    %c0_204 = arith.constant 0 : index
    %c0_205 = arith.constant 0 : index
    %290 = vector.load %arg9[%c7_203, %c0_204, %c0_205] : memref<9x8x8xbf16, #tpu.memory_space<vmem>>, vector<1x8x8xbf16>
    %291 = vector.shape_cast %290 : vector<1x8x8xbf16> to vector<8x8xbf16>
    %cst_206 = arith.constant dense<0.000000e+00> : vector<8x256xf32>
    %292 = tpu.matmul %291, %289, %cst_206 {dimension_numbers = #tpu.dot_dimension_numbers<[1], [0], [0], [1], [0, 0, 1, 1], [], []>} : vector<8x8xbf16>, vector<8x256xbf16>, vector<8x256xf32> -> vector<8x256xf32>
    %293 = arith.addf %283, %292 : vector<8x256xf32>
    %c239_i32_207 = arith.constant 239 : i32
    %294 = tpu.dynamic_rotate %213 by %c239_i32_207 dim 1 : vector<8x256xf32>, i32 -> vector<8x256xf32>
    %c8_208 = arith.constant 8 : index
    %c0_209 = arith.constant 0 : index
    %c0_210 = arith.constant 0 : index
    %295 = vector.load %arg2[%c8_208, %c0_209, %c0_210] : memref<9x1x256xf32, #tpu.memory_space<vmem>>, vector<1x1x256xf32>
    %296 = vector.shape_cast %295 : vector<1x1x256xf32> to vector<1x256xf32>
    %297 = vector.broadcast %296 : vector<1x256xf32> to vector<8x256xf32>
    %298 = arith.mulf %294, %297 : vector<8x256xf32>
    %299 = arith.truncf %298 : vector<8x256xf32> to vector<8x256xbf16>
    %c8_211 = arith.constant 8 : index
    %c0_212 = arith.constant 0 : index
    %c0_213 = arith.constant 0 : index
    %300 = vector.load %arg9[%c8_211, %c0_212, %c0_213] : memref<9x8x8xbf16, #tpu.memory_space<vmem>>, vector<1x8x8xbf16>
    %301 = vector.shape_cast %300 : vector<1x8x8xbf16> to vector<8x8xbf16>
    %cst_214 = arith.constant dense<0.000000e+00> : vector<8x256xf32>
    %302 = tpu.matmul %301, %299, %cst_214 {dimension_numbers = #tpu.dot_dimension_numbers<[1], [0], [0], [1], [0, 0, 1, 1], [], []>} : vector<8x8xbf16>, vector<8x256xbf16>, vector<8x256xf32> -> vector<8x256xf32>
    %303 = arith.addf %293, %302 : vector<8x256xf32>
    %c0_215 = arith.constant 0 : index
    %c0_216 = arith.constant 0 : index
    %304 = vector.load %arg10[%c0_215, %c0_216] : memref<8x1xf32, #tpu.memory_space<vmem>>, vector<8x1xf32>
    %305 = vector.broadcast %304 : vector<8x1xf32> to vector<8x256xf32>
    %306 = arith.addf %303, %305 : vector<8x256xf32>
    %cst_217 = arith.constant 0.000000e+00 : f32
    %307 = vector.broadcast %cst_217 : f32 to vector<8x256xf32>
    %308 = arith.subf %307, %306 : vector<8x256xf32>
    %309 = math.exp %308 : vector<8x256xf32>
    %cst_218 = arith.constant 1.000000e+00 : f32
    %310 = vector.broadcast %cst_218 : f32 to vector<8x256xf32>
    %311 = arith.addf %310, %309 : vector<8x256xf32>
    %312 = tpu.reciprocal %311 {approx = true} : vector<8x256xf32> -> vector<8x256xf32>
    %313 = arith.mulf %306, %312 : vector<8x256xf32>
    %cst_219 = arith.constant 0.000000e+00 : f32
    %314 = vector.broadcast %cst_219 : f32 to vector<8x256xf32>
    %c17_i32_220 = arith.constant 17 : i32
    %315 = tpu.dynamic_rotate %313 by %c17_i32_220 dim 1 : vector<8x256xf32>, i32 -> vector<8x256xf32>
    %c0_221 = arith.constant 0 : index
    %c0_222 = arith.constant 0 : index
    %c0_223 = arith.constant 0 : index
    %316 = vector.load %arg2[%c0_221, %c0_222, %c0_223] : memref<9x1x256xf32, #tpu.memory_space<vmem>>, vector<1x1x256xf32>
    %317 = vector.shape_cast %316 : vector<1x1x256xf32> to vector<1x256xf32>
    %318 = vector.broadcast %317 : vector<1x256xf32> to vector<8x256xf32>
    %319 = arith.mulf %315, %318 : vector<8x256xf32>
    %320 = arith.truncf %319 : vector<8x256xf32> to vector<8x256xbf16>
    %c0_224 = arith.constant 0 : index
    %c0_225 = arith.constant 0 : index
    %c0_226 = arith.constant 0 : index
    %321 = vector.load %arg11[%c0_224, %c0_225, %c0_226] : memref<9x8x8xbf16, #tpu.memory_space<vmem>>, vector<1x8x8xbf16>
    %322 = vector.shape_cast %321 : vector<1x8x8xbf16> to vector<8x8xbf16>
    %cst_227 = arith.constant dense<0.000000e+00> : vector<8x256xf32>
    %323 = tpu.matmul %322, %320, %cst_227 {dimension_numbers = #tpu.dot_dimension_numbers<[1], [0], [0], [1], [0, 0, 1, 1], [], []>} : vector<8x8xbf16>, vector<8x256xbf16>, vector<8x256xf32> -> vector<8x256xf32>
    %324 = arith.addf %314, %323 : vector<8x256xf32>
    %c16_i32_228 = arith.constant 16 : i32
    %325 = tpu.dynamic_rotate %313 by %c16_i32_228 dim 1 : vector<8x256xf32>, i32 -> vector<8x256xf32>
    %c1_229 = arith.constant 1 : index
    %c0_230 = arith.constant 0 : index
    %c0_231 = arith.constant 0 : index
    %326 = vector.load %arg2[%c1_229, %c0_230, %c0_231] : memref<9x1x256xf32, #tpu.memory_space<vmem>>, vector<1x1x256xf32>
    %327 = vector.shape_cast %326 : vector<1x1x256xf32> to vector<1x256xf32>
    %328 = vector.broadcast %327 : vector<1x256xf32> to vector<8x256xf32>
    %329 = arith.mulf %325, %328 : vector<8x256xf32>
    %330 = arith.truncf %329 : vector<8x256xf32> to vector<8x256xbf16>
    %c1_232 = arith.constant 1 : index
    %c0_233 = arith.constant 0 : index
    %c0_234 = arith.constant 0 : index
    %331 = vector.load %arg11[%c1_232, %c0_233, %c0_234] : memref<9x8x8xbf16, #tpu.memory_space<vmem>>, vector<1x8x8xbf16>
    %332 = vector.shape_cast %331 : vector<1x8x8xbf16> to vector<8x8xbf16>
    %cst_235 = arith.constant dense<0.000000e+00> : vector<8x256xf32>
    %333 = tpu.matmul %332, %330, %cst_235 {dimension_numbers = #tpu.dot_dimension_numbers<[1], [0], [0], [1], [0, 0, 1, 1], [], []>} : vector<8x8xbf16>, vector<8x256xbf16>, vector<8x256xf32> -> vector<8x256xf32>
    %334 = arith.addf %324, %333 : vector<8x256xf32>
    %c15_i32_236 = arith.constant 15 : i32
    %335 = tpu.dynamic_rotate %313 by %c15_i32_236 dim 1 : vector<8x256xf32>, i32 -> vector<8x256xf32>
    %c2_237 = arith.constant 2 : index
    %c0_238 = arith.constant 0 : index
    %c0_239 = arith.constant 0 : index
    %336 = vector.load %arg2[%c2_237, %c0_238, %c0_239] : memref<9x1x256xf32, #tpu.memory_space<vmem>>, vector<1x1x256xf32>
    %337 = vector.shape_cast %336 : vector<1x1x256xf32> to vector<1x256xf32>
    %338 = vector.broadcast %337 : vector<1x256xf32> to vector<8x256xf32>
    %339 = arith.mulf %335, %338 : vector<8x256xf32>
    %340 = arith.truncf %339 : vector<8x256xf32> to vector<8x256xbf16>
    %c2_240 = arith.constant 2 : index
    %c0_241 = arith.constant 0 : index
    %c0_242 = arith.constant 0 : index
    %341 = vector.load %arg11[%c2_240, %c0_241, %c0_242] : memref<9x8x8xbf16, #tpu.memory_space<vmem>>, vector<1x8x8xbf16>
    %342 = vector.shape_cast %341 : vector<1x8x8xbf16> to vector<8x8xbf16>
    %cst_243 = arith.constant dense<0.000000e+00> : vector<8x256xf32>
    %343 = tpu.matmul %342, %340, %cst_243 {dimension_numbers = #tpu.dot_dimension_numbers<[1], [0], [0], [1], [0, 0, 1, 1], [], []>} : vector<8x8xbf16>, vector<8x256xbf16>, vector<8x256xf32> -> vector<8x256xf32>
    %344 = arith.addf %334, %343 : vector<8x256xf32>
    %c1_i32_244 = arith.constant 1 : i32
    %345 = tpu.dynamic_rotate %313 by %c1_i32_244 dim 1 : vector<8x256xf32>, i32 -> vector<8x256xf32>
    %c3_245 = arith.constant 3 : index
    %c0_246 = arith.constant 0 : index
    %c0_247 = arith.constant 0 : index
    %346 = vector.load %arg2[%c3_245, %c0_246, %c0_247] : memref<9x1x256xf32, #tpu.memory_space<vmem>>, vector<1x1x256xf32>
    %347 = vector.shape_cast %346 : vector<1x1x256xf32> to vector<1x256xf32>
    %348 = vector.broadcast %347 : vector<1x256xf32> to vector<8x256xf32>
    %349 = arith.mulf %345, %348 : vector<8x256xf32>
    %350 = arith.truncf %349 : vector<8x256xf32> to vector<8x256xbf16>
    %c3_248 = arith.constant 3 : index
    %c0_249 = arith.constant 0 : index
    %c0_250 = arith.constant 0 : index
    %351 = vector.load %arg11[%c3_248, %c0_249, %c0_250] : memref<9x8x8xbf16, #tpu.memory_space<vmem>>, vector<1x8x8xbf16>
    %352 = vector.shape_cast %351 : vector<1x8x8xbf16> to vector<8x8xbf16>
    %cst_251 = arith.constant dense<0.000000e+00> : vector<8x256xf32>
    %353 = tpu.matmul %352, %350, %cst_251 {dimension_numbers = #tpu.dot_dimension_numbers<[1], [0], [0], [1], [0, 0, 1, 1], [], []>} : vector<8x8xbf16>, vector<8x256xbf16>, vector<8x256xf32> -> vector<8x256xf32>
    %354 = arith.addf %344, %353 : vector<8x256xf32>
    %c4_252 = arith.constant 4 : index
    %c0_253 = arith.constant 0 : index
    %c0_254 = arith.constant 0 : index
    %355 = vector.load %arg2[%c4_252, %c0_253, %c0_254] : memref<9x1x256xf32, #tpu.memory_space<vmem>>, vector<1x1x256xf32>
    %356 = vector.shape_cast %355 : vector<1x1x256xf32> to vector<1x256xf32>
    %357 = vector.broadcast %356 : vector<1x256xf32> to vector<8x256xf32>
    %358 = arith.mulf %313, %357 : vector<8x256xf32>
    %359 = arith.truncf %358 : vector<8x256xf32> to vector<8x256xbf16>
    %c4_255 = arith.constant 4 : index
    %c0_256 = arith.constant 0 : index
    %c0_257 = arith.constant 0 : index
    %360 = vector.load %arg11[%c4_255, %c0_256, %c0_257] : memref<9x8x8xbf16, #tpu.memory_space<vmem>>, vector<1x8x8xbf16>
    %361 = vector.shape_cast %360 : vector<1x8x8xbf16> to vector<8x8xbf16>
    %cst_258 = arith.constant dense<0.000000e+00> : vector<8x256xf32>
    %362 = tpu.matmul %361, %359, %cst_258 {dimension_numbers = #tpu.dot_dimension_numbers<[1], [0], [0], [1], [0, 0, 1, 1], [], []>} : vector<8x8xbf16>, vector<8x256xbf16>, vector<8x256xf32> -> vector<8x256xf32>
    %363 = arith.addf %354, %362 : vector<8x256xf32>
    %c255_i32_259 = arith.constant 255 : i32
    %364 = tpu.dynamic_rotate %313 by %c255_i32_259 dim 1 : vector<8x256xf32>, i32 -> vector<8x256xf32>
    %c5_260 = arith.constant 5 : index
    %c0_261 = arith.constant 0 : index
    %c0_262 = arith.constant 0 : index
    %365 = vector.load %arg2[%c5_260, %c0_261, %c0_262] : memref<9x1x256xf32, #tpu.memory_space<vmem>>, vector<1x1x256xf32>
    %366 = vector.shape_cast %365 : vector<1x1x256xf32> to vector<1x256xf32>
    %367 = vector.broadcast %366 : vector<1x256xf32> to vector<8x256xf32>
    %368 = arith.mulf %364, %367 : vector<8x256xf32>
    %369 = arith.truncf %368 : vector<8x256xf32> to vector<8x256xbf16>
    %c5_263 = arith.constant 5 : index
    %c0_264 = arith.constant 0 : index
    %c0_265 = arith.constant 0 : index
    %370 = vector.load %arg11[%c5_263, %c0_264, %c0_265] : memref<9x8x8xbf16, #tpu.memory_space<vmem>>, vector<1x8x8xbf16>
    %371 = vector.shape_cast %370 : vector<1x8x8xbf16> to vector<8x8xbf16>
    %cst_266 = arith.constant dense<0.000000e+00> : vector<8x256xf32>
    %372 = tpu.matmul %371, %369, %cst_266 {dimension_numbers = #tpu.dot_dimension_numbers<[1], [0], [0], [1], [0, 0, 1, 1], [], []>} : vector<8x8xbf16>, vector<8x256xbf16>, vector<8x256xf32> -> vector<8x256xf32>
    %373 = arith.addf %363, %372 : vector<8x256xf32>
    %c241_i32_267 = arith.constant 241 : i32
    %374 = tpu.dynamic_rotate %313 by %c241_i32_267 dim 1 : vector<8x256xf32>, i32 -> vector<8x256xf32>
    %c6_268 = arith.constant 6 : index
    %c0_269 = arith.constant 0 : index
    %c0_270 = arith.constant 0 : index
    %375 = vector.load %arg2[%c6_268, %c0_269, %c0_270] : memref<9x1x256xf32, #tpu.memory_space<vmem>>, vector<1x1x256xf32>
    %376 = vector.shape_cast %375 : vector<1x1x256xf32> to vector<1x256xf32>
    %377 = vector.broadcast %376 : vector<1x256xf32> to vector<8x256xf32>
    %378 = arith.mulf %374, %377 : vector<8x256xf32>
    %379 = arith.truncf %378 : vector<8x256xf32> to vector<8x256xbf16>
    %c6_271 = arith.constant 6 : index
    %c0_272 = arith.constant 0 : index
    %c0_273 = arith.constant 0 : index
    %380 = vector.load %arg11[%c6_271, %c0_272, %c0_273] : memref<9x8x8xbf16, #tpu.memory_space<vmem>>, vector<1x8x8xbf16>
    %381 = vector.shape_cast %380 : vector<1x8x8xbf16> to vector<8x8xbf16>
    %cst_274 = arith.constant dense<0.000000e+00> : vector<8x256xf32>
    %382 = tpu.matmul %381, %379, %cst_274 {dimension_numbers = #tpu.dot_dimension_numbers<[1], [0], [0], [1], [0, 0, 1, 1], [], []>} : vector<8x8xbf16>, vector<8x256xbf16>, vector<8x256xf32> -> vector<8x256xf32>
    %383 = arith.addf %373, %382 : vector<8x256xf32>
    %c240_i32_275 = arith.constant 240 : i32
    %384 = tpu.dynamic_rotate %313 by %c240_i32_275 dim 1 : vector<8x256xf32>, i32 -> vector<8x256xf32>
    %c7_276 = arith.constant 7 : index
    %c0_277 = arith.constant 0 : index
    %c0_278 = arith.constant 0 : index
    %385 = vector.load %arg2[%c7_276, %c0_277, %c0_278] : memref<9x1x256xf32, #tpu.memory_space<vmem>>, vector<1x1x256xf32>
    %386 = vector.shape_cast %385 : vector<1x1x256xf32> to vector<1x256xf32>
    %387 = vector.broadcast %386 : vector<1x256xf32> to vector<8x256xf32>
    %388 = arith.mulf %384, %387 : vector<8x256xf32>
    %389 = arith.truncf %388 : vector<8x256xf32> to vector<8x256xbf16>
    %c7_279 = arith.constant 7 : index
    %c0_280 = arith.constant 0 : index
    %c0_281 = arith.constant 0 : index
    %390 = vector.load %arg11[%c7_279, %c0_280, %c0_281] : memref<9x8x8xbf16, #tpu.memory_space<vmem>>, vector<1x8x8xbf16>
    %391 = vector.shape_cast %390 : vector<1x8x8xbf16> to vector<8x8xbf16>
    %cst_282 = arith.constant dense<0.000000e+00> : vector<8x256xf32>
    %392 = tpu.matmul %391, %389, %cst_282 {dimension_numbers = #tpu.dot_dimension_numbers<[1], [0], [0], [1], [0, 0, 1, 1], [], []>} : vector<8x8xbf16>, vector<8x256xbf16>, vector<8x256xf32> -> vector<8x256xf32>
    %393 = arith.addf %383, %392 : vector<8x256xf32>
    %c239_i32_283 = arith.constant 239 : i32
    %394 = tpu.dynamic_rotate %313 by %c239_i32_283 dim 1 : vector<8x256xf32>, i32 -> vector<8x256xf32>
    %c8_284 = arith.constant 8 : index
    %c0_285 = arith.constant 0 : index
    %c0_286 = arith.constant 0 : index
    %395 = vector.load %arg2[%c8_284, %c0_285, %c0_286] : memref<9x1x256xf32, #tpu.memory_space<vmem>>, vector<1x1x256xf32>
    %396 = vector.shape_cast %395 : vector<1x1x256xf32> to vector<1x256xf32>
    %397 = vector.broadcast %396 : vector<1x256xf32> to vector<8x256xf32>
    %398 = arith.mulf %394, %397 : vector<8x256xf32>
    %399 = arith.truncf %398 : vector<8x256xf32> to vector<8x256xbf16>
    %c8_287 = arith.constant 8 : index
    %c0_288 = arith.constant 0 : index
    %c0_289 = arith.constant 0 : index
    %400 = vector.load %arg11[%c8_287, %c0_288, %c0_289] : memref<9x8x8xbf16, #tpu.memory_space<vmem>>, vector<1x8x8xbf16>
    %401 = vector.shape_cast %400 : vector<1x8x8xbf16> to vector<8x8xbf16>
    %cst_290 = arith.constant dense<0.000000e+00> : vector<8x256xf32>
    %402 = tpu.matmul %401, %399, %cst_290 {dimension_numbers = #tpu.dot_dimension_numbers<[1], [0], [0], [1], [0, 0, 1, 1], [], []>} : vector<8x8xbf16>, vector<8x256xbf16>, vector<8x256xf32> -> vector<8x256xf32>
    %403 = arith.addf %393, %402 : vector<8x256xf32>
    %c0_291 = arith.constant 0 : index
    %c0_292 = arith.constant 0 : index
    %404 = vector.load %arg12[%c0_291, %c0_292] : memref<8x1xf32, #tpu.memory_space<vmem>>, vector<8x1xf32>
    %405 = vector.broadcast %404 : vector<8x1xf32> to vector<8x256xf32>
    %406 = arith.addf %403, %405 : vector<8x256xf32>
    %cst_293 = arith.constant 0.000000e+00 : f32
    %407 = vector.broadcast %cst_293 : f32 to vector<8x256xf32>
    %408 = arith.subf %407, %406 : vector<8x256xf32>
    %409 = math.exp %408 : vector<8x256xf32>
    %cst_294 = arith.constant 1.000000e+00 : f32
    %410 = vector.broadcast %cst_294 : f32 to vector<8x256xf32>
    %411 = arith.addf %410, %409 : vector<8x256xf32>
    %412 = tpu.reciprocal %411 {approx = true} : vector<8x256xf32> -> vector<8x256xf32>
    %413 = arith.mulf %406, %412 : vector<8x256xf32>
    %414 = arith.addf %213, %413 : vector<8x256xf32>
    %c0_295 = arith.constant 0 : index
    %c0_296 = arith.constant 0 : index
    %415 = vector.load %arg13[%c0_295, %c0_296] : memref<8x8xbf16, #tpu.memory_space<vmem>>, vector<8x8xbf16>
    %416 = arith.truncf %414 : vector<8x256xf32> to vector<8x256xbf16>
    %cst_297 = arith.constant dense<0.000000e+00> : vector<8x256xf32>
    %417 = tpu.matmul %415, %416, %cst_297 {dimension_numbers = #tpu.dot_dimension_numbers<[1], [0], [0], [1], [0, 0, 1, 1], [], []>} : vector<8x8xbf16>, vector<8x256xbf16>, vector<8x256xf32> -> vector<8x256xf32>
    %c0_298 = arith.constant 0 : index
    %c0_299 = arith.constant 0 : index
    %418 = vector.load %arg14[%c0_298, %c0_299] : memref<8x8xbf16, #tpu.memory_space<vmem>>, vector<8x8xbf16>
    %cst_300 = arith.constant dense<0.000000e+00> : vector<8x256xf32>
    %419 = tpu.matmul %418, %0, %cst_300 {dimension_numbers = #tpu.dot_dimension_numbers<[1], [0], [0], [1], [0, 0, 1, 1], [], []>} : vector<8x8xbf16>, vector<8x256xbf16>, vector<8x256xf32> -> vector<8x256xf32>
    %c0_301 = arith.constant 0 : index
    %c0_302 = arith.constant 0 : index
    %420 = vector.load %arg15[%c0_301, %c0_302] : memref<8x1xf32, #tpu.memory_space<vmem>>, vector<8x1xf32>
    %421 = vector.broadcast %420 : vector<8x1xf32> to vector<8x256xf32>
    %422 = arith.mulf %421, %417 : vector<8x256xf32>
    %c0_303 = arith.constant 0 : index
    %c0_304 = arith.constant 0 : index
    %423 = vector.load %arg16[%c0_303, %c0_304] : memref<8x1xf32, #tpu.memory_space<vmem>>, vector<8x1xf32>
    %424 = vector.broadcast %423 : vector<8x1xf32> to vector<8x256xf32>
    %425 = arith.addf %422, %424 : vector<8x256xf32>
    %cst_305 = arith.constant 0.000000e+00 : f32
    %426 = vector.broadcast %cst_305 : f32 to vector<8x256xf32>
    %427 = arith.subf %426, %425 : vector<8x256xf32>
    %428 = math.exp %427 : vector<8x256xf32>
    %cst_306 = arith.constant 1.000000e+00 : f32
    %429 = vector.broadcast %cst_306 : f32 to vector<8x256xf32>
    %430 = arith.addf %429, %428 : vector<8x256xf32>
    %431 = tpu.reciprocal %430 {approx = true} : vector<8x256xf32> -> vector<8x256xf32>
    %432 = arith.mulf %425, %431 : vector<8x256xf32>
    %433 = arith.truncf %432 : vector<8x256xf32> to vector<8x256xbf16>
    %c0_307 = arith.constant 0 : index
    %c0_308 = arith.constant 0 : index
    %434 = vector.load %arg17[%c0_307, %c0_308] : memref<8x1xf32, #tpu.memory_space<vmem>>, vector<8x1xf32>
    %435 = vector.broadcast %434 : vector<8x1xf32> to vector<8x256xf32>
    %436 = arith.mulf %435, %419 : vector<8x256xf32>
    %c0_309 = arith.constant 0 : index
    %c0_310 = arith.constant 0 : index
    %437 = vector.load %arg18[%c0_309, %c0_310] : memref<8x1xf32, #tpu.memory_space<vmem>>, vector<8x1xf32>
    %438 = vector.broadcast %437 : vector<8x1xf32> to vector<8x256xf32>
    %439 = arith.addf %436, %438 : vector<8x256xf32>
    %cst_311 = arith.constant 0.000000e+00 : f32
    %440 = vector.broadcast %cst_311 : f32 to vector<8x256xf32>
    %441 = arith.subf %440, %439 : vector<8x256xf32>
    %442 = math.exp %441 : vector<8x256xf32>
    %cst_312 = arith.constant 1.000000e+00 : f32
    %443 = vector.broadcast %cst_312 : f32 to vector<8x256xf32>
    %444 = arith.addf %443, %442 : vector<8x256xf32>
    %445 = tpu.reciprocal %444 {approx = true} : vector<8x256xf32> -> vector<8x256xf32>
    %446 = arith.mulf %439, %445 : vector<8x256xf32>
    %447 = arith.truncf %446 : vector<8x256xf32> to vector<8x256xbf16>
    %c0_313 = arith.constant 0 : index
    %c0_314 = arith.constant 0 : index
    %448 = vector.load %arg19[%c0_313, %c0_314] : memref<8x8xbf16, #tpu.memory_space<vmem>>, vector<8x8xbf16>
    %cst_315 = arith.constant dense<0.000000e+00> : vector<8x256xf32>
    %449 = tpu.matmul %448, %433, %cst_315 {dimension_numbers = #tpu.dot_dimension_numbers<[1], [0], [0], [1], [0, 0, 1, 1], [], []>} : vector<8x8xbf16>, vector<8x256xbf16>, vector<8x256xf32> -> vector<8x256xf32>
    %c0_316 = arith.constant 0 : index
    %c0_317 = arith.constant 0 : index
    %450 = vector.load %arg20[%c0_316, %c0_317] : memref<8x8xbf16, #tpu.memory_space<vmem>>, vector<8x8xbf16>
    %cst_318 = arith.constant dense<0.000000e+00> : vector<8x256xf32>
    %451 = tpu.matmul %450, %447, %cst_318 {dimension_numbers = #tpu.dot_dimension_numbers<[1], [0], [0], [1], [0, 0, 1, 1], [], []>} : vector<8x8xbf16>, vector<8x256xbf16>, vector<8x256xf32> -> vector<8x256xf32>
    %452 = arith.addf %449, %451 : vector<8x256xf32>
    %c0_319 = arith.constant 0 : index
    %c0_320 = arith.constant 0 : index
    %453 = vector.load %arg21[%c0_319, %c0_320] : memref<8x1xf32, #tpu.memory_space<vmem>>, vector<8x1xf32>
    %454 = vector.broadcast %453 : vector<8x1xf32> to vector<8x256xf32>
    %455 = arith.addf %452, %454 : vector<8x256xf32>
    %cst_321 = arith.constant 0.000000e+00 : f32
    %456 = vector.broadcast %cst_321 : f32 to vector<8x256xf32>
    %457 = arith.subf %456, %455 : vector<8x256xf32>
    %458 = math.exp %457 : vector<8x256xf32>
    %cst_322 = arith.constant 1.000000e+00 : f32
    %459 = vector.broadcast %cst_322 : f32 to vector<8x256xf32>
    %460 = arith.addf %459, %458 : vector<8x256xf32>
    %461 = tpu.reciprocal %460 {approx = true} : vector<8x256xf32> -> vector<8x256xf32>
    %462 = arith.mulf %455, %461 : vector<8x256xf32>
    %c0_323 = arith.constant 0 : index
    %c0_324 = arith.constant 0 : index
    %463 = vector.load %arg22[%c0_323, %c0_324] : memref<8x256xf32, #tpu.memory_space<vmem>>, vector<8x256xf32>
    tpu.vector_store %arg22[%c0_323, %c0_324], %462 {strides = array<i32>} : memref<8x256xf32, #tpu.memory_space<vmem>>, vector<8x256xf32>,
    return
  }
  func.func @transform_0(%arg0: i32) -> (i32, i32) {
    %c0_i32 = arith.constant 0 : i32
    %c0_i32_0 = arith.constant 0 : i32
    return %c0_i32, %arg0 : i32, i32
  }
  func.func @transform_1(%arg0: i32) -> (i32, i32, i32) {
    %c0_i32 = arith.constant 0 : i32
    %c0_i32_0 = arith.constant 0 : i32
    %c0_i32_1 = arith.constant 0 : i32
    %c0_i32_2 = arith.constant 0 : i32
    return %c0_i32, %c0_i32_0, %c0_i32_1 : i32, i32, i32
  }
  func.func @transform_2(%arg0: i32) -> (i32, i32) {
    %c0_i32 = arith.constant 0 : i32
    %c0_i32_0 = arith.constant 0 : i32
    %c0_i32_1 = arith.constant 0 : i32
    return %c0_i32, %c0_i32_0 : i32, i32
  }
  func.func @transform_3(%arg0: i32) -> (i32, i32) {
    %c0_i32 = arith.constant 0 : i32
    %c0_i32_0 = arith.constant 0 : i32
    %c0_i32_1 = arith.constant 0 : i32
    return %c0_i32, %c0_i32_0 : i32, i32
  }
  func.func @transform_4(%arg0: i32) -> (i32, i32, i32) {
    %c0_i32 = arith.constant 0 : i32
    %c0_i32_0 = arith.constant 0 : i32
    %c0_i32_1 = arith.constant 0 : i32
    %c0_i32_2 = arith.constant 0 : i32
    return %c0_i32, %c0_i32_0, %c0_i32_1 : i32, i32, i32
  }
  func.func @transform_5(%arg0: i32) -> (i32, i32) {
    %c0_i32 = arith.constant 0 : i32
    %c0_i32_0 = arith.constant 0 : i32
    %c0_i32_1 = arith.constant 0 : i32
    return %c0_i32, %c0_i32_0 : i32, i32
  }
  func.func @transform_6(%arg0: i32) -> (i32, i32, i32) {
    %c0_i32 = arith.constant 0 : i32
    %c0_i32_0 = arith.constant 0 : i32
    %c0_i32_1 = arith.constant 0 : i32
    %c0_i32_2 = arith.constant 0 : i32
    return %c0_i32, %c0_i32_0, %c0_i32_1 : i32, i32, i32
  }
  func.func @transform_7(%arg0: i32) -> (i32, i32) {
    %c0_i32 = arith.constant 0 : i32
    %c0_i32_0 = arith.constant 0 : i32
    %c0_i32_1 = arith.constant 0 : i32
    return %c0_i32, %c0_i32_0 : i32, i32
  }
  func.func @transform_8(%arg0: i32) -> (i32, i32, i32) {
    %c0_i32 = arith.constant 0 : i32
    %c0_i32_0 = arith.constant 0 : i32
    %c0_i32_1 = arith.constant 0 : i32
    %c0_i32_2 = arith.constant 0 : i32
    return %c0_i32, %c0_i32_0, %c0_i32_1 : i32, i32, i32
  }
  func.func @transform_9(%arg0: i32) -> (i32, i32) {
    %c0_i32 = arith.constant 0 : i32
    %c0_i32_0 = arith.constant 0 : i32
    %c0_i32_1 = arith.constant 0 : i32
    return %c0_i32, %c0_i32_0 : i32, i32
  }
  func.func @transform_10(%arg0: i32) -> (i32, i32, i32) {
    %c0_i32 = arith.constant 0 : i32
    %c0_i32_0 = arith.constant 0 : i32
    %c0_i32_1 = arith.constant 0 : i32
    %c0_i32_2 = arith.constant 0 : i32
    return %c0_i32, %c0_i32_0, %c0_i32_1 : i32, i32, i32
  }
  func.func @transform_11(%arg0: i32) -> (i32, i32) {
    %c0_i32 = arith.constant 0 : i32
    %c0_i32_0 = arith.constant 0 : i32
    %c0_i32_1 = arith.constant 0 : i32
    return %c0_i32, %c0_i32_0 : i32, i32
  }
  func.func @transform_12(%arg0: i32) -> (i32, i32) {
    %c0_i32 = arith.constant 0 : i32
    %c0_i32_0 = arith.constant 0 : i32
    %c0_i32_1 = arith.constant 0 : i32
    return %c0_i32, %c0_i32_0 : i32, i32
  }
  func.func @transform_13(%arg0: i32) -> (i32, i32) {
    %c0_i32 = arith.constant 0 : i32
    %c0_i32_0 = arith.constant 0 : i32
    %c0_i32_1 = arith.constant 0 : i32
    return %c0_i32, %c0_i32_0 : i32, i32
  }
  func.func @transform_14(%arg0: i32) -> (i32, i32) {
    %c0_i32 = arith.constant 0 : i32
    %c0_i32_0 = arith.constant 0 : i32
    %c0_i32_1 = arith.constant 0 : i32
    return %c0_i32, %c0_i32_0 : i32, i32
  }
  func.func @transform_15(%arg0: i32) -> (i32, i32) {
    %c0_i32 = arith.constant 0 : i32
    %c0_i32_0 = arith.constant 0 : i32
    %c0_i32_1 = arith.constant 0 : i32
    return %c0_i32, %c0_i32_0 : i32, i32
  }
  func.func @transform_16(%arg0: i32) -> (i32, i32) {
    %c0_i32 = arith.constant 0 : i32
    %c0_i32_0 = arith.constant 0 : i32
    %c0_i32_1 = arith.constant 0 : i32
    return %c0_i32, %c0_i32_0 : i32, i32
  }
  func.func @transform_17(%arg0: i32) -> (i32, i32) {
    %c0_i32 = arith.constant 0 : i32
    %c0_i32_0 = arith.constant 0 : i32
    %c0_i32_1 = arith.constant 0 : i32
    return %c0_i32, %c0_i32_0 : i32, i32
  }
  func.func @transform_18(%arg0: i32) -> (i32, i32) {
    %c0_i32 = arith.constant 0 : i32
    %c0_i32_0 = arith.constant 0 : i32
    %c0_i32_1 = arith.constant 0 : i32
    return %c0_i32, %c0_i32_0 : i32, i32
  }
  func.func @transform_19(%arg0: i32) -> (i32, i32) {
    %c0_i32 = arith.constant 0 : i32
    %c0_i32_0 = arith.constant 0 : i32
    %c0_i32_1 = arith.constant 0 : i32
    return %c0_i32, %c0_i32_0 : i32, i32
  }
  func.func @transform_20(%arg0: i32) -> (i32, i32) {
    %c0_i32 = arith.constant 0 : i32
    %c0_i32_0 = arith.constant 0 : i32
    %c0_i32_1 = arith.constant 0 : i32
    return %c0_i32, %c0_i32_0 : i32, i32
  }
  func.func @transform_21(%arg0: i32) -> (i32, i32) {
    %c0_i32 = arith.constant 0 : i32
    %c0_i32_0 = arith.constant 0 : i32
    return %c0_i32, %arg0 : i32, i32
  }
}

</mosaic_0001>

<bundles_post_ra>
// kernel: tpu_custom_call.1
= control target key start
LH: loop header
LB: loop body
LE: loop exit
PB: predicated region body
PF: predicated region fallthrough
CT: control target
= control target key end

     0   :  { %s4831_s0 = inlined_call_operand.vmem [shape: bf16[8,512], index: 0, kind: input, shape index: {}]   ;;  %s4832_s1 = inlined_call_operand.vmem [shape: f32[9,1,256], index: 1, kind: input, shape index: {}]   ;;  %s4833_s2 = inlined_call_operand.vmem [shape: bf16[8,8], index: 2, kind: input, shape index: {}]   ;;  %s4834_s3 = inlined_call_operand.vmem [shape: f32[8,1], index: 3, kind: input, shape index: {}]   ;;  %s4835_s4 = inlined_call_operand.vmem [shape: bf16[9,8,8], index: 4, kind: input, shape index: {}]   ;;  %s4836_s5 = inlined_call_operand.vmem [shape: f32[8,1], index: 5, kind: input, shape index: {}]   ;;  %s4837_s6 = inlined_call_operand.vmem [shape: bf16[9,8,8], index: 6, kind: input, shape index: {}]   ;;  %s4838_s7 = inlined_call_operand.vmem [shape: f32[8,1], index: 7, kind: input, shape index: {}]   ;;  %s4839_s8 = inlined_call_operand.vmem [shape: bf16[9,8,8], index: 8, kind: input, shape index: {}]   ;;  %s4840_s9 = inlined_call_operand.vmem [shape: f32[8,1], index: 9, kind: input, shape index: {}]   ;;  %s4841_s10 = inlined_call_operand.vmem [shape: bf16[9,8,8], index: 10, kind: input, shape index: {}]   ;;  %s4842_s11 = inlined_call_operand.vmem [shape: f32[8,1], index: 11, kind: input, shape index: {}]   ;;  %s4843_s12 = inlined_call_operand.vmem [shape: bf16[8,8], index: 12, kind: input, shape index: {}]   ;;  %s4844_s13 = inlined_call_operand.vmem [shape: bf16[8,8], index: 13, kind: input, shape index: {}]   ;;  %s4845_s14 = inlined_call_operand.vmem [shape: f32[8,1], index: 14, kind: input, shape index: {}]   ;;  %s4846_s15 = inlined_call_operand.vmem [shape: f32[8,1], index: 15, kind: input, shape index: {}]   ;;  %s4847_s16 = inlined_call_operand.vmem [shape: f32[8,1], index: 16, kind: input, shape index: {}]   ;;  %s4848_s17 = inlined_call_operand.vmem [shape: f32[8,1], index: 17, kind: input, shape index: {}]   ;;  %s4849_s18 = inlined_call_operand.vmem [shape: bf16[8,8], index: 18, kind: input, shape index: {}]   ;;  %s4850_s19 = inlined_call_operand.vmem [shape: bf16[8,8], index: 19, kind: input, shape index: {}]   ;;  %s4851_s20 = inlined_call_operand.vmem [shape: f32[8,1], index: 20, kind: input, shape index: {}]   ;;  %s4852_s21 = inlined_call_operand.hbm [shape: f32[8,512], index: 21, kind: output, shape index: {}]  }
   0x1   :  { %4876 = sst [smem:[#allocation8_spill]] %s4831_s0 }
   0x2   :  { %4877 = sst [smem:[#allocation9_spill]] %s4832_s1 }
   0x3   :  { %4878 = sst [smem:[#allocation10_spill]] %s4833_s2 }
   0x4   :  { %4879 = sst [smem:[#allocation11_spill]] %s4834_s3 }
   0x5   :  { %4880 = sst [smem:[#allocation12_spill]] %s4835_s4 }
   0x6   :  { %4881 = sst [smem:[#allocation13_spill]] %s4836_s5 }
   0x7   :  { %4882 = sst [smem:[#allocation14_spill]] %s4837_s6 }
   0x8   :  { %4883 = sst [smem:[#allocation15_spill]] %s4838_s7 }
   0x9   :  { %4884 = sst [smem:[#allocation16_spill]] %s4840_s9 }
   0xa   :  { %26 = vsyncpa [#allocation3], 0 }
   0xb   :  { %28 = vsyncpa [#allocation3 + $0x1], 0  ;;  %s3999_s2 = smov 0   ;;  %s4001_s25 = smov 0  }
   0xc   :  { %s4003_s26 = smov 0   ;;  %s4005_s27 = smov 0  }
   0xd LB: > { %4885 = sst [smem:[#allocation5_spill]] %s3873_s26  ;;  %s4020_s3 = sadd.s32 4294967295, %s3877_s27   ;;  %s3877_s27 = sphi %s4005_s27, %s4907_s27   ;;  %s3873_s26 = sphi %s4003_s26, %s4909_s26   ;;  %s3869_s25 = sphi %s4001_s25, %s4911_s25   ;;  %s3865_s2 = sphi %s3999_s2, %s4910_s2  }
   0xe   : > { %s3562_s28 = sadd.s32 4294967294, %s3877_s27   ;;  %s4024_s29 = sadd.s32 1, %s3877_s27  }
   0xf   : > { %4886 = sst [smem:[#allocation6_spill]] %s4024_s29  ;;  %s487_s0 = sadd.s32 1, %s3873_s26 }
  0x10   : > { %s484_s4 = ssub.s32 %s3877_s27, %s4024_s29  ;;  %p497_p0 = scmp.ne.s32.totalorder %s3873_s26, %s3869_s25 }
  0x11   : > { %p485_p1 = scmp.eq.s32.totalorder %s484_s4, 0  ;;  %p498_p2 = scmp.eq.s32.totalorder %s4020_s3, 1 }
  0x12   : > { %p503_p3 = scmp.ne.s32.totalorder %s3869_s25, %s3865_s2  ;;  %p504_p4 = scmp.eq.s32.totalorder %s3562_s28, 1 }
  0x13   : > { %s4035_s30 = scalar_select %p485_p1, %s3873_s26, %s487_s0  }
  0x14   : > { %p4037_p5 = por %p498_p2, %p497_p0  ;;  %p4041_p6 = por %p504_p4, %p503_p3 }
  0x15   : > { %4887 = sst [smem:[#allocation7_spill]] %s4035_s30  ;;  %p3565_p7 = scmp.ge.s32.totalorder %s3877_s27, 1 }
  0x16   : > { %p591_p8 = scmp.lt.s32.totalorder %s3877_s27, 3 }
  0x18   : > { %p592_p9 = pnand %p3565_p7, %p591_p8 }
  0x19   : > { %s3567_s23 = sshll.u32 (!%p592_p9), %s4020_s3, 1  ;;  %v3879_v0 = vmov (!%p592_p9), 0   ;;  %s4890_s28 = sld [smem:[#allocation11_spill]] (!%p592_p9)  ;;  %vm676_vm0 = vcmask (!%p592_p9), 1043456   ;;  %vm672_vm1 = vcmask (!%p592_p9), 64512   ;;  %v740_v27 = vlaneseq (!%p592_p9) }
  0x1a   : > { %595 = sbr.rel (%p592_p9) target bundleno = 2424 (0x978), region = 104  ;;  %p652_p10 = scmp.lt.s32.totalorder (!%p592_p9), %s3567_s23, 3  ;;  %715 = vmatprep.mubr.bf16.mxu0 (!%p592_p9), %v3879_v0  ;;  %3747 = vset.pattern.permute.xlu0 (!%p592_p9), %v3879_v0 }
  0x1b   : > { %829 = vmatprep.mubr.bf16.mxu1 (!%p592_p9), %v3879_v0  ;;  %3748 = vset.pattern.permute.xlu1 (!%p592_p9), %v3879_v0  ;;  %s4891_s26 = sld [smem:[#allocation8_spill]] (!%p592_p9)  ;;  %s4864_s30 = smov (!%p592_p9), 15   ;;  %v748_v28 = vshrl.u32 (!%p592_p9), %v740_v27, 7  ;;  %v4110_v29 = vand.u32 (!%p592_p9), 127, %v740_v27 }
  0x1c   : > { %s4862_s4 = smov (!%p592_p9), 113   ;;  %s4874_s1 = smov (!%p592_p9), 112  }
  0x1d   : > { %s4868_s24 = smov (!%p592_p9), 111   ;;  %v4115_v31 = vsub.s32 (!%p592_p9), 0, %v748_v28  ;;  %v4117_v32 = vsub.s32 (!%p592_p9), 1, %v748_v28  ;;  %vm766_vm2 = vcmp.lt.s32.totalorder (!%p592_p9), %v4110_v29, 16  ;;  %vm742_vm3 = vcmp.lt.s32.totalorder (!%p592_p9), %v4110_v29, 17  ;;  %s4902_s7 = sld [smem:[#allocation15_spill]] (!%p592_p9) }
  0x1e   : > { %vm892_vm4 = vcmp.lt.s32.totalorder (!%p592_p9), %v4110_v29, 15  ;;  %vm970_vm5 = vcmp.lt.s32.totalorder (!%p592_p9), %v4110_v29, 1  ;;  %vm1119_vm6 = vcmp.lt.s32.totalorder (!%p592_p9), %v4110_v29, 127  ;;  %vm1197_vm7 = vcmp.lt.s32.totalorder (!%p592_p9), %v4110_v29, 113  ;;  %s4903_s6 = sld [smem:[#allocation14_spill]] (!%p592_p9)  ;;  %s4906_s9 = sld [smem:[#allocation16_spill]] (!%p592_p9) }
  0x1f   : > { %v661_v1 = vld [vmem:[%s4890_s28] sm:$0xff] (!%p592_p9)  ;;  %s4860_s28 = smov (!%p592_p9), 1   ;;  %vm1275_vm8 = vcmp.lt.s32.totalorder (!%p592_p9), %v4110_v29, 112  ;;  %vm1353_vm9 = vcmp.lt.s32.totalorder (!%p592_p9), %v4110_v29, 111 }
  0x20   : > { %664 = vperm.xlu0 (!%p592_p9), %3747, %v661_v1  }
  0x21   : > { %s4913_s23 = smov (!%p652_p10, %s3567_s23), 3 }
  0x22   : > { %s3568_s0 = sshll.u32 %s4913_s23, 2  ;;  %s4892_s23 = sld [smem:[#allocation10_spill]] }
  0x23   : > { %s655_s29 = scalar_lea.vmem %s4891_s26, %s3568_s0  ;;  %s4870_s26 = smov 16  }
  0x24   : > { %v659_v2 = vld [vmem:[%s655_s29] sm:$0xff]  ;;  %s4866_s29 = smov 17   ;;  %s4858_s0 = smov 127  }
  0x25   : > { %v4058_v3 = vcombine.high %v659_v2, %v659_v2  ;;  %v3569_v4 = vcombine.low %v659_v2, %v659_v2 }
  0x27   : > { %3571 = vmatprep.subr.msk.bf16.mxu0 %vm676_vm0, %v4058_v3  ;;  %v4063_v5 = vsel %vm676_vm0, %v3569_v4, 0 }
  0x28   : > { %684 = vmatpush1.bf16.msra.mxu0 %v4063_v5  ;;  %v660_v6 = vld [vmem:[%s4892_s23] sm:$0xf]  ;;  %s4899_s23 = smov 127  }
  0x2b   : > { %3572 = vmatmul.mubr.msk.bf16.vlgmr.msra.gmra.mrb[0].mxu0 %vm672_vm1, %v660_v6 }
  0x2c   : > { %879 = vmatprep.mubr.bf16.mxu0 %v3879_v0 }
  0x9f   : > { %v665_v7 = vpop.permute.xlu0 %664 }
  0xfe   : > { %v717_v8 = vpop.f32.mrb[0].mxu0 }
  0xff   : > { %v718_v9 = vadd.f32 %v717_v8, %v665_v7  ;;  %v719_v10 = vpop.f32.mrb[1].mxu0 }
 0x100   : > { %v720_v11 = vadd.f32 %v719_v10, %v665_v7  ;;  %v721_v12 = vpop.f32.mrb[2].mxu0 }
 0x101   : > { %v724_v13 = vsub.f32 0.0, %v718_v9  ;;  %v722_v14 = vpop.f32.mrb[3].mxu0 }
 0x102   : > { %v725_v15 = vsub.f32 0.0, %v720_v11 }
 0x103   : > { %v726_v16 = vmul.f32 1.442695, %v724_v13 }
 0x104   : > { %v728_v17 = vmul.f32 1.442695, %v725_v15 }
 0x105   : > { %3751 = vpow2.f32 %v726_v16 }
 0x106   : > { %3753 = vpow2.f32 %v728_v17 }
 0x10f   : > { %v3752_v18 = vpop.eup %3751 }
 0x110   : > { %v3754_v19 = vpop.eup %3753  ;;  %v730_v20 = vadd.f32 1.0, %v3752_v18 }
 0x111   : > { %v731_v21 = vadd.f32 1.0, %v3754_v19 }
 0x112   : > { %3755 = vrcp.f32 %v730_v20 }
 0x113   : > { %3757 = vrcp.f32 %v731_v21 }
 0x11c   : > { %v3756_v22 = vpop.eup %3755 }
 0x11d   : > { %v3758_v23 = vpop.eup %3757  ;;  %v4071_v24 = vmul.f32 %v3756_v22, %v718_v9 }
 0x11e   : > { %v4073_v25 = vmul.f32 %v3758_v23, %v720_v11 }
 0x11f   : > { %762 = vrot.lane.b32.xlu0 %v4071_v24, %s4870_s26 }
 0x120   : > { %764 = vrot.lane.b32.xlu1 %v4073_v25, %s4870_s26 }
 0x123   : > { %738 = vrot.lane.b32.xlu0 %v4073_v25, %s4866_s29 }
 0x124   : > { %736 = vrot.lane.b32.xlu1 %v4071_v24, %s4866_s29  ;;  %s4894_s29 = sld [smem:[#allocation9_spill]] }
 0x127   : > { %890 = vrot.lane.b32.xlu0 %v4073_v25, %s4864_s30 }
 0x128   : > { %888 = vrot.lane.b32.xlu1 %v4071_v24, %s4864_s30  ;;  %s4897_s30 = smov 15  }
 0x12a   : > { %v3573_v30 = vld [vmem:[%s4894_s29 + $0x2] sm:$0x3]  ;;  %v745_v36 = vld [vmem:[%s4894_s29] sm:$0x3]  ;;  %v3587_v40 = vld [vmem:[%s4894_s29 + $0x8] sm:$0x3] }
 0x12b   : > { %968 = vrot.lane.b32.xlu0 %v4073_v25, %s4860_s28  ;;  %v4121_v33 = vrot.slane %v3573_v30, %v4115_v31  ;;  %v4124_v34 = vrot.slane %v3573_v30, %v4117_v32  ;;  %v4139_v42 = vrot.slane %v745_v36, %v4115_v31  ;;  %v4142_v43 = vrot.slane %v745_v36, %v4117_v32  ;;  %v3579_v45 = vld [vmem:[%s4894_s29 + $0x4] sm:$0x3]  ;;  %v3583_v59 = vld [vmem:[%s4894_s29 + $0x6] sm:$0x3]  ;;  %v3591_v12 = vld [vmem:[%s4894_s29 + $0xa] sm:$0x3] }
 0x12c   : > { %966 = vrot.lane.b32.xlu1 %v4071_v24, %s4860_s28  ;;  %s4893_s28 = sld [smem:[#allocation13_spill]]  ;;  %v4149_v50 = vrot.slane %v3587_v40, %v4117_v32  ;;  %v4152_v51 = vrot.slane %v3587_v40, %v4115_v31  ;;  %v4160_v54 = vrot.slane %v3579_v45, %v4115_v31  ;;  %v4167_v58 = vrot.slane %v3579_v45, %v4117_v32 }
 0x12d   : > { %v4183_v7 = vrot.slane %v3583_v59, %v4115_v31  ;;  %v4186_v8 = vrot.slane %v3583_v59, %v4117_v32  ;;  %v4208_v22 = vrot.slane %v3591_v12, %v4115_v31  ;;  %v4211_v23 = vrot.slane %v3591_v12, %v4117_v32 }
 0x12e   : > { %v1057_v2 = vmul.f32 %v4152_v51, %v4071_v24  ;;  %v1058_v13 = vmul.f32 %v4149_v50, %v4073_v25 }
 0x12f   : > { %1117 = vrot.lane.b32.xlu0 %v4073_v25, %s4858_s0 }
 0x130   : > { %1115 = vrot.lane.b32.xlu1 %v4071_v24, %s4858_s0  ;;  %v1059_v19 = vpack.c.bf16 %v1057_v2, %v1057_v2  ;;  %v1060_v30 = vpack.c.bf16 %v1058_v13, %v1058_v13  ;;  %s4896_s0 = smov 17  }
 0x132   : > { %v1427_v26 = vld [vmem:[%s4893_s28] sm:$0xff]  ;;  %s4895_s28 = sld [smem:[#allocation12_spill]] }
 0x133   : > { %1195 = vrot.lane.b32.xlu0 %v4073_v25, %s4862_s4 }
 0x134   : > { %1193 = vrot.lane.b32.xlu1 %v4071_v24, %s4862_s4  ;;  %s4898_s4 = smov 1  }
 0x137   : > { %1273 = vrot.lane.b32.xlu0 %v4073_v25, %s4874_s1 }
 0x138   : > { %1271 = vrot.lane.b32.xlu1 %v4071_v24, %s4874_s1  ;;  %v3574_v61 = vld [vmem:[%s4895_s28 + $0x4] sm:$0xf]  ;;  %v761_v15 = vld [vmem:[%s4895_s28] sm:$0xf] }
 0x13b   : > { %1351 = vrot.lane.b32.xlu0 %v4073_v25, %s4868_s24 }
 0x13c   : > { %1349 = vrot.lane.b32.xlu1 %v4071_v24, %s4868_s24  ;;  %s4900_s24 = smov 113  }
 0x140   : > { %1430 = vperm.xlu1 %3748, %v1427_v26  }
 0x191   : > { %v763_v35 = vpop.permute.xlu0 %762 }
 0x192   : > { %v765_v37 = vpop.permute.xlu1 %764 }
 0x193   : > { %v767_v38 = vsel %vm766_vm2, %v763_v35, %v765_v37  ;;  %v768_v39 = vsel %vm766_vm2, %v765_v37, %v763_v35  ;;  %v3595_v35 = vld [vmem:[%s4894_s29 + $0xc] sm:$0x3]  ;;  %v3580_v37 = vld [vmem:[%s4895_s28 + $0x8] sm:$0xf] }
 0x194   : > { %v782_v41 = vmul.f32 %v4121_v33, %v768_v39  ;;  %v783_v44 = vmul.f32 %v4124_v34, %v767_v38 }
 0x195   : > { %v739_v46 = vpop.permute.xlu0 %738 }
 0x196   : > { %v737_v47 = vpop.permute.xlu1 %736  ;;  %v785_v48 = vpack.c.bf16 %v783_v44, %v783_v44  ;;  %v784_v49 = vpack.c.bf16 %v782_v41, %v782_v41  ;;  %v1067_v41 = vsel %vm676_vm0, %v1059_v19, 0 }
 0x197   : > { %v743_v52 = vsel %vm742_vm3, %v737_v47, %v739_v46  ;;  %v744_v53 = vsel %vm742_vm3, %v739_v46, %v737_v47  ;;  %v4233_v46 = vrot.slane %v3595_v35, %v4115_v31 }
 0x198   : > { %v757_v55 = vmul.f32 %v4139_v42, %v744_v53  ;;  %v758_v56 = vmul.f32 %v4142_v43, %v743_v52  ;;  %3575 = vmatprep.subr.msk.bf16.mxu1 %vm676_vm0, %v785_v48  ;;  %v792_v57 = vsel %vm676_vm0, %v784_v49, 0  ;;  %v4241_v52 = vrot.slane %v3595_v35, %v4117_v32  ;;  %v3599_v53 = vld [vmem:[%s4894_s29 + $0xe] sm:$0x3] }
 0x199   : > { %798 = vmatpush1.bf16.msra.mxu1 %v792_v57  ;;  %v891_v60 = vpop.permute.xlu0 %890 }
 0x19a   : > { %v759_v62 = vpack.c.bf16 %v757_v55, %v757_v55  ;;  %v760_v63 = vpack.c.bf16 %v758_v56, %v758_v56  ;;  %v889_v1 = vpop.permute.xlu1 %888  ;;  %v3584_v56 = vld [vmem:[%s4895_s28 + $0xc] sm:$0xf] }
 0x19b   : > { %v893_v4 = vsel %vm892_vm4, %v889_v1, %v891_v60  ;;  %v894_v6 = vsel %vm892_vm4, %v891_v60, %v889_v1 }
 0x19c   : > { %v908_v9 = vmul.f32 %v4160_v54, %v894_v6  ;;  %v909_v10 = vmul.f32 %v4167_v58, %v893_v4  ;;  %3576 = vmatmul.mubr.msk.bf16.vlgmr.msra.gmra.mrb[0].mxu1 %vm672_vm1, %v3574_v61  ;;  %3577 = vmatprep.subr.msk.bf16.mxu0 %vm676_vm0, %v760_v63  ;;  %v842_v11 = vsel %vm676_vm0, %v759_v62, 0  ;;  %v4256_v63 = vrot.slane %v3599_v53, %v4115_v31 }
 0x19d   : > { %848 = vmatpush1.bf16.msra.mxu0 %v842_v11  ;;  %v969_v14 = vpop.permute.xlu0 %968  ;;  %955 = vmatprep.mubr.bf16.mxu1 %v3879_v0  ;;  %v4264_v6 = vrot.slane %v3599_v53, %v4117_v32  ;;  %v3588_v11 = vld [vmem:[%s4895_s28 + $0x10] sm:$0xf] }
 0x19e   : > { %v910_v16 = vpack.c.bf16 %v908_v9, %v908_v9  ;;  %v911_v17 = vpack.c.bf16 %v909_v10, %v909_v10  ;;  %v967_v18 = vpop.permute.xlu1 %966  ;;  %v3603_v9 = vld [vmem:[%s4894_s29 + $0x10] sm:$0x3] }
 0x19f   : > { %v971_v20 = vsel %vm970_vm5, %v967_v18, %v969_v14  ;;  %v972_v21 = vsel %vm970_vm5, %v969_v14, %v967_v18 }
 0x1a0   : > { %v986_v26 = vmul.f32 %v4183_v7, %v972_v21  ;;  %v987_v27 = vmul.f32 %v4186_v8, %v971_v20  ;;  %3578 = vmatmul.mubr.msk.bf16.vlgmr.msra.gmra.mrb[4].mxu0 %vm672_vm1, %v761_v15  ;;  %3581 = vmatprep.subr.msk.bf16.mxu1 %vm676_vm0, %v911_v17  ;;  %v918_v28 = vsel %vm676_vm0, %v910_v16, 0  ;;  %v4279_v17 = vrot.slane %v3603_v9, %v4115_v31  ;;  %v3592_v31 = vld [vmem:[%s4895_s28 + $0x14] sm:$0xf] }
 0x1a1   : > { %924 = vmatpush1.bf16.msra.mxu1 %v918_v28  ;;  %v1118_v36 = vpop.permute.xlu0 %1117  ;;  %1033 = vmatprep.mubr.bf16.mxu0 %v3879_v0  ;;  %v4287_v21 = vrot.slane %v3603_v9, %v4117_v32 }
 0x1a2   : > { %v988_v38 = vpack.c.bf16 %v986_v26, %v986_v26  ;;  %v989_v39 = vpack.c.bf16 %v987_v27, %v987_v27  ;;  %v1116_v40 = vpop.permute.xlu1 %1115  ;;  %3589 = vmatprep.subr.msk.bf16.mxu1 %vm676_vm0, %v1060_v30 }
 0x1a3   : > { %v1120_v44 = vsel %vm1119_vm6, %v1116_v40, %v1118_v36  ;;  %v1121_v45 = vsel %vm1119_vm6, %v1118_v36, %v1116_v40 }
 0x1a4   : > { %v1135_v47 = vmul.f32 %v4208_v22, %v1120_v44  ;;  %v1136_v48 = vmul.f32 %v4211_v23, %v1121_v45  ;;  %3582 = vmatmul.mubr.msk.bf16.vlgmr.msra.gmra.mrb[4].mxu1 %vm672_vm1, %v3580_v37  ;;  %3585 = vmatprep.subr.msk.bf16.mxu0 %vm676_vm0, %v989_v39  ;;  %v996_v49 = vsel %vm676_vm0, %v988_v38, 0  ;;  %v3596_v39 = vld [vmem:[%s4895_s28 + $0x18] sm:$0xf]  ;;  %v3600_v45 = vld [vmem:[%s4895_s28 + $0x1c] sm:$0xf] }
 0x1a5   : > { %1002 = vmatpush1.bf16.msra.mxu0 %v996_v49  ;;  %v1196_v55 = vpop.permute.xlu0 %1195  ;;  %1073 = vmatpush1.bf16.msra.mxu1 %v1067_v41 }
 0x1a6   : > { %v1137_v57 = vpack.c.bf16 %v1135_v47, %v1135_v47  ;;  %v1138_v59 = vpack.c.bf16 %v1136_v48, %v1136_v48  ;;  %v1194_v60 = vpop.permute.xlu1 %1193  ;;  %1104 = vmatprep.mubr.bf16.mxu1 %v3879_v0  ;;  %v3604_v47 = vld [vmem:[%s4895_s28 + $0x20] sm:$0xf]  ;;  %s3888_s28 = smov [#allocation2]  }
 0x1a7   : > { %v1198_v61 = vsel %vm1197_vm7, %v1194_v60, %v1196_v55  ;;  %v1199_v62 = vsel %vm1197_vm7, %v1196_v55, %v1194_v60 }
 0x1a8   : > { %v1213_v1 = vmul.f32 %v4233_v46, %v1198_v61  ;;  %v1214_v2 = vmul.f32 %v4241_v52, %v1199_v62  ;;  %3586 = vmatmul.mubr.msk.bf16.vlgmr.msra.gmra.mrb[8].mxu0 %vm672_vm1, %v3584_v56  ;;  %3593 = vmatprep.subr.msk.bf16.mxu0 %vm676_vm0, %v1138_v59  ;;  %v1145_v4 = vsel %vm676_vm0, %v1137_v57, 0 }
 0x1a9   : > { %1151 = vmatpush1.bf16.msra.mxu0 %v1145_v4  ;;  %v1274_v10 = vpop.permute.xlu0 %1273  ;;  %1182 = vmatprep.mubr.bf16.mxu0 %v3879_v0 }
 0x1aa   : > { %v1215_v12 = vpack.c.bf16 %v1213_v1, %v1213_v1  ;;  %v1216_v13 = vpack.c.bf16 %v1214_v2, %v1214_v2  ;;  %v1272_v14 = vpop.permute.xlu1 %1271 }
 0x1ab   : > { %v1276_v15 = vsel %vm1275_vm8, %v1272_v14, %v1274_v10  ;;  %v1277_v16 = vsel %vm1275_vm8, %v1274_v10, %v1272_v14 }
 0x1ac   : > { %v1291_v18 = vmul.f32 %v4256_v63, %v1276_v15  ;;  %v1292_v19 = vmul.f32 %v4264_v6, %v1277_v16  ;;  %3590 = vmatmul.mubr.msk.bf16.vlgmr.msra.gmra.mrb[8].mxu1 %vm672_vm1, %v3588_v11  ;;  %3597 = vmatprep.subr.msk.bf16.mxu1 %vm676_vm0, %v1216_v13  ;;  %v1223_v20 = vsel %vm676_vm0, %v1215_v12, 0 }
 0x1ad   : > { %v1352_v26 = vpop.permute.xlu0 %1351  ;;  %1229 = vmatpush1.bf16.msra.mxu1 %v1223_v20  ;;  %1260 = vmatprep.mubr.bf16.mxu1 %v3879_v0 }
 0x1ae   : > { %v1293_v27 = vpack.c.bf16 %v1291_v18, %v1291_v18  ;;  %v1294_v28 = vpack.c.bf16 %v1292_v19, %v1292_v19  ;;  %v1350_v30 = vpop.permute.xlu1 %1349 }
 0x1af   : > { %v1354_v35 = vsel %vm1353_vm9, %v1350_v30, %v1352_v26  ;;  %v1355_v36 = vsel %vm1353_vm9, %v1352_v26, %v1350_v30 }
 0x1b0   : > { %v1369_v32 = vmul.f32 %v4279_v17, %v1354_v35  ;;  %v1370_v37 = vmul.f32 %v4287_v21, %v1355_v36  ;;  %3594 = vmatmul.mubr.msk.bf16.vlgmr.msra.gmra.mrb[12].mxu0 %vm672_vm1, %v3592_v31  ;;  %3601 = vmatprep.subr.msk.bf16.mxu0 %vm676_vm0, %v1294_v28  ;;  %v1301_v38 = vsel %vm676_vm0, %v1293_v27, 0 }
 0x1b1   : > { %1307 = vmatpush1.bf16.msra.mxu0 %v1301_v38  ;;  %1338 = vmatprep.mubr.bf16.mxu0 %v3879_v0 }
 0x1b2   : > { %v1371_v40 = vpack.c.bf16 %v1369_v32, %v1369_v32  ;;  %v1372_v41 = vpack.c.bf16 %v1370_v37, %v1370_v37 }
 0x1b4   : > { %3598 = vmatmul.mubr.msk.bf16.vlgmr.msra.gmra.mrb[12].mxu1 %vm672_vm1, %v3596_v39  ;;  %3605 = vmatprep.subr.msk.bf16.mxu1 %vm676_vm0, %v1372_v41  ;;  %v1379_v44 = vsel %vm676_vm0, %v1371_v40, 0 }
 0x1b5   : > { %1385 = vmatpush1.bf16.msra.mxu1 %v1379_v44  ;;  %1416 = vmatprep.mubr.bf16.mxu1 %v3879_v0 }
 0x1b8   : > { %3602 = vmatmul.mubr.msk.bf16.vlgmr.msra.gmra.mrb[16].mxu0 %vm672_vm1, %v3600_v45 }
 0x1b9   : > { %1511 = vmatprep.mubr.bf16.mxu0 %v3879_v0 }
 0x1bc   : > { %3606 = vmatmul.mubr.msk.bf16.vlgmr.msra.gmra.mrb[16].mxu1 %vm672_vm1, %v3604_v47 }
 0x1bd   : > { %1561 = vmatprep.mubr.bf16.mxu1 %v3879_v0 }
 0x26f   : > { %v831_v48 = vpop.f32.mrb[0].mxu1 }
 0x270   : > { %v833_v49 = vpop.f32.mrb[1].mxu1 }
 0x271   : > { %v835_v53 = vpop.f32.mrb[2].mxu1 }
 0x272   : > { %v836_v55 = vpop.f32.mrb[3].mxu1 }
 0x273   : > { %v881_v56 = vpop.f32.mrb[4].mxu0 }
 0x274   : > { %v882_v57 = vadd.f32 %v881_v56, %v831_v48  ;;  %v883_v59 = vpop.f32.mrb[5].mxu0 }
 0x275   : > { %v884_v60 = vadd.f32 %v883_v59, %v833_v49  ;;  %v885_v61 = vpop.f32.mrb[6].mxu0 }
 0x276   : > { %v886_v62 = vpop.f32.mrb[7].mxu0 }
 0x277   : > { %v957_v1 = vpop.f32.mrb[4].mxu1 }
 0x278   : > { %v964_v2 = vadd.f32 %v957_v1, %v882_v57  ;;  %v959_v4 = vpop.f32.mrb[5].mxu1 }
 0x279   : > { %v965_v9 = vadd.f32 %v959_v4, %v884_v60  ;;  %v961_v10 = vpop.f32.mrb[6].mxu1  ;;  %v1431_v60 = vpop.permute.xlu1 %1430 }
 0x27a   : > { %v962_v11 = vpop.f32.mrb[7].mxu1 }
 0x27b   : > { %v1035_v12 = vpop.f32.mrb[8].mxu0 }
 0x27c   : > { %v1042_v13 = vadd.f32 %v1035_v12, %v964_v2  ;;  %v1037_v14 = vpop.f32.mrb[9].mxu0 }
 0x27d   : > { %v1043_v15 = vadd.f32 %v1037_v14, %v965_v9  ;;  %v1039_v16 = vpop.f32.mrb[10].mxu0 }
 0x27e   : > { %v1040_v18 = vpop.f32.mrb[11].mxu0 }
 0x27f   : > { %v1106_v19 = vpop.f32.mrb[8].mxu1 }
 0x280   : > { %v1113_v20 = vadd.f32 %v1106_v19, %v1042_v13  ;;  %v1108_v26 = vpop.f32.mrb[9].mxu1 }
 0x281   : > { %v1114_v31 = vadd.f32 %v1108_v26, %v1043_v15  ;;  %v1110_v27 = vpop.f32.mrb[10].mxu1 }
 0x282   : > { %v1111_v28 = vpop.f32.mrb[11].mxu1 }
 0x283   : > { %v1184_v30 = vpop.f32.mrb[12].mxu0  ;;  %v2012_v28 = vld [vmem:[%s4902_s7] sm:$0xff]  ;;  %s4904_s7 = smov 16  }
 0x284   : > { %v1191_v35 = vadd.f32 %v1184_v30, %v1113_v20  ;;  %v1186_v36 = vpop.f32.mrb[13].mxu0 }
 0x285   : > { %v1192_v32 = vadd.f32 %v1186_v36, %v1114_v31  ;;  %v1188_v37 = vpop.f32.mrb[14].mxu0 }
 0x286   : > { %v1189_v38 = vpop.f32.mrb[15].mxu0 }
 0x287   : > { %v1262_v39 = vpop.f32.mrb[12].mxu1 }
 0x288   : > { %v1269_v40 = vadd.f32 %v1262_v39, %v1191_v35  ;;  %v1264_v41 = vpop.f32.mrb[13].mxu1 }
 0x289   : > { %v1270_v44 = vadd.f32 %v1264_v41, %v1192_v32  ;;  %v1266_v45 = vpop.f32.mrb[14].mxu1 }
 0x28a   : > { %v1267_v47 = vpop.f32.mrb[15].mxu1 }
 0x28b   : > { %v1340_v48 = vpop.f32.mrb[16].mxu0 }
 0x28c   : > { %v1347_v49 = vadd.f32 %v1340_v48, %v1269_v40  ;;  %v1342_v53 = vpop.f32.mrb[17].mxu0 }
 0x28d   : > { %v1348_v55 = vadd.f32 %v1342_v53, %v1270_v44  ;;  %v1344_v56 = vpop.f32.mrb[18].mxu0 }
 0x28e   : > { %v1345_v57 = vpop.f32.mrb[19].mxu0  ;;  %v3607_v56 = vld [vmem:[%s4903_s6 + $0x4] sm:$0xf] }
 0x28f   : > { %v1418_v59 = vpop.f32.mrb[16].mxu1 }
 0x290   : > { %v1425_v61 = vadd.f32 %v1418_v59, %v1347_v49  ;;  %v1420_v62 = vpop.f32.mrb[17].mxu1 }
 0x291   : > { %v1426_v1 = vadd.f32 %v1420_v62, %v1348_v55  ;;  %v1422_v2 = vpop.f32.mrb[18].mxu1 }
 0x292   : > { %v1433_v4 = vadd.f32 %v1431_v60, %v1425_v61  ;;  %v1423_v9 = vpop.f32.mrb[19].mxu1 }
 0x293   : > { %v1434_v10 = vadd.f32 %v1431_v60, %v1426_v1 }
 0x294   : > { %v1435_v11 = vsub.f32 0.0, %v1433_v4 }
 0x295   : > { %v1436_v12 = vsub.f32 0.0, %v1434_v10 }
 0x296   : > { %v1437_v13 = vmul.f32 1.442695, %v1435_v11 }
 0x297   : > { %v1439_v14 = vmul.f32 1.442695, %v1436_v12  ;;  %v1457_v12 = vld [vmem:[%s4903_s6] sm:$0xf] }
 0x298   : > { %3759 = vpow2.f32 %v1437_v13 }
 0x299   : > { %3761 = vpow2.f32 %v1439_v14 }
 0x2a2   : > { %v3760_v15 = vpop.eup %3759 }
 0x2a3   : > { %v3762_v16 = vpop.eup %3761  ;;  %v1441_v18 = vadd.f32 1.0, %v3760_v15 }
 0x2a4   : > { %v1442_v19 = vadd.f32 1.0, %v3762_v16 }
 0x2a5   : > { %3763 = vrcp.f32 %v1441_v18 }
 0x2a6   : > { %3765 = vrcp.f32 %v1442_v19 }
 0x2af   : > { %v3764_v20 = vpop.eup %3763 }
 0x2b0   : > { %v3766_v26 = vpop.eup %3765  ;;  %v1445_v31 = vmul.f32 %v3764_v20, %v1433_v4 }
 0x2b1   : > { %v1446_v27 = vmul.f32 %v3766_v26, %v1434_v10 }
 0x2b2   : > { %1458 = vrot.lane.b32.xlu0 %v1445_v31, %s4870_s26  ;;  %v1698_v1 = vmul.f32 %v1445_v31, %v4152_v51 }
 0x2b3   : > { %1460 = vrot.lane.b32.xlu1 %v1446_v27, %s4870_s26  ;;  %s4901_s26 = smov 111   ;;  %v1699_v10 = vmul.f32 %v1446_v27, %v4149_v50 }
 0x2b4   : > { %v1700_v19 = vpack.c.bf16 %v1698_v1, %v1698_v1 }
 0x2b6   : > { %1447 = vrot.lane.b32.xlu0 %v1445_v31, %s4896_s0 }
 0x2b7   : > { %1449 = vrot.lane.b32.xlu1 %v1446_v27, %s4896_s0 }
 0x2ba   : > { %1570 = vrot.lane.b32.xlu0 %v1445_v31, %s4897_s30 }
 0x2bb   : > { %1572 = vrot.lane.b32.xlu1 %v1446_v27, %s4897_s30 }
 0x2be   : > { %1634 = vrot.lane.b32.xlu0 %v1445_v31, %s4898_s4 }
 0x2bf   : > { %1636 = vrot.lane.b32.xlu1 %v1446_v27, %s4898_s4 }
 0x2c2   : > { %1756 = vrot.lane.b32.xlu0 %v1445_v31, %s4899_s23 }
 0x2c3   : > { %1758 = vrot.lane.b32.xlu1 %v1446_v27, %s4899_s23 }
 0x2c6   : > { %1820 = vrot.lane.b32.xlu0 %v1445_v31, %s4900_s24 }
 0x2c7   : > { %1822 = vrot.lane.b32.xlu1 %v1446_v27, %s4900_s24 }
 0x2ca   : > { %1884 = vrot.lane.b32.xlu0 %v1445_v31, %s4874_s1 }
 0x2cb   : > { %1886 = vrot.lane.b32.xlu1 %v1446_v27, %s4874_s1  ;;  %s4905_s1 = smov 112  }
 0x2ce   : > { %1948 = vrot.lane.b32.xlu0 %v1445_v31, %s4901_s26 }
 0x2cf   : > { %1950 = vrot.lane.b32.xlu1 %v1446_v27, %s4901_s26  ;;  %v1701_v27 = vpack.c.bf16 %v1699_v10, %v1699_v10 }
 0x2d2   : > { %2015 = vperm.xlu0 %3747, %v2012_v28  }
 0x324   : > { %v1459_v30 = vpop.permute.xlu0 %1458 }
 0x325   : > { %v1461_v35 = vpop.permute.xlu1 %1460 }
 0x326   : > { %v1462_v36 = vsel %vm766_vm2, %v1459_v30, %v1461_v35  ;;  %v1463_v32 = vsel %vm766_vm2, %v1461_v35, %v1459_v30  ;;  %v3612_v30 = vld [vmem:[%s4903_s6 + $0x8] sm:$0xf] }
 0x327   : > { %v1464_v37 = vmul.f32 %v1463_v32, %v4121_v33  ;;  %v1465_v38 = vmul.f32 %v1462_v36, %v4124_v34 }
 0x328   : > { %v1448_v39 = vpop.permute.xlu0 %1447 }
 0x329   : > { %v1466_v40 = vpack.c.bf16 %v1464_v37, %v1464_v37  ;;  %v1467_v41 = vpack.c.bf16 %v1465_v38, %v1465_v38  ;;  %v1450_v44 = vpop.permute.xlu1 %1449 }
 0x32a   : > { %v1451_v45 = vsel %vm742_vm3, %v1448_v39, %v1450_v44  ;;  %v1452_v47 = vsel %vm742_vm3, %v1450_v44, %v1448_v39  ;;  %v1708_v44 = vsel %vm676_vm0, %v1700_v19, 0 }
 0x32b   : > { %v1453_v48 = vmul.f32 %v1452_v47, %v4139_v42  ;;  %v1454_v49 = vmul.f32 %v1451_v45, %v4142_v43  ;;  %3608 = vmatprep.subr.msk.bf16.mxu0 %vm676_vm0, %v1467_v41  ;;  %v1474_v53 = vsel %vm676_vm0, %v1466_v40, 0  ;;  %v3615_v47 = vld [vmem:[%s4903_s6 + $0xc] sm:$0xf] }
 0x32c   : > { %v1571_v55 = vpop.permute.xlu0 %1570  ;;  %1480 = vmatpush1.bf16.msra.mxu0 %v1474_v53 }
 0x32d   : > { %v1455_v57 = vpack.c.bf16 %v1453_v48, %v1453_v48  ;;  %v1456_v59 = vpack.c.bf16 %v1454_v49, %v1454_v49  ;;  %v1573_v60 = vpop.permute.xlu1 %1572 }
 0x32e   : > { %v1574_v61 = vsel %vm892_vm4, %v1571_v55, %v1573_v60  ;;  %v1575_v62 = vsel %vm892_vm4, %v1573_v60, %v1571_v55 }
 0x32f   : > { %v1576_v2 = vmul.f32 %v1575_v62, %v4160_v54  ;;  %v1577_v4 = vmul.f32 %v1574_v61, %v4167_v58  ;;  %3609 = vmatmul.mubr.msk.bf16.vlgmr.msra.gmra.mrb[20].mxu0 %vm672_vm1, %v3607_v56  ;;  %3610 = vmatprep.subr.msk.bf16.mxu1 %vm676_vm0, %v1456_v59  ;;  %v1524_v9 = vsel %vm676_vm0, %v1455_v57, 0  ;;  %v3618_v62 = vld [vmem:[%s4903_s6 + $0x10] sm:$0xf] }
 0x330   : > { %v1635_v11 = vpop.permute.xlu0 %1634  ;;  %1530 = vmatpush1.bf16.msra.mxu1 %v1524_v9  ;;  %1623 = vmatprep.mubr.bf16.mxu0 %v3879_v0 }
 0x331   : > { %v1578_v13 = vpack.c.bf16 %v1576_v2, %v1576_v2  ;;  %v1579_v14 = vpack.c.bf16 %v1577_v4, %v1577_v4  ;;  %v1637_v15 = vpop.permute.xlu1 %1636 }
 0x332   : > { %v1638_v16 = vsel %vm970_vm5, %v1635_v11, %v1637_v15  ;;  %v1639_v18 = vsel %vm970_vm5, %v1637_v15, %v1635_v11  ;;  %v3621_v15 = vld [vmem:[%s4903_s6 + $0x14] sm:$0xf] }
 0x333   : > { %v1640_v20 = vmul.f32 %v1639_v18, %v4183_v7  ;;  %v1641_v26 = vmul.f32 %v1638_v16, %v4186_v8  ;;  %3611 = vmatmul.mubr.msk.bf16.vlgmr.msra.gmra.mrb[20].mxu1 %vm672_vm1, %v1457_v12  ;;  %3613 = vmatprep.subr.msk.bf16.mxu0 %vm676_vm0, %v1579_v14  ;;  %v1586_v31 = vsel %vm676_vm0, %v1578_v13, 0 }
 0x334   : > { %v1757_v28 = vpop.permute.xlu0 %1756  ;;  %1592 = vmatpush1.bf16.msra.mxu0 %v1586_v31  ;;  %1687 = vmatprep.mubr.bf16.mxu1 %v3879_v0 }
 0x335   : > { %v1642_v35 = vpack.c.bf16 %v1640_v20, %v1640_v20  ;;  %v1643_v36 = vpack.c.bf16 %v1641_v26, %v1641_v26  ;;  %v1759_v32 = vpop.permute.xlu1 %1758  ;;  %3619 = vmatprep.subr.msk.bf16.mxu0 %vm676_vm0, %v1701_v27 }
 0x336   : > { %v1760_v37 = vsel %vm1119_vm6, %v1757_v28, %v1759_v32  ;;  %v1761_v38 = vsel %vm1119_vm6, %v1759_v32, %v1757_v28 }
 0x337   : > { %v1762_v39 = vmul.f32 %v1760_v37, %v4208_v22  ;;  %v1763_v40 = vmul.f32 %v1761_v38, %v4211_v23  ;;  %3614 = vmatmul.mubr.msk.bf16.vlgmr.msra.gmra.mrb[24].mxu0 %vm672_vm1, %v3612_v30  ;;  %3616 = vmatprep.subr.msk.bf16.mxu1 %vm676_vm0, %v1643_v36  ;;  %v1650_v41 = vsel %vm676_vm0, %v1642_v35, 0  ;;  %v3624_v30 = vld [vmem:[%s4903_s6 + $0x18] sm:$0xf]  ;;  %v3627_v37 = vld [vmem:[%s4903_s6 + $0x1c] sm:$0xf] }
 0x338   : > { %v1821_v45 = vpop.permute.xlu0 %1820  ;;  %1656 = vmatpush1.bf16.msra.mxu1 %v1650_v41  ;;  %1714 = vmatpush1.bf16.msra.mxu0 %v1708_v44  ;;  %v3630_v38 = vld [vmem:[%s4903_s6 + $0x20] sm:$0xf]  ;;  %s3819_s6 = sshll.u32 %s3888_s28, 4  ;;  %s3820_s6 = int_to_ptr.vmem [resolvable:$false] %s3819_s6 }
 0x339   : > { %v1764_v48 = vpack.c.bf16 %v1762_v39, %v1762_v39  ;;  %v1765_v49 = vpack.c.bf16 %v1763_v40, %v1763_v40  ;;  %v1823_v53 = vpop.permute.xlu1 %1822  ;;  %1745 = vmatprep.mubr.bf16.mxu0 %v3879_v0 }
 0x33a   : > { %v1824_v55 = vsel %vm1197_vm7, %v1821_v45, %v1823_v53  ;;  %v1825_v56 = vsel %vm1197_vm7, %v1823_v53, %v1821_v45 }
 0x33b   : > { %v1826_v57 = vmul.f32 %v1824_v55, %v4233_v46  ;;  %v1827_v59 = vmul.f32 %v1825_v56, %v4241_v52  ;;  %3617 = vmatmul.mubr.msk.bf16.vlgmr.msra.gmra.mrb[24].mxu1 %vm672_vm1, %v3615_v47  ;;  %3622 = vmatprep.subr.msk.bf16.mxu1 %vm676_vm0, %v1765_v49  ;;  %v1772_v60 = vsel %vm676_vm0, %v1764_v48, 0 }
 0x33c   : > { %v1885_v61 = vpop.permute.xlu0 %1884  ;;  %1778 = vmatpush1.bf16.msra.mxu1 %v1772_v60  ;;  %1809 = vmatprep.mubr.bf16.mxu1 %v3879_v0 }
 0x33d   : > { %v1828_v1 = vpack.c.bf16 %v1826_v57, %v1826_v57  ;;  %v1829_v2 = vpack.c.bf16 %v1827_v59, %v1827_v59  ;;  %v1887_v4 = vpop.permute.xlu1 %1886 }
 0x33e   : > { %v1888_v9 = vsel %vm1275_vm8, %v1885_v61, %v1887_v4  ;;  %v1889_v10 = vsel %vm1275_vm8, %v1887_v4, %v1885_v61 }
 0x33f   : > { %v1890_v11 = vmul.f32 %v1888_v9, %v4256_v63  ;;  %v1891_v12 = vmul.f32 %v1889_v10, %v4264_v6  ;;  %3620 = vmatmul.mubr.msk.bf16.vlgmr.msra.gmra.mrb[28].mxu0 %vm672_vm1, %v3618_v62  ;;  %3625 = vmatprep.subr.msk.bf16.mxu0 %vm676_vm0, %v1829_v2  ;;  %v1836_v13 = vsel %vm676_vm0, %v1828_v1, 0 }
 0x340   : > { %v1949_v14 = vpop.permute.xlu0 %1948  ;;  %1842 = vmatpush1.bf16.msra.mxu0 %v1836_v13  ;;  %1873 = vmatprep.mubr.bf16.mxu0 %v3879_v0 }
 0x341   : > { %v1892_v16 = vpack.c.bf16 %v1890_v11, %v1890_v11  ;;  %v1893_v18 = vpack.c.bf16 %v1891_v12, %v1891_v12  ;;  %v1951_v19 = vpop.permute.xlu1 %1950 }
 0x342   : > { %v1952_v20 = vsel %vm1353_vm9, %v1949_v14, %v1951_v19  ;;  %v1953_v26 = vsel %vm1353_vm9, %v1951_v19, %v1949_v14 }
 0x343   : > { %v1954_v31 = vmul.f32 %v1952_v20, %v4279_v17  ;;  %v1955_v27 = vmul.f32 %v1953_v26, %v4287_v21  ;;  %3623 = vmatmul.mubr.msk.bf16.vlgmr.msra.gmra.mrb[28].mxu1 %vm672_vm1, %v3621_v15  ;;  %3628 = vmatprep.subr.msk.bf16.mxu1 %vm676_vm0, %v1893_v18  ;;  %v1900_v28 = vsel %vm676_vm0, %v1892_v16, 0 }
 0x344   : > { %1906 = vmatpush1.bf16.msra.mxu1 %v1900_v28  ;;  %1937 = vmatprep.mubr.bf16.mxu1 %v3879_v0 }
 0x345   : > { %v1956_v35 = vpack.c.bf16 %v1954_v31, %v1954_v31  ;;  %v1957_v36 = vpack.c.bf16 %v1955_v27, %v1955_v27 }
 0x347   : > { %3626 = vmatmul.mubr.msk.bf16.vlgmr.msra.gmra.mrb[32].mxu0 %vm672_vm1, %v3624_v30  ;;  %3631 = vmatprep.subr.msk.bf16.mxu0 %vm676_vm0, %v1957_v36  ;;  %v1964_v32 = vsel %vm676_vm0, %v1956_v35, 0 }
 0x348   : > { %1970 = vmatpush1.bf16.msra.mxu0 %v1964_v32  ;;  %2001 = vmatprep.mubr.bf16.mxu0 %v3879_v0 }
 0x34b   : > { %3629 = vmatmul.mubr.msk.bf16.vlgmr.msra.gmra.mrb[32].mxu1 %vm672_vm1, %v3627_v37 }
 0x34c   : > { %2098 = vmatprep.mubr.bf16.mxu1 %v3879_v0 }
 0x34f   : > { %3632 = vmatmul.mubr.msk.bf16.vlgmr.msra.gmra.mrb[36].mxu0 %vm672_vm1, %v3630_v38 }
 0x350   : > { %2148 = vmatprep.mubr.bf16.mxu0 %v3879_v0 }
 0x402   : > { %v1513_v39 = vpop.f32.mrb[20].mxu0 }
 0x403   : > { %v1515_v40 = vpop.f32.mrb[21].mxu0 }
 0x404   : > { %v1517_v41 = vpop.f32.mrb[22].mxu0 }
 0x405   : > { %v1518_v44 = vpop.f32.mrb[23].mxu0 }
 0x406   : > { %v1563_v45 = vpop.f32.mrb[20].mxu1 }
 0x407   : > { %v1564_v47 = vadd.f32 %v1563_v45, %v1513_v39  ;;  %v1565_v48 = vpop.f32.mrb[21].mxu1 }
 0x408   : > { %v1566_v49 = vadd.f32 %v1565_v48, %v1515_v40  ;;  %v1567_v53 = vpop.f32.mrb[22].mxu1 }
 0x409   : > { %v1568_v55 = vpop.f32.mrb[23].mxu1 }
 0x40a   : > { %v1625_v56 = vpop.f32.mrb[24].mxu0  ;;  %v2016_v55 = vpop.permute.xlu0 %2015 }
 0x40b   : > { %v1632_v57 = vadd.f32 %v1625_v56, %v1564_v47  ;;  %v1627_v59 = vpop.f32.mrb[25].mxu0 }
 0x40c   : > { %v1633_v60 = vadd.f32 %v1627_v59, %v1566_v49  ;;  %v1629_v61 = vpop.f32.mrb[26].mxu0 }
 0x40d   : > { %v1630_v62 = vpop.f32.mrb[27].mxu0 }
 0x40e   : > { %v1689_v1 = vpop.f32.mrb[24].mxu1 }
 0x40f   : > { %v1696_v2 = vadd.f32 %v1689_v1, %v1632_v57  ;;  %v1691_v4 = vpop.f32.mrb[25].mxu1 }
 0x410   : > { %v1697_v9 = vadd.f32 %v1691_v4, %v1633_v60  ;;  %v1693_v10 = vpop.f32.mrb[26].mxu1 }
 0x411   : > { %v1694_v11 = vpop.f32.mrb[27].mxu1 }
 0x412   : > { %v1747_v12 = vpop.f32.mrb[28].mxu0 }
 0x413   : > { %v1754_v13 = vadd.f32 %v1747_v12, %v1696_v2  ;;  %v1749_v14 = vpop.f32.mrb[29].mxu0 }
 0x414   : > { %v1755_v15 = vadd.f32 %v1749_v14, %v1697_v9  ;;  %v1751_v16 = vpop.f32.mrb[30].mxu0 }
 0x415   : > { %v1752_v18 = vpop.f32.mrb[31].mxu0 }
 0x416   : > { %v1811_v19 = vpop.f32.mrb[28].mxu1 }
 0x417   : > { %v1818_v20 = vadd.f32 %v1811_v19, %v1754_v13  ;;  %v1813_v26 = vpop.f32.mrb[29].mxu1 }
 0x418   : > { %v1819_v31 = vadd.f32 %v1813_v26, %v1755_v15  ;;  %v1815_v27 = vpop.f32.mrb[30].mxu1 }
 0x419   : > { %v1816_v28 = vpop.f32.mrb[31].mxu1 }
 0x41a   : > { %v1875_v30 = vpop.f32.mrb[32].mxu0 }
 0x41b   : > { %v1882_v35 = vadd.f32 %v1875_v30, %v1818_v20  ;;  %v1877_v36 = vpop.f32.mrb[33].mxu0 }
 0x41c   : > { %v1883_v32 = vadd.f32 %v1877_v36, %v1819_v31  ;;  %v1879_v37 = vpop.f32.mrb[34].mxu0 }
 0x41d   : > { %v1880_v38 = vpop.f32.mrb[35].mxu0 }
 0x41e   : > { %v1939_v39 = vpop.f32.mrb[32].mxu1 }
 0x41f   : > { %v1946_v40 = vadd.f32 %v1939_v39, %v1882_v35  ;;  %v1941_v41 = vpop.f32.mrb[33].mxu1 }
 0x420   : > { %v1947_v44 = vadd.f32 %v1941_v41, %v1883_v32  ;;  %v1943_v45 = vpop.f32.mrb[34].mxu1 }
 0x421   : > { %v1944_v47 = vpop.f32.mrb[35].mxu1  ;;  %v3633_v45 = vld [vmem:[%s4839_s8 + $0x4] sm:$0xf] }
 0x422   : > { %v2003_v48 = vpop.f32.mrb[36].mxu0 }
 0x423   : > { %v2010_v49 = vadd.f32 %v2003_v48, %v1946_v40  ;;  %v2005_v53 = vpop.f32.mrb[37].mxu0 }
 0x424   : > { %v2011_v56 = vadd.f32 %v2005_v53, %v1947_v44  ;;  %v2007_v57 = vpop.f32.mrb[38].mxu0 }
 0x425   : > { %v2018_v59 = vadd.f32 %v2016_v55, %v2010_v49  ;;  %v2008_v60 = vpop.f32.mrb[39].mxu0 }
 0x426   : > { %v2019_v61 = vadd.f32 %v2016_v55, %v2011_v56 }
 0x427   : > { %v2020_v62 = vsub.f32 0.0, %v2018_v59 }
 0x428   : > { %v2021_v1 = vsub.f32 0.0, %v2019_v61 }
 0x429   : > { %v2022_v2 = vmul.f32 1.442695, %v2020_v62 }
 0x42a   : > { %v2024_v4 = vmul.f32 1.442695, %v2021_v1  ;;  %v2044_v1 = vld [vmem:[%s4839_s8] sm:$0xf] }
 0x42b   : > { %3767 = vpow2.f32 %v2022_v2 }
 0x42c   : > { %3769 = vpow2.f32 %v2024_v4 }
 0x435   : > { %v3768_v9 = vpop.eup %3767 }
 0x436   : > { %v3770_v10 = vpop.eup %3769  ;;  %v2026_v11 = vadd.f32 1.0, %v3768_v9 }
 0x437   : > { %v2027_v12 = vadd.f32 1.0, %v3770_v10 }
 0x438   : > { %3771 = vrcp.f32 %v2026_v11 }
 0x439   : > { %3773 = vrcp.f32 %v2027_v12 }
 0x442   : > { %v3772_v13 = vpop.eup %3771 }
 0x443   : > { %v3774_v14 = vpop.eup %3773  ;;  %v2030_v15 = vmul.f32 %v3772_v13, %v2018_v59 }
 0x444   : > { %v2031_v16 = vmul.f32 %v3774_v14, %v2019_v61 }
 0x445   : > { %v4453_v18 = vadd.f32 %v2030_v15, %v4071_v24  ;;  %v2599_v24 = vld [vmem:[%s4906_s9] sm:$0xff]  ;;  %s3821_s9 = scalar_lea.vmem %s3820_s6, 512 }
 0x446   : > { %v4456_v19 = vadd.f32 %v2031_v16, %v4073_v25 }
 0x447   : > { %2045 = vrot.lane.b32.xlu1 %v4453_v18, %s4904_s7  ;;  %v2285_v56 = vmul.f32 %v4453_v18, %v4152_v51 }
 0x448   : > { %2047 = vrot.lane.b32.xlu0 %v4456_v19, %s4904_s7  ;;  %v2286_v61 = vmul.f32 %v4456_v19, %v4149_v50 }
 0x449   : > { %v2287_v12 = vpack.c.bf16 %v2285_v56, %v2285_v56 }
 0x44a   : > { %v2288_v16 = vpack.c.bf16 %v2286_v61, %v2286_v61 }
 0x44b   : > { %2034 = vrot.lane.b32.xlu1 %v4453_v18, %s4896_s0 }
 0x44c   : > { %2036 = vrot.lane.b32.xlu0 %v4456_v19, %s4896_s0 }
 0x44f   : > { %2157 = vrot.lane.b32.xlu1 %v4453_v18, %s4897_s30 }
 0x450   : > { %2159 = vrot.lane.b32.xlu0 %v4456_v19, %s4897_s30 }
 0x453   : > { %2221 = vrot.lane.b32.xlu1 %v4453_v18, %s4898_s4 }
 0x454   : > { %2223 = vrot.lane.b32.xlu0 %v4456_v19, %s4898_s4 }
 0x457   : > { %2343 = vrot.lane.b32.xlu1 %v4453_v18, %s4899_s23 }
 0x458   : > { %2345 = vrot.lane.b32.xlu0 %v4456_v19, %s4899_s23 }
 0x45b   : > { %2407 = vrot.lane.b32.xlu1 %v4453_v18, %s4900_s24 }
 0x45c   : > { %2409 = vrot.lane.b32.xlu0 %v4456_v19, %s4900_s24 }
 0x45f   : > { %2471 = vrot.lane.b32.xlu1 %v4453_v18, %s4905_s1 }
 0x460   : > { %2473 = vrot.lane.b32.xlu0 %v4456_v19, %s4905_s1 }
 0x463   : > { %2535 = vrot.lane.b32.xlu1 %v4453_v18, %s4901_s26 }
 0x464   : > { %2537 = vrot.lane.b32.xlu0 %v4456_v19, %s4901_s26 }
 0x467   : > { %2602 = vperm.xlu1 %3748, %v2599_v24  }
 0x4b9   : > { %v2046_v25 = vpop.permute.xlu1 %2045 }
 0x4ba   : > { %v2048_v20 = vpop.permute.xlu0 %2047 }
 0x4bb   : > { %v2049_v26 = vsel %vm766_vm2, %v2046_v25, %v2048_v20  ;;  %v2050_v31 = vsel %vm766_vm2, %v2048_v20, %v2046_v25  ;;  %v3638_v25 = vld [vmem:[%s4839_s8 + $0x8] sm:$0xf] }
 0x4bc   : > { %v2051_v27 = vmul.f32 %v2050_v31, %v4121_v33  ;;  %v2052_v28 = vmul.f32 %v2049_v26, %v4124_v34 }
 0x4bd   : > { %v2035_v30 = vpop.permute.xlu1 %2034 }
 0x4be   : > { %v2053_v35 = vpack.c.bf16 %v2051_v27, %v2051_v27  ;;  %v2054_v36 = vpack.c.bf16 %v2052_v28, %v2052_v28  ;;  %v2037_v32 = vpop.permute.xlu0 %2036 }
 0x4bf   : > { %v2038_v37 = vsel %vm742_vm3, %v2035_v30, %v2037_v32  ;;  %v2039_v38 = vsel %vm742_vm3, %v2037_v32, %v2035_v30  ;;  %v2295_v32 = vsel %vm676_vm0, %v2287_v12, 0 }
 0x4c0   : > { %v2040_v39 = vmul.f32 %v2039_v38, %v4139_v42  ;;  %v2041_v40 = vmul.f32 %v2038_v37, %v4142_v43  ;;  %3634 = vmatprep.subr.msk.bf16.mxu1 %vm676_vm0, %v2054_v36  ;;  %v2061_v41 = vsel %vm676_vm0, %v2053_v35, 0  ;;  %v3641_v38 = vld [vmem:[%s4839_s8 + $0xc] sm:$0xf] }
 0x4c1   : > { %2067 = vmatpush1.bf16.msra.mxu1 %v2061_v41  ;;  %v2158_v44 = vpop.permute.xlu1 %2157 }
 0x4c2   : > { %v2042_v47 = vpack.c.bf16 %v2040_v39, %v2040_v39  ;;  %v2043_v48 = vpack.c.bf16 %v2041_v40, %v2041_v40  ;;  %v2160_v49 = vpop.permute.xlu0 %2159 }
 0x4c3   : > { %v2161_v53 = vsel %vm892_vm4, %v2158_v44, %v2160_v49  ;;  %v2162_v55 = vsel %vm892_vm4, %v2160_v49, %v2158_v44 }
 0x4c4   : > { %v2163_v57 = vmul.f32 %v2162_v55, %v4160_v54  ;;  %v2164_v59 = vmul.f32 %v2161_v53, %v4167_v58  ;;  %3635 = vmatmul.mubr.msk.bf16.vlgmr.msra.gmra.mrb[36].mxu1 %vm672_vm1, %v3633_v45  ;;  %3636 = vmatprep.subr.msk.bf16.mxu0 %vm676_vm0, %v2043_v48  ;;  %v2111_v60 = vsel %vm676_vm0, %v2042_v47, 0  ;;  %v3644_v55 = vld [vmem:[%s4839_s8 + $0x10] sm:$0xf] }
 0x4c5   : > { %2117 = vmatpush1.bf16.msra.mxu0 %v2111_v60  ;;  %v2222_v62 = vpop.permute.xlu1 %2221  ;;  %2210 = vmatprep.mubr.bf16.mxu1 %v3879_v0 }
 0x4c6   : > { %v2165_v2 = vpack.c.bf16 %v2163_v57, %v2163_v57  ;;  %v2166_v4 = vpack.c.bf16 %v2164_v59, %v2164_v59  ;;  %v2224_v9 = vpop.permute.xlu0 %2223 }
 0x4c7   : > { %v2225_v10 = vsel %vm970_vm5, %v2222_v62, %v2224_v9  ;;  %v2226_v11 = vsel %vm970_vm5, %v2224_v9, %v2222_v62  ;;  %v3647_v9 = vld [vmem:[%s4839_s8 + $0x14] sm:$0xf] }
 0x4c8   : > { %v2227_v13 = vmul.f32 %v2226_v11, %v4183_v7  ;;  %v2228_v14 = vmul.f32 %v2225_v10, %v4186_v8  ;;  %3637 = vmatmul.mubr.msk.bf16.vlgmr.msra.gmra.mrb[40].mxu0 %vm672_vm1, %v2044_v1  ;;  %3639 = vmatprep.subr.msk.bf16.mxu1 %vm676_vm0, %v2166_v4  ;;  %v2173_v15 = vsel %vm676_vm0, %v2165_v2, 0 }
 0x4c9   : > { %2179 = vmatpush1.bf16.msra.mxu1 %v2173_v15  ;;  %v2344_v24 = vpop.permute.xlu1 %2343  ;;  %2274 = vmatprep.mubr.bf16.mxu0 %v3879_v0 }
 0x4ca   : > { %v2229_v20 = vpack.c.bf16 %v2227_v13, %v2227_v13  ;;  %v2230_v26 = vpack.c.bf16 %v2228_v14, %v2228_v14  ;;  %v2346_v31 = vpop.permute.xlu0 %2345  ;;  %3645 = vmatprep.subr.msk.bf16.mxu1 %vm676_vm0, %v2288_v16 }
 0x4cb   : > { %v2347_v27 = vsel %vm1119_vm6, %v2344_v24, %v2346_v31  ;;  %v2348_v28 = vsel %vm1119_vm6, %v2346_v31, %v2344_v24 }
 0x4cc   : > { %v2349_v30 = vmul.f32 %v2347_v27, %v4208_v22  ;;  %v2350_v35 = vmul.f32 %v2348_v28, %v4211_v23  ;;  %3640 = vmatmul.mubr.msk.bf16.vlgmr.msra.gmra.mrb[40].mxu1 %vm672_vm1, %v3638_v25  ;;  %3642 = vmatprep.subr.msk.bf16.mxu0 %vm676_vm0, %v2230_v26  ;;  %v2237_v36 = vsel %vm676_vm0, %v2229_v20, 0  ;;  %v3650_v25 = vld [vmem:[%s4839_s8 + $0x18] sm:$0xf]  ;;  %v3653_v27 = vld [vmem:[%s4839_s8 + $0x1c] sm:$0xf] }
 0x4cd   : > { %2243 = vmatpush1.bf16.msra.mxu0 %v2237_v36  ;;  %v2408_v37 = vpop.permute.xlu1 %2407  ;;  %2301 = vmatpush1.bf16.msra.mxu1 %v2295_v32  ;;  %v3656_v28 = vld [vmem:[%s4839_s8 + $0x20] sm:$0xf] }
 0x4ce   : > { %v2351_v39 = vpack.c.bf16 %v2349_v30, %v2349_v30  ;;  %v2352_v40 = vpack.c.bf16 %v2350_v35, %v2350_v35  ;;  %v2410_v41 = vpop.permute.xlu0 %2409  ;;  %2332 = vmatprep.mubr.bf16.mxu1 %v3879_v0 }
 0x4cf   : > { %v2411_v44 = vsel %vm1197_vm7, %v2408_v37, %v2410_v41  ;;  %v2412_v45 = vsel %vm1197_vm7, %v2410_v41, %v2408_v37 }
 0x4d0   : > { %v2413_v47 = vmul.f32 %v2411_v44, %v4233_v46  ;;  %v2414_v48 = vmul.f32 %v2412_v45, %v4241_v52  ;;  %3643 = vmatmul.mubr.msk.bf16.vlgmr.msra.gmra.mrb[44].mxu0 %vm672_vm1, %v3641_v38  ;;  %3648 = vmatprep.subr.msk.bf16.mxu0 %vm676_vm0, %v2352_v40  ;;  %v2359_v49 = vsel %vm676_vm0, %v2351_v39, 0 }
 0x4d1   : > { %2365 = vmatpush1.bf16.msra.mxu0 %v2359_v49  ;;  %v2472_v53 = vpop.permute.xlu1 %2471  ;;  %2396 = vmatprep.mubr.bf16.mxu0 %v3879_v0 }
 0x4d2   : > { %v2415_v56 = vpack.c.bf16 %v2413_v47, %v2413_v47  ;;  %v2416_v57 = vpack.c.bf16 %v2414_v48, %v2414_v48  ;;  %v2474_v59 = vpop.permute.xlu0 %2473 }
 0x4d3   : > { %v2475_v60 = vsel %vm1275_vm8, %v2472_v53, %v2474_v59  ;;  %v2476_v61 = vsel %vm1275_vm8, %v2474_v59, %v2472_v53 }
 0x4d4   : > { %v2477_v62 = vmul.f32 %v2475_v60, %v4256_v63  ;;  %v2478_v1 = vmul.f32 %v2476_v61, %v4264_v6  ;;  %3646 = vmatmul.mubr.msk.bf16.vlgmr.msra.gmra.mrb[44].mxu1 %vm672_vm1, %v3644_v55  ;;  %3651 = vmatprep.subr.msk.bf16.mxu1 %vm676_vm0, %v2416_v57  ;;  %v2423_v2 = vsel %vm676_vm0, %v2415_v56, 0 }
 0x4d5   : > { %v2536_v4 = vpop.permute.xlu1 %2535  ;;  %2429 = vmatpush1.bf16.msra.mxu1 %v2423_v2  ;;  %2460 = vmatprep.mubr.bf16.mxu1 %v3879_v0 }
 0x4d6   : > { %v2479_v10 = vpack.c.bf16 %v2477_v62, %v2477_v62  ;;  %v2480_v11 = vpack.c.bf16 %v2478_v1, %v2478_v1  ;;  %v2538_v12 = vpop.permute.xlu0 %2537 }
 0x4d7   : > { %v2539_v13 = vsel %vm1353_vm9, %v2536_v4, %v2538_v12  ;;  %v2540_v14 = vsel %vm1353_vm9, %v2538_v12, %v2536_v4 }
 0x4d8   : > { %v2541_v15 = vmul.f32 %v2539_v13, %v4279_v17  ;;  %v2542_v16 = vmul.f32 %v2540_v14, %v4287_v21  ;;  %3649 = vmatmul.mubr.msk.bf16.vlgmr.msra.gmra.mrb[48].mxu0 %vm672_vm1, %v3647_v9  ;;  %3654 = vmatprep.subr.msk.bf16.mxu0 %vm676_vm0, %v2480_v11  ;;  %v2487_v24 = vsel %vm676_vm0, %v2479_v10, 0 }
 0x4d9   : > { %2493 = vmatpush1.bf16.msra.mxu0 %v2487_v24  ;;  %2524 = vmatprep.mubr.bf16.mxu0 %v3879_v0 }
 0x4da   : > { %v2543_v20 = vpack.c.bf16 %v2541_v15, %v2541_v15  ;;  %v2544_v26 = vpack.c.bf16 %v2542_v16, %v2542_v16 }
 0x4dc   : > { %3652 = vmatmul.mubr.msk.bf16.vlgmr.msra.gmra.mrb[48].mxu1 %vm672_vm1, %v3650_v25  ;;  %3657 = vmatprep.subr.msk.bf16.mxu1 %vm676_vm0, %v2544_v26  ;;  %v2551_v31 = vsel %vm676_vm0, %v2543_v20, 0 }
 0x4dd   : > { %2557 = vmatpush1.bf16.msra.mxu1 %v2551_v31  ;;  %2588 = vmatprep.mubr.bf16.mxu1 %v3879_v0 }
 0x4e0   : > { %3655 = vmatmul.mubr.msk.bf16.vlgmr.msra.gmra.mrb[52].mxu0 %vm672_vm1, %v3653_v27 }
 0x4e1   : > { %2683 = vmatprep.mubr.bf16.mxu0 %v3879_v0 }
 0x4e4   : > { %3658 = vmatmul.mubr.msk.bf16.vlgmr.msra.gmra.mrb[52].mxu1 %vm672_vm1, %v3656_v28 }
 0x4e5   : > { %2733 = vmatprep.mubr.bf16.mxu1 %v3879_v0 }
 0x597   : > { %v2100_v30 = vpop.f32.mrb[36].mxu1 }
 0x598   : > { %v2102_v35 = vpop.f32.mrb[37].mxu1 }
 0x599   : > { %v2104_v36 = vpop.f32.mrb[38].mxu1 }
 0x59a   : > { %v2105_v32 = vpop.f32.mrb[39].mxu1 }
 0x59b   : > { %v2150_v37 = vpop.f32.mrb[40].mxu0 }
 0x59c   : > { %v2151_v38 = vadd.f32 %v2150_v37, %v2100_v30  ;;  %v2152_v39 = vpop.f32.mrb[41].mxu0 }
 0x59d   : > { %v2153_v40 = vadd.f32 %v2152_v39, %v2102_v35  ;;  %v2154_v41 = vpop.f32.mrb[42].mxu0 }
 0x59e   : > { %v2155_v44 = vpop.f32.mrb[43].mxu0 }
 0x59f   : > { %v2212_v45 = vpop.f32.mrb[40].mxu1  ;;  %v2603_v44 = vpop.permute.xlu1 %2602 }
 0x5a0   : > { %v2219_v47 = vadd.f32 %v2212_v45, %v2151_v38  ;;  %v2214_v48 = vpop.f32.mrb[41].mxu1 }
 0x5a1   : > { %v2220_v49 = vadd.f32 %v2214_v48, %v2153_v40  ;;  %v2216_v53 = vpop.f32.mrb[42].mxu1 }
 0x5a2   : > { %v2217_v55 = vpop.f32.mrb[43].mxu1 }
 0x5a3   : > { %v2276_v56 = vpop.f32.mrb[44].mxu0 }
 0x5a4   : > { %v2283_v57 = vadd.f32 %v2276_v56, %v2219_v47  ;;  %v2278_v59 = vpop.f32.mrb[45].mxu0 }
 0x5a5   : > { %v2284_v60 = vadd.f32 %v2278_v59, %v2220_v49  ;;  %v2280_v61 = vpop.f32.mrb[46].mxu0 }
 0x5a6   : > { %v2281_v62 = vpop.f32.mrb[47].mxu0 }
 0x5a7   : > { %v2334_v1 = vpop.f32.mrb[44].mxu1 }
 0x5a8   : > { %v2341_v2 = vadd.f32 %v2334_v1, %v2283_v57  ;;  %v2336_v4 = vpop.f32.mrb[45].mxu1 }
 0x5a9   : > { %v2342_v9 = vadd.f32 %v2336_v4, %v2284_v60  ;;  %v2338_v10 = vpop.f32.mrb[46].mxu1 }
 0x5aa   : > { %v2339_v11 = vpop.f32.mrb[47].mxu1 }
 0x5ab   : > { %v2398_v12 = vpop.f32.mrb[48].mxu0  ;;  %v3184_v11 = vld [vmem:[%s4842_s11] sm:$0xff] }
 0x5ac   : > { %v2405_v13 = vadd.f32 %v2398_v12, %v2341_v2  ;;  %v2400_v14 = vpop.f32.mrb[49].mxu0  ;;  %v3304_v12 = vld [vmem:[%s4845_s14] sm:$0xff] }
 0x5ad   : > { %v2406_v15 = vadd.f32 %v2400_v14, %v2342_v9  ;;  %v2402_v16 = vpop.f32.mrb[50].mxu0  ;;  %v3312_v14 = vld [vmem:[%s4846_s15] sm:$0xff] }
 0x5ae   : > { %v2403_v24 = vpop.f32.mrb[51].mxu0  ;;  %v3466_v16 = vld [vmem:[%s4851_s20] sm:$0xff] }
 0x5af   : > { %v2462_v25 = vpop.f32.mrb[48].mxu1 }
 0x5b0   : > { %v2469_v20 = vadd.f32 %v2462_v25, %v2405_v13  ;;  %v2464_v26 = vpop.f32.mrb[49].mxu1  ;;  %v3334_v13 = vld [vmem:[%s4847_s16] sm:$0xff] }
 0x5b1   : > { %v2470_v31 = vadd.f32 %v2464_v26, %v2406_v15  ;;  %v2466_v27 = vpop.f32.mrb[50].mxu1  ;;  %v3342_v15 = vld [vmem:[%s4848_s17] sm:$0xff] }
 0x5b2   : > { %v2467_v28 = vpop.f32.mrb[51].mxu1 }
 0x5b3   : > { %v2526_v30 = vpop.f32.mrb[52].mxu0 }
 0x5b4   : > { %v2533_v35 = vadd.f32 %v2526_v30, %v2469_v20  ;;  %v2528_v36 = vpop.f32.mrb[53].mxu0 }
 0x5b5   : > { %v2534_v32 = vadd.f32 %v2528_v36, %v2470_v31  ;;  %v2530_v37 = vpop.f32.mrb[54].mxu0 }
 0x5b6   : > { %v2531_v38 = vpop.f32.mrb[55].mxu0 }
 0x5b7   : > { %v2590_v39 = vpop.f32.mrb[52].mxu1 }
 0x5b8   : > { %v2597_v40 = vadd.f32 %v2590_v39, %v2533_v35  ;;  %v2592_v41 = vpop.f32.mrb[53].mxu1 }
 0x5b9   : > { %v2598_v45 = vadd.f32 %v2592_v41, %v2534_v32  ;;  %v2594_v47 = vpop.f32.mrb[54].mxu1 }
 0x5ba   : > { %v2605_v48 = vadd.f32 %v2603_v44, %v2597_v40  ;;  %v2595_v49 = vpop.f32.mrb[55].mxu1 }
 0x5bb   : > { %v2606_v53 = vadd.f32 %v2603_v44, %v2598_v45 }
 0x5bc   : > { %v2607_v55 = vsub.f32 0.0, %v2605_v48 }
 0x5bd   : > { %v2608_v56 = vsub.f32 0.0, %v2606_v53 }
 0x5be   : > { %v2609_v57 = vmul.f32 1.442695, %v2607_v55 }
 0x5bf   : > { %v2611_v59 = vmul.f32 1.442695, %v2608_v56 }
 0x5c0   : > { %3775 = vpow2.f32 %v2609_v57  ;;  %v2629_v57 = vld [vmem:[%s4841_s10] sm:$0xf] }
 0x5c1   : > { %3777 = vpow2.f32 %v2611_v59 }
 0x5ca   : > { %v3776_v60 = vpop.eup %3775 }
 0x5cb   : > { %v3778_v61 = vpop.eup %3777  ;;  %v2613_v62 = vadd.f32 1.0, %v3776_v60 }
 0x5cc   : > { %v2614_v1 = vadd.f32 1.0, %v3778_v61 }
 0x5cd   : > { %3779 = vrcp.f32 %v2613_v62 }
 0x5ce   : > { %3781 = vrcp.f32 %v2614_v1 }
 0x5d7   : > { %v3780_v2 = vpop.eup %3779 }
 0x5d8   : > { %v3782_v4 = vpop.eup %3781  ;;  %v2617_v9 = vmul.f32 %v3780_v2, %v2605_v48 }
 0x5d9   : > { %v2618_v10 = vmul.f32 %v3782_v4, %v2606_v53 }
 0x5da   : > { %2630 = vrot.lane.b32.xlu0 %v2617_v9, %s4904_s7 }
 0x5db   : > { %2632 = vrot.lane.b32.xlu1 %v2618_v10, %s4904_s7  ;;  %v2871_v55 = vmul.f32 %v2618_v10, %v4149_v50 }
 0x5dd   : > { %v2873_v2 = vpack.c.bf16 %v2871_v55, %v2871_v55  ;;  %v3682_v55 = vld [vmem:[%s4841_s10 + $0x20] sm:$0xf] }
 0x5de   : > { %2619 = vrot.lane.b32.xlu0 %v2617_v9, %s4896_s0 }
 0x5df   : > { %2621 = vrot.lane.b32.xlu1 %v2618_v10, %s4896_s0  ;;  %s648_s0 = sand.u32 1, %s3869_s25  }
 0x5e0   : > { %s3489_s29 = scalar_lea.sflag [#allocation3], %s648_s0 }
 0x5e2   : > { %2742 = vrot.lane.b32.xlu0 %v2617_v9, %s4897_s30 }
 0x5e3   : > { %2744 = vrot.lane.b32.xlu1 %v2618_v10, %s4897_s30  ;;  %s3566_s30 = sshll.u32 %s648_s0, 4 }
 0x5e6   : > { %2806 = vrot.lane.b32.xlu0 %v2617_v9, %s4898_s4 }
 0x5e7   : > { %2808 = vrot.lane.b32.xlu1 %v2618_v10, %s4898_s4  ;;  %s3698_s4 = sshll.u32 %s4020_s3, 8 }
 0x5ea   : > { %2928 = vrot.lane.b32.xlu0 %v2617_v9, %s4899_s23 }
 0x5eb   : > { %2930 = vrot.lane.b32.xlu1 %v2618_v10, %s4899_s23 }
 0x5ee   : > { %2992 = vrot.lane.b32.xlu0 %v2617_v9, %s4900_s24 }
 0x5ef   : > { %2994 = vrot.lane.b32.xlu1 %v2618_v10, %s4900_s24  ;;  %s650_s24 = scalar_lea.vmem [#allocation2], %s3566_s30 }
 0x5f0   : > { %s3503_s23 = sshll.u32 %s650_s24, 4  ;;  %s4791_s23 = int_to_ptr.vmem [resolvable:$true] %s3503_s23 }
 0x5f1   : > { %s3815_s3 = scalar_lea.vmem %s4791_s23, 256  ;;  %p3822_p0 = scmp.lt.s32.totalorder %s4791_s23, %s3820_s6 }
 0x5f2   : > { %3056 = vrot.lane.b32.xlu0 %v2617_v9, %s4905_s1  ;;  %p3816_p11 = scmp.ne.s32.totalorder %s4791_s23, %s3815_s3  ;;  %p3823_p1 = scmp.lt.s32.totalorder %s3821_s9, %s3815_s3 }
 0x5f3   : > { %3058 = vrot.lane.b32.xlu1 %v2618_v10, %s4905_s1  ;;  %s4789_s1 = scalar_lea.hbm %s4852_s21, %s3698_s4 }
 0x5f4   : > { %p3817_p12 = pnand %p3816_p11, %p4037_p5  ;;  %p3824_p2 = por %p3823_p1, %p3822_p0 }
 0x5f6   : > { %3120 = vrot.lane.b32.xlu0 %v2617_v9, %s4901_s26  ;;  %p3818_p13 = pneg %p3817_p12 }
 0x5f7   : > { %3122 = vrot.lane.b32.xlu1 %v2618_v10, %s4901_s26 }
 0x5f8   : > { %p3825_p3 = pnand %p3824_p2, %p3818_p13 }
 0x5fa   : > { %3187 = vperm.xlu0 %3747, %v3184_v11  }
 0x5fb   : > { %3307 = vperm.xlu1 %3748, %v3304_v12  }
 0x5fe   : > { %3337 = vperm.xlu0 %3747, %v3334_v13  }
 0x5ff   : > { %3315 = vperm.xlu1 %3748, %v3312_v14  }
 0x602   : > { %3345 = vperm.xlu0 %3747, %v3342_v15  }
 0x603   : > { %3469 = vperm.xlu1 %3748, %v3466_v16  }
 0x64c   : > { %v2631_v24 = vpop.permute.xlu0 %2630 }
 0x64d   : > { %v2633_v25 = vpop.permute.xlu1 %2632 }
 0x64e   : > { %v2634_v20 = vsel %vm766_vm2, %v2631_v24, %v2633_v25  ;;  %v2635_v26 = vsel %vm766_vm2, %v2633_v25, %v2631_v24  ;;  %v3667_v25 = vld [vmem:[%s4841_s10 + $0xc] sm:$0xf] }
 0x64f   : > { %v2636_v31 = vmul.f32 %v2635_v26, %v4121_v33  ;;  %v2637_v27 = vmul.f32 %v2634_v20, %v4124_v34  ;;  %v3659_v34 = vld [vmem:[%s4841_s10 + $0x4] sm:$0xf] }
 0x650   : > { %v2620_v28 = vpop.permute.xlu0 %2619 }
 0x651   : > { %v2638_v30 = vpack.c.bf16 %v2636_v31, %v2636_v31  ;;  %v2639_v35 = vpack.c.bf16 %v2637_v27, %v2637_v27  ;;  %v2622_v36 = vpop.permute.xlu1 %2621 }
 0x652   : > { %v2623_v32 = vsel %vm742_vm3, %v2620_v28, %v2622_v36  ;;  %v2624_v37 = vsel %vm742_vm3, %v2622_v36, %v2620_v28  ;;  %v3670_v36 = vld [vmem:[%s4841_s10 + $0x10] sm:$0xf] }
 0x653   : > { %v2625_v38 = vmul.f32 %v2624_v37, %v4139_v42  ;;  %v2626_v39 = vmul.f32 %v2623_v32, %v4142_v43  ;;  %3660 = vmatprep.subr.msk.bf16.mxu0 %vm676_vm0, %v2639_v35  ;;  %v2646_v33 = vsel %vm676_vm0, %v2638_v30, 0  ;;  %v2870_v43 = vmul.f32 %v2617_v9, %v4152_v51  ;;  %v3664_v9 = vld [vmem:[%s4841_s10 + $0x8] sm:$0xf] }
 0x654   : > { %v2743_v40 = vpop.permute.xlu0 %2742  ;;  %2652 = vmatpush1.bf16.msra.mxu0 %v2646_v33 }
 0x655   : > { %v2627_v41 = vpack.c.bf16 %v2625_v38, %v2625_v38  ;;  %v2628_v44 = vpack.c.bf16 %v2626_v39, %v2626_v39  ;;  %v2745_v45 = vpop.permute.xlu1 %2744  ;;  %v2872_v61 = vpack.c.bf16 %v2870_v43, %v2870_v43 }
 0x656   : > { %v2746_v47 = vsel %vm892_vm4, %v2743_v40, %v2745_v45  ;;  %v2747_v42 = vsel %vm892_vm4, %v2745_v45, %v2743_v40 }
 0x657   : > { %v2748_v48 = vmul.f32 %v2747_v42, %v4160_v54  ;;  %v2749_v49 = vmul.f32 %v2746_v47, %v4167_v58  ;;  %3661 = vmatmul.mubr.msk.bf16.vlgmr.msra.gmra.mrb[56].mxu0 %vm672_vm1, %v3659_v34  ;;  %3662 = vmatprep.subr.msk.bf16.mxu1 %vm676_vm0, %v2628_v44  ;;  %v2696_v53 = vsel %vm676_vm0, %v2627_v41, 0  ;;  %v2880_v16 = vsel %vm676_vm0, %v2872_v61, 0  ;;  %v3673_v41 = vld [vmem:[%s4841_s10 + $0x14] sm:$0xf] }
 0x658   : > { %v2807_v56 = vpop.permute.xlu0 %2806  ;;  %2702 = vmatpush1.bf16.msra.mxu1 %v2696_v53  ;;  %2795 = vmatprep.mubr.bf16.mxu0 %v3879_v0 }
 0x659   : > { %v2750_v51 = vpack.c.bf16 %v2748_v48, %v2748_v48  ;;  %v2751_v54 = vpack.c.bf16 %v2749_v49, %v2749_v49  ;;  %v2809_v59 = vpop.permute.xlu1 %2808  ;;  %v3676_v49 = vld [vmem:[%s4841_s10 + $0x18] sm:$0xf] }
 0x65a   : > { %v2810_v58 = vsel %vm970_vm5, %v2807_v56, %v2809_v59  ;;  %v2811_v60 = vsel %vm970_vm5, %v2809_v59, %v2807_v56  ;;  %v3259_v56 = vld [vmem:[%s4844_s13] sm:$0xf] }
 0x65b   : > { %v2812_v50 = vmul.f32 %v2811_v60, %v4183_v7  ;;  %v2813_v62 = vmul.f32 %v2810_v58, %v4186_v8  ;;  %3663 = vmatmul.mubr.msk.bf16.vlgmr.msra.gmra.mrb[56].mxu1 %vm672_vm1, %v2629_v57  ;;  %3665 = vmatprep.subr.msk.bf16.mxu0 %vm676_vm0, %v2751_v54  ;;  %v2758_v1 = vsel %vm676_vm0, %v2750_v51, 0 }
 0x65c   : > { %v2929_v4 = vpop.permute.xlu0 %2928  ;;  %2764 = vmatpush1.bf16.msra.mxu0 %v2758_v1  ;;  %2859 = vmatprep.mubr.bf16.mxu1 %v3879_v0 }
 0x65d   : > { %v2814_v10 = vpack.c.bf16 %v2812_v50, %v2812_v50  ;;  %v2815_v11 = vpack.c.bf16 %v2813_v62, %v2813_v62  ;;  %v2931_v7 = vpop.permute.xlu1 %2930  ;;  %3671 = vmatprep.subr.msk.bf16.mxu0 %vm676_vm0, %v2873_v2 }
 0x65e   : > { %v2932_v8 = vsel %vm1119_vm6, %v2929_v4, %v2931_v7  ;;  %v2933_v12 = vsel %vm1119_vm6, %v2931_v7, %v2929_v4 }
 0x65f   : > { %v2934_v13 = vmul.f32 %v2932_v8, %v4208_v22  ;;  %v2935_v14 = vmul.f32 %v2933_v12, %v4211_v23  ;;  %3666 = vmatmul.mubr.msk.bf16.vlgmr.msra.gmra.mrb[60].mxu0 %vm672_vm1, %v3664_v9  ;;  %3668 = vmatprep.subr.msk.bf16.mxu1 %vm676_vm0, %v2815_v11  ;;  %v2822_v15 = vsel %vm676_vm0, %v2814_v10, 0 }
 0x660   : > { %v2993_v24 = vpop.permute.xlu0 %2992  ;;  %2828 = vmatpush1.bf16.msra.mxu1 %v2822_v15  ;;  %2886 = vmatpush1.bf16.msra.mxu0 %v2880_v16 }
 0x661   : > { %v2936_v20 = vpack.c.bf16 %v2934_v13, %v2934_v13  ;;  %v2937_v26 = vpack.c.bf16 %v2935_v14, %v2935_v14  ;;  %v2995_v22 = vpop.permute.xlu1 %2994  ;;  %2917 = vmatprep.mubr.bf16.mxu0 %v3879_v0 }
 0x662   : > { %v2996_v23 = vsel %vm1197_vm7, %v2993_v24, %v2995_v22  ;;  %v2997_v31 = vsel %vm1197_vm7, %v2995_v22, %v2993_v24 }
 0x663   : > { %v2998_v27 = vmul.f32 %v2996_v23, %v4233_v46  ;;  %v2999_v28 = vmul.f32 %v2997_v31, %v4241_v52  ;;  %3669 = vmatmul.mubr.msk.bf16.vlgmr.msra.gmra.mrb[60].mxu1 %vm672_vm1, %v3667_v25  ;;  %3674 = vmatprep.subr.msk.bf16.mxu1 %vm676_vm0, %v2937_v26  ;;  %v2944_v30 = vsel %vm676_vm0, %v2936_v20, 0 }
 0x664   : > { %v3057_v35 = vpop.permute.xlu0 %3056  ;;  %2950 = vmatpush1.bf16.msra.mxu1 %v2944_v30  ;;  %2981 = vmatprep.mubr.bf16.mxu1 %v3879_v0 }
 0x665   : > { %v3000_v32 = vpack.c.bf16 %v2998_v27, %v2998_v27  ;;  %v3001_v37 = vpack.c.bf16 %v2999_v28, %v2999_v28  ;;  %v3059_v38 = vpop.permute.xlu1 %3058 }
 0x666   : > { %v3060_v46 = vsel %vm1275_vm8, %v3057_v35, %v3059_v38  ;;  %v3061_v52 = vsel %vm1275_vm8, %v3059_v38, %v3057_v35 }
 0x667   : > { %v3062_v39 = vmul.f32 %v3060_v46, %v4256_v63  ;;  %v3063_v33 = vmul.f32 %v3061_v52, %v4264_v6  ;;  %3672 = vmatmul.mubr.msk.bf16.vlgmr.msra.gmra.mrb[64].mxu0 %vm672_vm1, %v3670_v36  ;;  %3677 = vmatprep.subr.msk.bf16.mxu0 %vm676_vm0, %v3001_v37  ;;  %v3008_v40 = vsel %vm676_vm0, %v3000_v32, 0 }
 0x668   : > { %v3121_v34 = vpop.permute.xlu0 %3120  ;;  %3014 = vmatpush1.bf16.msra.mxu0 %v3008_v40  ;;  %3045 = vmatprep.mubr.bf16.mxu0 %v3879_v0 }
 0x669   : > { %v3064_v44 = vpack.c.bf16 %v3062_v39, %v3062_v39  ;;  %v3065_v45 = vpack.c.bf16 %v3063_v33, %v3063_v33  ;;  %v3123_v47 = vpop.permute.xlu1 %3122 }
 0x66a   : > { %v3124_v63 = vsel %vm1353_vm9, %v3121_v34, %v3123_v47  ;;  %v3125_v6 = vsel %vm1353_vm9, %v3123_v47, %v3121_v34 }
 0x66b   : > { %v3126_v42 = vmul.f32 %v3124_v63, %v4279_v17  ;;  %v3127_v43 = vmul.f32 %v3125_v6, %v4287_v21  ;;  %3675 = vmatmul.mubr.msk.bf16.vlgmr.msra.gmra.mrb[64].mxu1 %vm672_vm1, %v3673_v41  ;;  %3680 = vmatprep.subr.msk.bf16.mxu1 %vm676_vm0, %v3065_v45  ;;  %v3072_v48 = vsel %vm676_vm0, %v3064_v44, 0  ;;  %v3679_v21 = vld [vmem:[%s4841_s10 + $0x1c] sm:$0xf] }
 0x66c   : > { %3078 = vmatpush1.bf16.msra.mxu1 %v3072_v48  ;;  %3109 = vmatprep.mubr.bf16.mxu1 %v3879_v0 }
 0x66d   : > { %v3128_v53 = vpack.c.bf16 %v3126_v42, %v3126_v42  ;;  %v3129_v29 = vpack.c.bf16 %v3127_v43, %v3127_v43 }
 0x66f   : > { %3678 = vmatmul.mubr.msk.bf16.vlgmr.msra.gmra.mrb[68].mxu0 %vm672_vm1, %v3676_v49  ;;  %3683 = vmatprep.subr.msk.bf16.mxu0 %vm676_vm0, %v3129_v29  ;;  %v3136_v17 = vsel %vm676_vm0, %v3128_v53, 0 }
 0x670   : > { %3142 = vmatpush1.bf16.msra.mxu0 %v3136_v17  ;;  %3173 = vmatprep.mubr.bf16.mxu0 %v3879_v0 }
 0x671   : > { %3687 = vmatprep.subr.msk.bf16.mxu0 %vm676_vm0, %v4058_v3 }
 0x673   : > { %3681 = vmatmul.mubr.msk.bf16.vlgmr.msra.gmra.mrb[68].mxu1 %vm672_vm1, %v3679_v21 }
 0x674   : > { %3250 = vmatprep.mubr.bf16.mxu1 %v3879_v0 }
 0x677   : > { %3684 = vmatmul.mubr.msk.bf16.vlgmr.msra.gmra.mrb[72].mxu0 %vm672_vm1, %v3682_v55 }
 0x678   : > { %3264 = vmatpush1.bf16.msra.mxu0 %v4063_v5  ;;  %3295 = vmatprep.mubr.bf16.mxu0 %v3879_v0 }
 0x679   : > { %v3188_v40 = vpop.permute.xlu0 %3187 }
 0x67d   : > { %v3338_v49 = vpop.permute.xlu0 %3337 }
 0x67f   : > { %3688 = vmatmul.mubr.msk.bf16.vlgmr.msra.gmra.mrb[76].mxu0 %vm672_vm1, %v3259_v56 }
 0x680   : > { %3457 = vmatprep.mubr.bf16.mxu0 %v3879_v0 }
 0x72a   : > { %v2685_v3 = vpop.f32.mrb[56].mxu0 }
 0x72b   : > { %v2687_v57 = vpop.f32.mrb[57].mxu0 }
 0x72c   : > { %v2689_v51 = vpop.f32.mrb[58].mxu0 }
 0x72d   : > { %v2690_v54 = vpop.f32.mrb[59].mxu0  ;;  %v3346_v51 = vpop.permute.xlu0 %3345 }
 0x72e   : > { %v2735_v59 = vpop.f32.mrb[56].mxu1 }
 0x72f   : > { %v2736_v58 = vadd.f32 %v2735_v59, %v2685_v3  ;;  %v2737_v60 = vpop.f32.mrb[57].mxu1 }
 0x730   : > { %v2738_v61 = vadd.f32 %v2737_v60, %v2687_v57  ;;  %v2739_v50 = vpop.f32.mrb[58].mxu1 }
 0x731   : > { %v2740_v5 = vpop.f32.mrb[59].mxu1 }
 0x732   : > { %v2797_v62 = vpop.f32.mrb[60].mxu0 }
 0x733   : > { %v2804_v1 = vadd.f32 %v2797_v62, %v2736_v58  ;;  %v2799_v2 = vpop.f32.mrb[61].mxu0 }
 0x734   : > { %v2805_v4 = vadd.f32 %v2799_v2, %v2738_v61  ;;  %v2801_v9 = vpop.f32.mrb[62].mxu0 }
 0x735   : > { %v2802_v10 = vpop.f32.mrb[63].mxu0 }
 0x736   : > { %v2861_v11 = vpop.f32.mrb[60].mxu1 }
 0x737   : > { %v2868_v7 = vadd.f32 %v2861_v11, %v2804_v1  ;;  %v2863_v8 = vpop.f32.mrb[61].mxu1 }
 0x738   : > { %v2869_v12 = vadd.f32 %v2863_v8, %v2805_v4  ;;  %v2865_v13 = vpop.f32.mrb[62].mxu1 }
 0x739   : > { %v2866_v14 = vpop.f32.mrb[63].mxu1 }
 0x73a   : > { %v2919_v15 = vpop.f32.mrb[64].mxu0 }
 0x73b   : > { %v2926_v16 = vadd.f32 %v2919_v15, %v2868_v7  ;;  %v2921_v24 = vpop.f32.mrb[65].mxu0 }
 0x73c   : > { %v2927_v25 = vadd.f32 %v2921_v24, %v2869_v12  ;;  %v2923_v20 = vpop.f32.mrb[66].mxu0 }
 0x73d   : > { %v2924_v26 = vpop.f32.mrb[67].mxu0 }
 0x73e   : > { %v2983_v22 = vpop.f32.mrb[64].mxu1 }
 0x73f   : > { %v2990_v23 = vadd.f32 %v2983_v22, %v2926_v16  ;;  %v2985_v31 = vpop.f32.mrb[65].mxu1 }
 0x740   : > { %v2991_v27 = vadd.f32 %v2985_v31, %v2927_v25  ;;  %v2987_v28 = vpop.f32.mrb[66].mxu1 }
 0x741   : > { %v2988_v30 = vpop.f32.mrb[67].mxu1  ;;  %v3206_v28 = vld [vmem:[%s4843_s12] sm:$0xf] }
 0x742   : > { %v3047_v35 = vpop.f32.mrb[68].mxu0 }
 0x743   : > { %v3054_v36 = vadd.f32 %v3047_v35, %v2990_v23  ;;  %v3049_v32 = vpop.f32.mrb[69].mxu0 }
 0x744   : > { %v3055_v37 = vadd.f32 %v3049_v32, %v2991_v27  ;;  %v3051_v38 = vpop.f32.mrb[70].mxu0  ;;  %v3308_v32 = vpop.permute.xlu1 %3307 }
 0x745   : > { %v3052_v46 = vpop.f32.mrb[71].mxu0 }
 0x746   : > { %v3111_v52 = vpop.f32.mrb[68].mxu1 }
 0x747   : > { %v3118_v39 = vadd.f32 %v3111_v52, %v3054_v36  ;;  %v3113_v33 = vpop.f32.mrb[69].mxu1 }
 0x748   : > { %v3119_v34 = vadd.f32 %v3113_v33, %v3055_v37  ;;  %v3115_v41 = vpop.f32.mrb[70].mxu1  ;;  %v3316_v52 = vpop.permute.xlu1 %3315 }
 0x749   : > { %v3116_v44 = vpop.f32.mrb[71].mxu1 }
 0x74a   : > { %v3175_v45 = vpop.f32.mrb[72].mxu0 }
 0x74b   : > { %v3182_v47 = vadd.f32 %v3175_v45, %v3118_v39  ;;  %v3177_v63 = vpop.f32.mrb[73].mxu0 }
 0x74c   : > { %v3183_v6 = vadd.f32 %v3177_v63, %v3119_v34  ;;  %v3179_v42 = vpop.f32.mrb[74].mxu0 }
 0x74d   : > { %v3190_v43 = vadd.f32 %v3188_v40, %v3182_v47  ;;  %v3180_v48 = vpop.f32.mrb[75].mxu0 }
 0x74e   : > { %v3191_v53 = vadd.f32 %v3188_v40, %v3183_v6 }
 0x74f   : > { %v3192_v29 = vsub.f32 0.0, %v3190_v43 }
 0x750   : > { %v3193_v17 = vsub.f32 0.0, %v3191_v53 }
 0x751   : > { %v3194_v21 = vmul.f32 1.442695, %v3192_v29 }
 0x752   : > { %v3196_v55 = vmul.f32 1.442695, %v3193_v17  ;;  %v3297_v56 = vpop.f32.mrb[76].mxu0 }
 0x753   : > { %3783 = vpow2.f32 %v3194_v21  ;;  %v3340_v3 = vmul.f32 %v3338_v49, %v3297_v56  ;;  %v3299_v57 = vpop.f32.mrb[77].mxu0  ;;  %v3364_v56 = vld [vmem:[%s4849_s18] sm:$0xf] }
 0x754   : > { %3785 = vpow2.f32 %v3196_v55  ;;  %v3341_v54 = vmul.f32 %v3338_v49, %v3299_v57  ;;  %v3301_v59 = vpop.f32.mrb[78].mxu0 }
 0x755   : > { %v3348_v58 = vadd.f32 %v3346_v51, %v3340_v3  ;;  %v3302_v60 = vpop.f32.mrb[79].mxu0 }
 0x756   : > { %v3349_v61 = vadd.f32 %v3346_v51, %v3341_v54 }
 0x757   : > { %v3350_v50 = vsub.f32 0.0, %v3348_v58 }
 0x758   : > { %v3351_v5 = vsub.f32 0.0, %v3349_v61 }
 0x759   : > { %v3352_v62 = vmul.f32 1.442695, %v3350_v50 }
 0x75a   : > { %v3354_v1 = vmul.f32 1.442695, %v3351_v5 }
 0x75b   : > { %3787 = vpow2.f32 %v3352_v62 }
 0x75c   : > { %3789 = vpow2.f32 %v3354_v1 }
 0x75d   : > { %v3784_v2 = vpop.eup %3783 }
 0x75e   : > { %v3786_v4 = vpop.eup %3785  ;;  %v3198_v9 = vadd.f32 1.0, %v3784_v2 }
 0x75f   : > { %v3199_v10 = vadd.f32 1.0, %v3786_v4 }
 0x760   : > { %3791 = vrcp.f32 %v3198_v9 }
 0x761   : > { %3793 = vrcp.f32 %v3199_v10 }
 0x765   : > { %v3788_v11 = vpop.eup %3787 }
 0x766   : > { %v3790_v7 = vpop.eup %3789  ;;  %v3356_v8 = vadd.f32 1.0, %v3788_v11 }
 0x767   : > { %v3357_v12 = vadd.f32 1.0, %v3790_v7 }
 0x768   : > { %3795 = vrcp.f32 %v3356_v8 }
 0x769   : > { %3797 = vrcp.f32 %v3357_v12 }
 0x76a   : > { %v3792_v13 = vpop.eup %3791 }
 0x76b   : > { %v3794_v14 = vpop.eup %3793  ;;  %v3202_v15 = vmul.f32 %v3792_v13, %v3190_v43 }
 0x76c   : > { %v3203_v16 = vmul.f32 %v3794_v14, %v3191_v53 }
 0x76d   : > { %v3204_v24 = vadd.f32 %v3202_v15, %v4453_v18 }
 0x76e   : > { %v3205_v25 = vadd.f32 %v3203_v16, %v4456_v19  ;;  %v3365_v19 = vld [vmem:[%s4850_s19] sm:$0xf] }
 0x76f   : > { %v3207_v20 = vpack.c.bf16 %v3204_v24, %v3204_v24 }
 0x770   : > { %v3208_v26 = vpack.c.bf16 %v3205_v25, %v3205_v25 }
 0x771   : > { %v3213_v22 = vsel %vm676_vm0, %v3207_v20, 0 }
 0x772   : > { %v3796_v23 = vpop.eup %3795  ;;  %3685 = vmatprep.subr.msk.bf16.mxu1 %vm676_vm0, %v3208_v26 }
 0x773   : > { %v3798_v31 = vpop.eup %3797  ;;  %v3360_v27 = vmul.f32 %v3796_v23, %v3348_v58  ;;  %3219 = vmatpush1.bf16.msra.mxu1 %v3213_v22 }
 0x774   : > { %v3361_v30 = vmul.f32 %v3798_v31, %v3349_v61  ;;  %v3470_v61 = vpop.permute.xlu1 %3469 }
 0x775   : > { %v3362_v35 = vpack.c.bf16 %v3360_v27, %v3360_v27 }
 0x776   : > { %v3363_v36 = vpack.c.bf16 %v3361_v30, %v3361_v30  ;;  %3686 = vmatmul.mubr.msk.bf16.vlgmr.msra.gmra.mrb[72].mxu1 %vm672_vm1, %v3206_v28 }
 0x777   : > { %v3370_v18 = vsel %vm676_vm0, %v3362_v35, 0  ;;  %3407 = vmatprep.mubr.bf16.mxu1 %v3879_v0 }
 0x778   : > { %3689 = vmatprep.subr.msk.bf16.mxu1 %vm676_vm0, %v3363_v36 }
 0x779   : > { %3376 = vmatpush1.bf16.msra.mxu1 %v3370_v18 }
 0x77e   : > { %3690 = vmatmul.mubr.msk.bf16.vlgmr.msra.gmra.mrb[76].mxu1 %vm672_vm1, %v3365_v19 }
 0x849   : > { %v3252_v37 = vpop.f32.mrb[72].mxu1 }
 0x84a   : > { %v3310_v38 = vmul.f32 %v3308_v32, %v3252_v37  ;;  %v3254_v46 = vpop.f32.mrb[73].mxu1 }
 0x84b   : > { %v3311_v39 = vmul.f32 %v3308_v32, %v3254_v46  ;;  %v3256_v33 = vpop.f32.mrb[74].mxu1 }
 0x84c   : > { %v3318_v40 = vadd.f32 %v3316_v52, %v3310_v38  ;;  %v3257_v34 = vpop.f32.mrb[75].mxu1 }
 0x84d   : > { %v3319_v41 = vadd.f32 %v3316_v52, %v3311_v39 }
 0x84e   : > { %v3320_v0 = vsub.f32 0.0, %v3318_v40 }
 0x84f   : > { %v3321_v44 = vsub.f32 0.0, %v3319_v41 }
 0x850   : > { %v3322_v45 = vmul.f32 1.442695, %v3320_v0 }
 0x851   : > { %v3324_v47 = vmul.f32 1.442695, %v3321_v44  ;;  %v3409_v3 = vpop.f32.mrb[76].mxu1 }
 0x852   : > { %3799 = vpow2.f32 %v3322_v45  ;;  %v3411_v57 = vpop.f32.mrb[77].mxu1 }
 0x853   : > { %3801 = vpow2.f32 %v3324_v47  ;;  %v3413_v51 = vpop.f32.mrb[78].mxu1 }
 0x854   : > { %v3414_v54 = vpop.f32.mrb[79].mxu1 }
 0x85c   : > { %v3800_v63 = vpop.eup %3799 }
 0x85d   : > { %v3802_v6 = vpop.eup %3801  ;;  %v3326_v42 = vadd.f32 1.0, %v3800_v63 }
 0x85e   : > { %v3327_v43 = vadd.f32 1.0, %v3802_v6 }
 0x85f   : > { %3803 = vrcp.f32 %v3326_v42 }
 0x860   : > { %3805 = vrcp.f32 %v3327_v43 }
 0x869   : > { %v3804_v48 = vpop.eup %3803 }
 0x86a   : > { %v3806_v49 = vpop.eup %3805  ;;  %v3330_v53 = vmul.f32 %v3804_v48, %v3318_v40 }
 0x86b   : > { %v3331_v29 = vmul.f32 %v3806_v49, %v3319_v41 }
 0x86c   : > { %v3332_v17 = vpack.c.bf16 %v3330_v53, %v3330_v53 }
 0x86d   : > { %v3333_v21 = vpack.c.bf16 %v3331_v29, %v3331_v29 }
 0x86e   : > { %v3420_v55 = vsel %vm676_vm0, %v3332_v17, 0 }
 0x86f   : > { %3691 = vmatprep.subr.msk.bf16.mxu0 %vm676_vm0, %v3333_v21 }
 0x870   : > { %3426 = vmatpush1.bf16.msra.mxu0 %v3420_v55 }
 0x873   : > { %3692 = vmatmul.mubr.msk.bf16.vlgmr.msra.gmra.mrb[80].mxu0 %vm672_vm1, %v3364_v56 }
 0x946   : > { %v3459_v59 = vpop.f32.mrb[80].mxu0 }
 0x947   : > { %v3460_v58 = vadd.f32 %v3459_v59, %v3409_v3  ;;  %v3461_v60 = vpop.f32.mrb[81].mxu0 }
 0x948   : > { %v3462_v50 = vadd.f32 %v3461_v60, %v3411_v57  ;;  %v3463_v5 = vpop.f32.mrb[82].mxu0 }
 0x949   : > { %v3472_v62 = vadd.f32 %v3470_v61, %v3460_v58  ;;  %v3464_v1 = vpop.f32.mrb[83].mxu0 }
 0x94a   : > { %v3473_v2 = vadd.f32 %v3470_v61, %v3462_v50 }
 0x94b   : > { %v3474_v4 = vsub.f32 0.0, %v3472_v62 }
 0x94c   : > { %v3475_v9 = vsub.f32 0.0, %v3473_v2 }
 0x94d   : > { %v3476_v10 = vmul.f32 1.442695, %v3474_v4 }
 0x94e   : > { %v3478_v11 = vmul.f32 1.442695, %v3475_v9 }
 0x94f   : > { %3807 = vpow2.f32 %v3476_v10 }
 0x950   : > { %3809 = vpow2.f32 %v3478_v11 }
 0x959   : > { %v3808_v7 = vpop.eup %3807 }
 0x95a   : > { %v3810_v8 = vpop.eup %3809  ;;  %v3480_v12 = vadd.f32 1.0, %v3808_v7 }
 0x95b   : > { %v3481_v13 = vadd.f32 1.0, %v3810_v8 }
 0x95c   : > { %3811 = vrcp.f32 %v3480_v12 }
 0x95d   : > { %3813 = vrcp.f32 %v3481_v13 }
 0x966   : > { %v3812_v14 = vpop.eup %3811 }
 0x967   : > { %v3814_v15 = vpop.eup %3813  ;;  %v3484_v16 = vmul.f32 %v3812_v14, %v3472_v62 }
 0x968   : > { %v3485_v24 = vmul.f32 %v3814_v15, %v3473_v2 }
 0x969   : > { %3486 = vst [vmem:[%s650_s24] sm:$0xff] %v3484_v16 }
 0x96a   : > { %3487 = vst [vmem:[%s650_s24 + $0x8] sm:$0xff] %v3485_v24 }
 0x96b   : > { %3828 = shalt.err (!%p3825_p3)
}
 0x96c   : > { %s3829_s0 = scalar_lea.hbm %s4789_s1, 256  ;;  %s3833_s24 = scalar_lea.hbm %s4852_s21, 512 }
 0x96d   : > { %p3830_p4 = scmp.ne.s32.totalorder %s4789_s1, %s3829_s0  ;;  %p3834_p9 = scmp.lt.u32.totalorder %s4789_s1, %s4852_s21 }
 0x96e   : > { %p3835_p10 = scmp.lt.u32.totalorder %s3833_s24, %s3829_s0  ;;  %p3837_p12 = scmp.lt.u32.totalorder %s3829_s0, %s4789_s1 }
 0x96f   : > { %p3831_p7 = pnand %p3830_p4, %p4037_p5 }
 0x970   : > { %p3836_p11 = por %p3835_p10, %p3834_p9 }
 0x971   : > { %p3832_p8 = pneg %p3831_p7 }
 0x972   : > { %p3838_p13 = por %p3837_p12, %p3836_p11 }
 0x974   : > { %p3839_p0 = pnand %p3838_p13, %p3832_p8 }
 0x976   : > { %3842 = shalt.err (!%p3839_p0)
}
 0x977   : > { %3699 = dma.vmem_to_hbm [thread:$0]  (%p4037_p5), %s4791_s23, 256, %s4789_s1, %s3489_s29  }
 0x978 PF: > { %p3705_p1 = scmp.ge.s32.totalorder %s3877_s27, 2  ;;  %s3515_s3 = sand.u32 1, %s3865_s2  }
 0x979   : > { %s3516_s28 = scalar_lea.sflag [#allocation3], %s3515_s3 }
 0x97a   : > { %p3702_p2 = pnand %p3705_p1, %p4041_p6 }
 0x97c   : > { %3860 = dma.done.wait (!%p3702_p2), %s3516_s28, 256  }
 0x97d   : > { %3862 = vsyncadd (!%p3702_p2), %s3516_s28, 4294967040  ;;  %s4907_s27 = sld [smem:[#allocation6_spill]]  ;;  %s4908_s6 = sld [smem:[#allocation5_spill]] }
 0x97e   : > { %s4909_s26 = sld [smem:[#allocation7_spill]]  ;;  %s4910_s2 = smov %s3869_s25 }
 0x983   : > { %p31_p3 = scmp.ge.s32.totalorder %s4907_s27, 4   ;;  %s4911_s25 = smov %s4908_s6 }
 0x985   :  { %33 = sbr.rel (!%p31_p3) target bundleno = 13 (0xd), region = 179 }
 0x98c   :  { %3521 = vsyncpa [#allocation3], 1 }
 0x98d   :  { %3523 = vsyncpa [#allocation3 + $0x1], 1 }

</bundles_post_ra>
